<compile_context>
chip_gen: v5e
topology: v5e:2x2
jax: 0.10.0
libtpu: 0.0.40
codegen_flags: <defaults>
</compile_context>

<pallas_src>
import jax
import jax.numpy as jnp
from jax.experimental import pallas as pl
from jax.experimental.pallas import tpu as pltpu


def _agg_kernel(x_ref, w_ref, b_ref, o_ref):
    # MXU matmul, f32 accumulation regardless of input dtype.
    y = jnp.dot(x_ref[...], w_ref[...], preferred_element_type=jnp.float32)
    y = y + b_ref[...].astype(jnp.float32)              # (tb, Cout) + (1, Cout)
    # Row-wise L2 normalize. max(sq, 1e-24) == clamping the norm at 1e-12,
    # matching torch.nn.functional.normalize(eps=1e-12). Reduce -> XLU slot,
    # rsqrt -> EUP slot; both co-issue with the MXU/VPU work.
    sq = jnp.maximum(jnp.sum(y * y, axis=-1, keepdims=True), 1e-24)
    inv = jax.lax.rsqrt(sq)
    # One Newton-Raphson step on the (tb, 1) column: ~f32-accurate rsqrt at
    # negligible cost (a handful of VPU ops on a single lane column).
    inv = inv * (1.5 - 0.5 * sq * inv * inv)
    o_ref[...] = (y * inv).astype(o_ref.dtype)


def _round_up(x, m):
    return (x + m - 1) // m * m


# Tile-selection budget: sized so x/out double-buffers + weight + f32 y fit the
# smallest physical VMEM (v7x: 64 MiB) with headroom.
_VMEM_TILE_BUDGET = 40 * 1024 * 1024
_VMEM_LIMIT_CAP = 64 * 1024 * 1024

# Cached capability: does this JAX accept pipeline_mode=pl.Buffered(1)?
_SINGLE_BUFFER_OK = [hasattr(pl, "Buffered")]


def _vmem_footprint(tile_b, cin, cout_p, itemsize, w_bufs):
    return (2 * tile_b * cin * itemsize          # double-buffered x tile
            + 2 * tile_b * cout_p * itemsize     # double-buffered out tile
            + w_bufs * cin * cout_p * itemsize   # grid-constant weight block
            + tile_b * cout_p * 4                # f32 intermediate y (+ temps)
            + 2 * cout_p * itemsize)             # bias


def _pick_batch_tile(B, cin, cout_p, itemsize, sublane, tile_b, w_bufs):
    """Returns (tile_b_eff, padded_batch)."""
    b_s = _round_up(B, sublane)
    n_groups = b_s // sublane
    max_groups = max(1, tile_b // sublane)
    # Megacore (v7x): guarantee >= 2 grid steps whenever there are >= 2
    # sublane groups so the 'parallel' axis shards across both TensorCores.
    if n_groups >= 2:
        max_groups = min(max_groups, max(1, n_groups // 2))
    # Shrink until the footprint (including the f32 intermediate) fits budget.
    while max_groups > 1 and _vmem_footprint(
            max_groups * sublane, cin, cout_p, itemsize, w_bufs) > _VMEM_TILE_BUDGET:
        max_groups //= 2
    # Prefer a tile that divides the sublane-rounded batch: no full-tile pad of
    # x / slice of out (each is an extra HBM pass in a mem-bound kernel).
    best_div = 1
    for d in range(max_groups, 0, -1):
        if n_groups % d == 0:
            best_div = d
            break
    if 2 * best_div >= max_groups:
        return best_div * sublane, b_s
    # Awkward batch (few divisors): one padded tile beats many tiny grid steps.
    return max_groups * sublane, _round_up(n_groups, max_groups) * sublane


def my_agg_forward(x, w_t, b, *, tile_b=512):
    """x: (B, Cin), w_t: (Cin, Cout) (transposed nn.Linear weight), b: (Cout,).

    Returns (B, Cout) = F.normalize(x @ w_t + b, p=2, dim=1).
    """
    B, cin = x.shape
    cin_w, cout = w_t.shape
    assert cin_w == cin, "weight inner dim must match x features"

    itemsize = jnp.dtype(x.dtype).itemsize
    sublane = max(8, 32 // itemsize)          # f32 -> 8, bf16 -> 16, i8 -> 32

    # Lane-dense output: pad Cout to 128 only when needed (padded W/b columns
    # are zero, so the row norm is unchanged).
    cout_p = _round_up(cout, 128)
    if cout_p != cout:
        w_t = jnp.pad(w_t, ((0, 0), (0, cout_p - cout)))
        b = jnp.pad(b, (0, cout_p - cout))

    w_bufs = 1 if _SINGLE_BUFFER_OK[0] else 2
    tile_b_eff, b_p = _pick_batch_tile(B, cin, cout_p, itemsize, sublane, tile_b, w_bufs)
    if b_p != B:
        # Zero rows just produce normalize(bias) and are sliced off.
        x = jnp.pad(x, ((0, b_p - B), (0, 0)))

    b2d = b.reshape(1, cout_p)
    grid_b = b_p // tile_b_eff

    cost = pl.CostEstimate(
        flops=2 * b_p * cin * cout_p + 3 * b_p * cout_p,
        transcendentals=b_p,
        bytes_accessed=(b_p * cin + cin * cout_p + cout_p + b_p * cout_p) * itemsize,
    )

    def _call(single_buffer_consts):
        n_w = 1 if single_buffer_consts else 2
        fp = _vmem_footprint(tile_b_eff, cin, cout_p, itemsize, n_w)
        vmem_limit = int(min(_VMEM_LIMIT_CAP, max(16 << 20, fp + (4 << 20))))
        const_kw = ({"pipeline_mode": pl.Buffered(1)} if single_buffer_consts else {})
        return pl.pallas_call(
            _agg_kernel,
            out_shape=jax.ShapeDtypeStruct((b_p, cout_p), x.dtype),
            grid_spec=pltpu.PrefetchScalarGridSpec(
                num_scalar_prefetch=0,
                grid=(grid_b,),
                in_specs=[
                    # x tile: (tile_b, Cin); Cin equals the full array dim so
                    # the (8,128) constraint is satisfied even for small Cin.
                    pl.BlockSpec((tile_b_eff, cin), lambda i: (i, 0)),
                    # Full weight, grid-constant -> DMA'd once, single-buffered.
                    pl.BlockSpec((cin, cout_p), lambda i: (0, 0), **const_kw),
                    # Bias row, grid-constant.
                    pl.BlockSpec((1, cout_p), lambda i: (0, 0), **const_kw),
                ],
                out_specs=pl.BlockSpec((tile_b_eff, cout_p), lambda i: (i, 0)),
            ),
            compiler_params=pltpu.CompilerParams(
                dimension_semantics=("parallel",),
                vmem_limit_bytes=vmem_limit,
            ),
            cost_estimate=cost,
        )(x, w_t, b2d)

    if _SINGLE_BUFFER_OK[0]:
        try:
            out = _call(True)
        except Exception:
            # Older JAX without pipeline_mode / Buffered(1): fall back to the
            # default (double-buffered) pipeline.
            _SINGLE_BUFFER_OK[0] = False
            out = _call(False)
    else:
        out = _call(False)

    if b_p != B or cout_p != cout:
        out = out[:B, :cout]
    return out


def _reference(x, w_t, b):
    y = x @ w_t + b
    n = jnp.maximum(jnp.linalg.norm(y, axis=1, keepdims=True), 1e-12)
    return y / n


if __name__ == "__main__":
    # Small shapes consistent with the module: batch=8, in_channels=32, out_channels=128.
    B, Cin, Cout = 8, 32, 128

    key = jax.random.PRNGKey(0)
    kx, kw, kb = jax.random.split(key, 3)
    x = jax.random.normal(kx, (B, Cin), dtype=jnp.float32)
    # nn.Linear(in_channels, out_channels): weight (Cout, Cin), stored here
    # transposed as (Cin, Cout); bias (Cout,).
    w_t = jax.random.normal(kw, (Cin, Cout), dtype=jnp.float32) * 0.05
    b = jax.random.normal(kb, (Cout,), dtype=jnp.float32) * 0.01

    # f32 path: check against the pure-JAX reference.
    out = jax.block_until_ready(my_agg_forward(x, w_t, b))
    ref = _reference(x, w_t, b)
    assert out.shape == (B, Cout)
    assert out.dtype == x.dtype
    assert bool(jnp.allclose(out, ref, atol=2e-5, rtol=2e-5)), "mismatch vs reference"

    # bf16 path (halves HBM traffic; exercises 16-row sublane tiling + padding).
    out_bf = jax.block_until_ready(
        my_agg_forward(x.astype(jnp.bfloat16),
                       w_t.astype(jnp.bfloat16),
                       b.astype(jnp.bfloat16)))
    assert out_bf.shape == (B, Cout)
    norms = jnp.linalg.norm(out_bf.astype(jnp.float32), axis=1)
    assert bool(jnp.all(jnp.abs(norms - 1.0) < 0.05)), "bf16 rows not unit-norm"

    print("KERNEL_OK")
</pallas_src>

<mosaic_0001>
module attributes {stable_mosaic.version = 11 : i64} {
  func.func @_agg_kernel(%arg0: i32, %arg1: memref<512x32xf32, #tpu.memory_space<vmem>>, %arg2: memref<32x128xf32, #tpu.memory_space<vmem>>, %arg3: memref<1x128xf32, #tpu.memory_space<vmem>>, %arg4: memref<512x128xf32, #tpu.memory_space<vmem>>) attributes {dimension_semantics = [#tpu.dimension_semantics<parallel>], iteration_bounds = array<i64: 1>, scalar_prefetch = 0 : i64, scratch_operands = 0 : i64, tpu.core_type = #tpu.core_type<tc>, window_params = [{transform_indices = @transform_0, window_bounds = array<i64: 512, 32>}, {pipeline_mode = #tpu.pipeline_mode<synchronous>, transform_indices = @transform_1, window_bounds = array<i64: 32, 128>}, {pipeline_mode = #tpu.pipeline_mode<synchronous>, transform_indices = @transform_2, window_bounds = array<i64: 1, 128>}, {transform_indices = @transform_3, window_bounds = array<i64: 512, 128>}]} {
    %c0 = arith.constant 0 : index
    %c0_0 = arith.constant 0 : index
    %0 = vector.load %arg1[%c0, %c0_0] : memref<512x32xf32, #tpu.memory_space<vmem>>, vector<512x32xf32>
    %c0_1 = arith.constant 0 : index
    %c0_2 = arith.constant 0 : index
    %1 = vector.load %arg2[%c0_1, %c0_2] : memref<32x128xf32, #tpu.memory_space<vmem>>, vector<32x128xf32>
    %cst = arith.constant dense<0.000000e+00> : vector<512x128xf32>
    %2 = tpu.matmul %0, %1, %cst {dimension_numbers = #tpu.dot_dimension_numbers<[1], [0], [0], [1], [0, 0, 1, 1], [], []>} : vector<512x32xf32>, vector<32x128xf32>, vector<512x128xf32> -> vector<512x128xf32>
    %c0_3 = arith.constant 0 : index
    %c0_4 = arith.constant 0 : index
    %3 = vector.load %arg3[%c0_3, %c0_4] : memref<1x128xf32, #tpu.memory_space<vmem>>, vector<1x128xf32>
    %4 = vector.broadcast %3 : vector<1x128xf32> to vector<512x128xf32>
    %5 = arith.addf %2, %4 : vector<512x128xf32>
    %6 = arith.mulf %5, %5 : vector<512x128xf32>
    %cst_5 = arith.constant dense<0.000000e+00> : vector<512xf32>
    %7 = vector.multi_reduction <add>, %6, %cst_5 [1] : vector<512x128xf32> to vector<512xf32>
    %8 = vector.shape_cast %7 : vector<512xf32> to vector<512x1xf32>
    %cst_6 = arith.constant 1.000000e-24 : f32
    %9 = vector.broadcast %cst_6 : f32 to vector<512x1xf32>
    %10 = arith.maximumf %8, %9 : vector<512x1xf32>
    %11 = math.rsqrt %10 : vector<512x1xf32>
    %cst_7 = arith.constant 5.000000e-01 : f32
    %12 = vector.broadcast %cst_7 : f32 to vector<512x1xf32>
    %13 = arith.mulf %12, %10 : vector<512x1xf32>
    %14 = arith.mulf %13, %11 : vector<512x1xf32>
    %15 = arith.mulf %14, %11 : vector<512x1xf32>
    %cst_8 = arith.constant 1.500000e+00 : f32
    %16 = vector.broadcast %cst_8 : f32 to vector<512x1xf32>
    %17 = arith.subf %16, %15 : vector<512x1xf32>
    %18 = arith.mulf %11, %17 : vector<512x1xf32>
    %19 = vector.broadcast %18 : vector<512x1xf32> to vector<512x128xf32>
    %20 = arith.mulf %5, %19 : vector<512x128xf32>
    %c0_9 = arith.constant 0 : index
    %c0_10 = arith.constant 0 : index
    %21 = vector.load %arg4[%c0_9, %c0_10] : memref<512x128xf32, #tpu.memory_space<vmem>>, vector<512x128xf32>
    tpu.vector_store %arg4[%c0_9, %c0_10], %20 {strides = array<i32>} : memref<512x128xf32, #tpu.memory_space<vmem>>, vector<512x128xf32>,
    return
  }
  func.func @transform_0(%arg0: i32) -> (i32, i32) {
    %c0_i32 = arith.constant 0 : i32
    %c0_i32_0 = arith.constant 0 : i32
    return %arg0, %c0_i32 : i32, i32
  }
  func.func @transform_1(%arg0: i32) -> (i32, i32) {
    %c0_i32 = arith.constant 0 : i32
    %c0_i32_0 = arith.constant 0 : i32
    %c0_i32_1 = arith.constant 0 : i32
    return %c0_i32, %c0_i32_0 : i32, i32
  }
  func.func @transform_2(%arg0: i32) -> (i32, i32) {
    %c0_i32 = arith.constant 0 : i32
    %c0_i32_0 = arith.constant 0 : i32
    %c0_i32_1 = arith.constant 0 : i32
    return %c0_i32, %c0_i32_0 : i32, i32
  }
  func.func @transform_3(%arg0: i32) -> (i32, i32) {
    %c0_i32 = arith.constant 0 : i32
    %c0_i32_0 = arith.constant 0 : i32
    return %arg0, %c0_i32 : i32, i32
  }
}

module attributes {stable_mosaic.version = 11 : i64} {
  func.func @_agg_kernel(%arg0: i32, %arg1: memref<512x32xf32, #tpu.memory_space<vmem>>, %arg2: memref<32x128xf32, #tpu.memory_space<vmem>>, %arg3: memref<1x128xf32, #tpu.memory_space<vmem>>, %arg4: memref<512x128xf32, #tpu.memory_space<vmem>>) attributes {dimension_semantics = [#tpu.dimension_semantics<parallel>], iteration_bounds = array<i64: 1>, scalar_prefetch = 0 : i64, scratch_operands = 0 : i64, tpu.core_type = #tpu.core_type<tc>, window_params = [{transform_indices = @transform_0, window_bounds = array<i64: 512, 32>}, {pipeline_mode = #tpu.pipeline_mode<synchronous>, transform_indices = @transform_1, window_bounds = array<i64: 32, 128>}, {pipeline_mode = #tpu.pipeline_mode<synchronous>, transform_indices = @transform_2, window_bounds = array<i64: 1, 128>}, {transform_indices = @transform_3, window_bounds = array<i64: 512, 128>}]} {
    %c0 = arith.constant 0 : index
    %c0_0 = arith.constant 0 : index
    %0 = vector.load %arg1[%c0, %c0_0] : memref<512x32xf32, #tpu.memory_space<vmem>>, vector<512x32xf32>
    %c0_1 = arith.constant 0 : index
    %c0_2 = arith.constant 0 : index
    %1 = vector.load %arg2[%c0_1, %c0_2] : memref<32x128xf32, #tpu.memory_space<vmem>>, vector<32x128xf32>
    %cst = arith.constant dense<0.000000e+00> : vector<512x128xf32>
    %2 = tpu.matmul %0, %1, %cst {dimension_numbers = #tpu.dot_dimension_numbers<[1], [0], [0], [1], [0, 0, 1, 1], [], []>} : vector<512x32xf32>, vector<32x128xf32>, vector<512x128xf32> -> vector<512x128xf32>
    %c0_3 = arith.constant 0 : index
    %c0_4 = arith.constant 0 : index
    %3 = vector.load %arg3[%c0_3, %c0_4] : memref<1x128xf32, #tpu.memory_space<vmem>>, vector<1x128xf32>
    %4 = vector.broadcast %3 : vector<1x128xf32> to vector<512x128xf32>
    %5 = arith.addf %2, %4 : vector<512x128xf32>
    %6 = arith.mulf %5, %5 : vector<512x128xf32>
    %cst_5 = arith.constant dense<0.000000e+00> : vector<512xf32>
    %7 = vector.multi_reduction <add>, %6, %cst_5 [1] : vector<512x128xf32> to vector<512xf32>
    %8 = vector.shape_cast %7 : vector<512xf32> to vector<512x1xf32>
    %cst_6 = arith.constant 1.000000e-24 : f32
    %9 = vector.broadcast %cst_6 : f32 to vector<512x1xf32>
    %10 = arith.maximumf %8, %9 : vector<512x1xf32>
    %11 = math.rsqrt %10 : vector<512x1xf32>
    %cst_7 = arith.constant 5.000000e-01 : f32
    %12 = vector.broadcast %cst_7 : f32 to vector<512x1xf32>
    %13 = arith.mulf %12, %10 : vector<512x1xf32>
    %14 = arith.mulf %13, %11 : vector<512x1xf32>
    %15 = arith.mulf %14, %11 : vector<512x1xf32>
    %cst_8 = arith.constant 1.500000e+00 : f32
    %16 = vector.broadcast %cst_8 : f32 to vector<512x1xf32>
    %17 = arith.subf %16, %15 : vector<512x1xf32>
    %18 = arith.mulf %11, %17 : vector<512x1xf32>
    %19 = vector.broadcast %18 : vector<512x1xf32> to vector<512x128xf32>
    %20 = arith.mulf %5, %19 : vector<512x128xf32>
    %c0_9 = arith.constant 0 : index
    %c0_10 = arith.constant 0 : index
    %21 = vector.load %arg4[%c0_9, %c0_10] : memref<512x128xf32, #tpu.memory_space<vmem>>, vector<512x128xf32>
    tpu.vector_store %arg4[%c0_9, %c0_10], %20 {strides = array<i32>} : memref<512x128xf32, #tpu.memory_space<vmem>>, vector<512x128xf32>,
    return
  }
  func.func @transform_0(%arg0: i32) -> (i32, i32) {
    %c0_i32 = arith.constant 0 : i32
    %c0_i32_0 = arith.constant 0 : i32
    return %arg0, %c0_i32 : i32, i32
  }
  func.func @transform_1(%arg0: i32) -> (i32, i32) {
    %c0_i32 = arith.constant 0 : i32
    %c0_i32_0 = arith.constant 0 : i32
    %c0_i32_1 = arith.constant 0 : i32
    return %c0_i32, %c0_i32_0 : i32, i32
  }
  func.func @transform_2(%arg0: i32) -> (i32, i32) {
    %c0_i32 = arith.constant 0 : i32
    %c0_i32_0 = arith.constant 0 : i32
    %c0_i32_1 = arith.constant 0 : i32
    return %c0_i32, %c0_i32_0 : i32, i32
  }
  func.func @transform_3(%arg0: i32) -> (i32, i32) {
    %c0_i32 = arith.constant 0 : i32
    %c0_i32_0 = arith.constant 0 : i32
    return %arg0, %c0_i32 : i32, i32
  }
}

</mosaic_0001>

<bundles_post_ra>
// kernel: tpu_custom_call.1
= control target key start
LH: loop header
LB: loop body
LE: loop exit
PB: predicated region body
PF: predicated region fallthrough
CT: control target
= control target key end

     0   :  { %vm87_vm0 = vcmask 261120   ;;  %s3486_s0 = inlined_call_operand.vmem [shape: f32[512,32], index: 0, kind: input, shape index: {}]   ;;  %s3487_s1 = inlined_call_operand.vmem [shape: f32[32,128], index: 1, kind: input, shape index: {}]   ;;  %s3488_s2 = inlined_call_operand.vmem [shape: f32[1,128], index: 2, kind: input, shape index: {}]   ;;  %s3489_s3 = inlined_call_operand.hbm [shape: f32[512,128], index: 3, kind: output, shape index: {}]  }
   0x1   :  { %v82_v0 = vld [vmem:[%s3487_s1 + $0x18] sm:$0xff]  ;;  %v81_v1 = vld [vmem:[%s3487_s1 + $0x10] sm:$0xff]  ;;  %v80_v2 = vld [vmem:[%s3487_s1 + $0x8] sm:$0xff] }
   0x2   :  { %292 = vmatpush.msra.mxu0 %v82_v0  ;;  %1915 = vmatpush.msra.mxu1 %v82_v0  ;;  %v79_v3 = vld [vmem:[%s3487_s1] sm:$0xff] }
   0x3   :  { %1916 = vmatpush.msra.mxu2 %v82_v0  ;;  %1917 = vmatpush.msra.mxu3 %v82_v0  ;;  %v15_v4 = vld [vmem:[%s3486_s0] sm:$0xff] }
   0x4   :  { %293 = vmatpush.msra.mxu0 %v81_v1  ;;  %1918 = vmatpush.msra.mxu1 %v81_v1  ;;  %v31_v5 = vld [vmem:[%s3486_s0 + $0x80] sm:$0xff] }
   0x5   :  { %1919 = vmatpush.msra.mxu2 %v81_v1  ;;  %1920 = vmatpush.msra.mxu3 %v81_v1  ;;  %v47_v6 = vld [vmem:[%s3486_s0 + $0x100] sm:$0xff] }
   0x6   :  { %294 = vmatpush.msra.mxu0 %v80_v2  ;;  %1921 = vmatpush.msra.mxu1 %v80_v2  ;;  %v63_v7 = vld [vmem:[%s3486_s0 + $0x180] sm:$0xff] }
   0x7   :  { %1922 = vmatpush.msra.mxu2 %v80_v2  ;;  %1923 = vmatpush.msra.mxu3 %v80_v2 }
   0x8   :  { %295 = vmatpush.msra.mxu0 %v79_v3  ;;  %1924 = vmatpush.msra.mxu1 %v79_v3 }
   0x9   :  { %8 = vsyncpa [#allocation3], 0  ;;  %1925 = vmatpush.msra.mxu2 %v79_v3  ;;  %1926 = vmatpush.msra.mxu3 %v79_v3  ;;  %v16_v8 = vld [vmem:[%s3486_s0 + $0x8] sm:$0xff]  ;;  %v17_v12 = vld [vmem:[%s3486_s0 + $0x10] sm:$0xff]  ;;  %s1839_s14 = sshll.u32 %s3489_s3, 4  ;;  %s2087_s15 = smov 128   ;;  %s1840_s14 = int_to_ptr.hbm [resolvable:$true] %s1839_s14 }
   0xa   :  { %1851 = vmatmul.msk.f32.vlgmr.msra.gmra.mxu0 %vm87_vm0, %v15_v4  ;;  %1867 = vmatmul.msk.f32.vlgmr.msra.gmra.mxu1 %vm87_vm0, %v31_v5  ;;  %v32_v9 = vld [vmem:[%s3486_s0 + $0x88] sm:$0xff]  ;;  %v33_v13 = vld [vmem:[%s3486_s0 + $0x90] sm:$0xff]  ;;  %v18_v16 = vld [vmem:[%s3486_s0 + $0x18] sm:$0xff]  ;;  %s2088_s16 = smov 8  }
   0xb   :  { %1883 = vmatmul.msk.f32.vlgmr.msra.gmra.mxu2 %vm87_vm0, %v47_v6  ;;  %1899 = vmatmul.msk.f32.vlgmr.msra.gmra.mxu3 %vm87_vm0, %v63_v7  ;;  %v48_v10 = vld [vmem:[%s3486_s0 + $0x108] sm:$0xff]  ;;  %v49_v14 = vld [vmem:[%s3486_s0 + $0x110] sm:$0xff]  ;;  %v34_v17 = vld [vmem:[%s3486_s0 + $0x98] sm:$0xff] }
   0xc   :  { %v64_v11 = vld [vmem:[%s3486_s0 + $0x188] sm:$0xff]  ;;  %v65_v15 = vld [vmem:[%s3486_s0 + $0x190] sm:$0xff]  ;;  %v50_v18 = vld [vmem:[%s3486_s0 + $0x118] sm:$0xff] }
   0xd   :  { %v66_v19 = vld [vmem:[%s3486_s0 + $0x198] sm:$0xff]  ;;  %v19_v20 = vld [vmem:[%s3486_s0 + $0x20] sm:$0xff]  ;;  %v20_v24 = vld [vmem:[%s3486_s0 + $0x28] sm:$0xff] }
   0xe   :  { %v35_v21 = vld [vmem:[%s3486_s0 + $0xa0] sm:$0xff]  ;;  %v36_v25 = vld [vmem:[%s3486_s0 + $0xa8] sm:$0xff]  ;;  %v21_v28 = vld [vmem:[%s3486_s0 + $0x30] sm:$0xff] }
   0xf   :  { %v51_v22 = vld [vmem:[%s3486_s0 + $0x120] sm:$0xff]  ;;  %v52_v26 = vld [vmem:[%s3486_s0 + $0x128] sm:$0xff]  ;;  %v37_v29 = vld [vmem:[%s3486_s0 + $0xb0] sm:$0xff] }
  0x10   :  { %v67_v23 = vld [vmem:[%s3486_s0 + $0x1a0] sm:$0xff]  ;;  %v68_v27 = vld [vmem:[%s3486_s0 + $0x1a8] sm:$0xff]  ;;  %v53_v30 = vld [vmem:[%s3486_s0 + $0x130] sm:$0xff] }
  0x11   :  { %v69_v31 = vld [vmem:[%s3486_s0 + $0x1b0] sm:$0xff]  ;;  %v22_v32 = vld [vmem:[%s3486_s0 + $0x38] sm:$0xff]  ;;  %v23_v36 = vld [vmem:[%s3486_s0 + $0x40] sm:$0xff] }
  0x12   :  { %1852 = vmatmul.msk.f32.gmra.mxu0 %vm87_vm0, %v16_v8  ;;  %1868 = vmatmul.msk.f32.gmra.mxu1 %vm87_vm0, %v32_v9  ;;  %v38_v33 = vld [vmem:[%s3486_s0 + $0xb8] sm:$0xff]  ;;  %v39_v37 = vld [vmem:[%s3486_s0 + $0xc0] sm:$0xff]  ;;  %v24_v40 = vld [vmem:[%s3486_s0 + $0x48] sm:$0xff] }
  0x13   :  { %1884 = vmatmul.msk.f32.gmra.mxu2 %vm87_vm0, %v48_v10  ;;  %1900 = vmatmul.msk.f32.gmra.mxu3 %vm87_vm0, %v64_v11  ;;  %v54_v34 = vld [vmem:[%s3486_s0 + $0x138] sm:$0xff]  ;;  %v55_v38 = vld [vmem:[%s3486_s0 + $0x140] sm:$0xff]  ;;  %v40_v41 = vld [vmem:[%s3486_s0 + $0xc8] sm:$0xff] }
  0x14   :  { %v70_v35 = vld [vmem:[%s3486_s0 + $0x1b8] sm:$0xff]  ;;  %v71_v39 = vld [vmem:[%s3486_s0 + $0x1c0] sm:$0xff]  ;;  %v56_v42 = vld [vmem:[%s3486_s0 + $0x148] sm:$0xff] }
  0x15   :  { %v72_v43 = vld [vmem:[%s3486_s0 + $0x1c8] sm:$0xff]  ;;  %v25_v44 = vld [vmem:[%s3486_s0 + $0x50] sm:$0xff]  ;;  %v26_v48 = vld [vmem:[%s3486_s0 + $0x58] sm:$0xff] }
  0x16   :  { %v41_v45 = vld [vmem:[%s3486_s0 + $0xd0] sm:$0xff]  ;;  %v42_v49 = vld [vmem:[%s3486_s0 + $0xd8] sm:$0xff]  ;;  %v27_v52 = vld [vmem:[%s3486_s0 + $0x60] sm:$0xff] }
  0x17   :  { %v57_v46 = vld [vmem:[%s3486_s0 + $0x150] sm:$0xff]  ;;  %v58_v50 = vld [vmem:[%s3486_s0 + $0x158] sm:$0xff]  ;;  %v59_v53 = vld [vmem:[%s3486_s0 + $0x160] sm:$0xff] }
  0x18   :  { %v73_v47 = vld [vmem:[%s3486_s0 + $0x1d0] sm:$0xff]  ;;  %v74_v51 = vld [vmem:[%s3486_s0 + $0x1d8] sm:$0xff]  ;;  %v75_v54 = vld [vmem:[%s3486_s0 + $0x1e0] sm:$0xff] }
  0x19   :  { %v43_v55 = vld [vmem:[%s3486_s0 + $0xe0] sm:$0xff]  ;;  %v60_v56 = vld [vmem:[%s3486_s0 + $0x168] sm:$0xff]  ;;  %v61_v59 = vld [vmem:[%s3486_s0 + $0x170] sm:$0xff] }
  0x1a   :  { %1853 = vmatmul.msk.f32.gmra.mxu0 %vm87_vm0, %v17_v12  ;;  %1869 = vmatmul.msk.f32.gmra.mxu1 %vm87_vm0, %v33_v13  ;;  %v28_v57 = vld [vmem:[%s3486_s0 + $0x68] sm:$0xff]  ;;  %v29_v61 = vld [vmem:[%s3486_s0 + $0x70] sm:$0xff]  ;;  %v62_v63 = vld [vmem:[%s3486_s0 + $0x178] sm:$0xff] }
  0x1b   :  { %1885 = vmatmul.msk.f32.gmra.mxu2 %vm87_vm0, %v49_v14  ;;  %1901 = vmatmul.msk.f32.gmra.mxu3 %vm87_vm0, %v65_v15  ;;  %v44_v58 = vld [vmem:[%s3486_s0 + $0xe8] sm:$0xff]  ;;  %v45_v62 = vld [vmem:[%s3486_s0 + $0xf0] sm:$0xff]  ;;  %v2367_v1 = vld [vmem:[%s3488_s2] ss:$0 sm:$0xff] }
  0x1c   :  { %v76_v60 = vld [vmem:[%s3486_s0 + $0x1e8] sm:$0xff]  ;;  %v77_v0 = vld [vmem:[%s3486_s0 + $0x1f0] sm:$0xff]  ;;  %v46_v4 = vld [vmem:[%s3486_s0 + $0xf8] sm:$0xff] }
  0x1d   :  { %v30_v9 = vld [vmem:[%s3486_s0 + $0x78] sm:$0xff] }
  0x1e   :  { %v78_v10 = vld [vmem:[%s3486_s0 + $0x1f8] sm:$0xff] }
  0x22   :  { %1854 = vmatmul.msk.f32.gmra.mxu0 %vm87_vm0, %v18_v16  ;;  %1870 = vmatmul.msk.f32.gmra.mxu1 %vm87_vm0, %v34_v17 }
  0x23   :  { %1886 = vmatmul.msk.f32.gmra.mxu2 %vm87_vm0, %v50_v18  ;;  %1902 = vmatmul.msk.f32.gmra.mxu3 %vm87_vm0, %v66_v19 }
  0x2a   :  { %1855 = vmatmul.msk.f32.gmra.mxu0 %vm87_vm0, %v19_v20  ;;  %1871 = vmatmul.msk.f32.gmra.mxu1 %vm87_vm0, %v35_v21 }
  0x2b   :  { %1887 = vmatmul.msk.f32.gmra.mxu2 %vm87_vm0, %v51_v22  ;;  %1903 = vmatmul.msk.f32.gmra.mxu3 %vm87_vm0, %v67_v23 }
  0x32   :  { %1856 = vmatmul.msk.f32.gmra.mxu0 %vm87_vm0, %v20_v24  ;;  %1872 = vmatmul.msk.f32.gmra.mxu1 %vm87_vm0, %v36_v25 }
  0x33   :  { %1888 = vmatmul.msk.f32.gmra.mxu2 %vm87_vm0, %v52_v26  ;;  %1904 = vmatmul.msk.f32.gmra.mxu3 %vm87_vm0, %v68_v27 }
  0x3a   :  { %1857 = vmatmul.msk.f32.gmra.mxu0 %vm87_vm0, %v21_v28  ;;  %1873 = vmatmul.msk.f32.gmra.mxu1 %vm87_vm0, %v37_v29 }
  0x3b   :  { %1889 = vmatmul.msk.f32.gmra.mxu2 %vm87_vm0, %v53_v30  ;;  %1905 = vmatmul.msk.f32.gmra.mxu3 %vm87_vm0, %v69_v31 }
  0x42   :  { %1858 = vmatmul.msk.f32.gmra.mxu0 %vm87_vm0, %v22_v32  ;;  %1874 = vmatmul.msk.f32.gmra.mxu1 %vm87_vm0, %v38_v33 }
  0x43   :  { %1890 = vmatmul.msk.f32.gmra.mxu2 %vm87_vm0, %v54_v34  ;;  %1906 = vmatmul.msk.f32.gmra.mxu3 %vm87_vm0, %v70_v35 }
  0x4a   :  { %1859 = vmatmul.msk.f32.gmra.mxu0 %vm87_vm0, %v23_v36  ;;  %1875 = vmatmul.msk.f32.gmra.mxu1 %vm87_vm0, %v39_v37 }
  0x4b   :  { %1891 = vmatmul.msk.f32.gmra.mxu2 %vm87_vm0, %v55_v38  ;;  %1907 = vmatmul.msk.f32.gmra.mxu3 %vm87_vm0, %v71_v39 }
  0x52   :  { %1860 = vmatmul.msk.f32.gmra.mxu0 %vm87_vm0, %v24_v40  ;;  %1876 = vmatmul.msk.f32.gmra.mxu1 %vm87_vm0, %v40_v41 }
  0x53   :  { %1892 = vmatmul.msk.f32.gmra.mxu2 %vm87_vm0, %v56_v42  ;;  %1908 = vmatmul.msk.f32.gmra.mxu3 %vm87_vm0, %v72_v43 }
  0x5a   :  { %1861 = vmatmul.msk.f32.gmra.mxu0 %vm87_vm0, %v25_v44  ;;  %1877 = vmatmul.msk.f32.gmra.mxu1 %vm87_vm0, %v41_v45 }
  0x5b   :  { %1893 = vmatmul.msk.f32.gmra.mxu2 %vm87_vm0, %v57_v46  ;;  %1909 = vmatmul.msk.f32.gmra.mxu3 %vm87_vm0, %v73_v47 }
  0x62   :  { %1862 = vmatmul.msk.f32.gmra.mxu0 %vm87_vm0, %v26_v48  ;;  %1878 = vmatmul.msk.f32.gmra.mxu1 %vm87_vm0, %v42_v49 }
  0x63   :  { %1894 = vmatmul.msk.f32.gmra.mxu2 %vm87_vm0, %v58_v50  ;;  %1910 = vmatmul.msk.f32.gmra.mxu3 %vm87_vm0, %v74_v51 }
  0x6a   :  { %1863 = vmatmul.msk.f32.gmra.mxu0 %vm87_vm0, %v27_v52  ;;  %1879 = vmatmul.msk.f32.gmra.mxu1 %vm87_vm0, %v43_v55 }
  0x6b   :  { %1895 = vmatmul.msk.f32.gmra.mxu2 %vm87_vm0, %v59_v53  ;;  %1911 = vmatmul.msk.f32.gmra.mxu3 %vm87_vm0, %v75_v54 }
  0x72   :  { %1864 = vmatmul.msk.f32.gmra.mxu0 %vm87_vm0, %v28_v57  ;;  %1880 = vmatmul.msk.f32.gmra.mxu1 %vm87_vm0, %v44_v58 }
  0x73   :  { %1896 = vmatmul.msk.f32.gmra.mxu2 %vm87_vm0, %v60_v56  ;;  %1912 = vmatmul.msk.f32.gmra.mxu3 %vm87_vm0, %v76_v60 }
  0x7a   :  { %1865 = vmatmul.msk.f32.gmra.mxu0 %vm87_vm0, %v29_v61  ;;  %1881 = vmatmul.msk.f32.gmra.mxu1 %vm87_vm0, %v45_v62 }
  0x7b   :  { %1897 = vmatmul.msk.f32.gmra.mxu2 %vm87_vm0, %v61_v59  ;;  %1913 = vmatmul.msk.f32.gmra.mxu3 %vm87_vm0, %v77_v0 }
  0x82   :  { %1882 = vmatmul.msk.f32.gmra.mxu1 %vm87_vm0, %v46_v4  ;;  %1866 = vmatmul.msk.f32.gmra.mxu0 %vm87_vm0, %v30_v9 }
  0x83   :  { %1898 = vmatmul.msk.f32.gmra.mxu2 %vm87_vm0, %v62_v63  ;;  %1914 = vmatmul.msk.f32.gmra.mxu3 %vm87_vm0, %v78_v10 }
  0x87   :  { %v297_v2 = vpop.f32.mrf.mxu0  ;;  %v345_v3 = vpop.f32.mrf.mxu1 }
  0x88   :  { %v2374_v5 = vadd.f32 %v2367_v1, %v297_v2  ;;  %v2377_v6 = vadd.f32 %v2367_v1, %v345_v3 }
  0x8a   :  { %v505_v7 = vmul.f32 %v2377_v6, %v2377_v6  ;;  %v489_v8 = vmul.f32 %v2374_v5, %v2374_v5 }
  0x8c   :  { %585 = vadd.xlane.f32.xlu1 %v505_v7  ;;  %553 = vadd.xlane.f32.xlu0 %v489_v8 }
  0x8e   :  { %v393_v11 = vpop.f32.mrf.mxu2  ;;  %v441_v12 = vpop.f32.mrf.mxu3 }
  0x8f   :  { %v2393_v13 = vadd.f32 %v2367_v1, %v393_v11  ;;  %v2396_v14 = vadd.f32 %v2367_v1, %v441_v12  ;;  %v300_v15 = vpop.f32.mrf.mxu0  ;;  %v348_v16 = vpop.f32.mrf.mxu1 }
  0x90   :  { %v2403_v19 = vadd.f32 %v2367_v1, %v348_v16  ;;  %v2406_v20 = vadd.f32 %v2367_v1, %v300_v15 }
  0x91   :  { %v521_v17 = vmul.f32 %v2393_v13, %v2393_v13  ;;  %v537_v18 = vmul.f32 %v2396_v14, %v2396_v14 }
  0x92   :  { %v506_v24 = vmul.f32 %v2403_v19, %v2403_v19  ;;  %v490_v26 = vmul.f32 %v2406_v20, %v2406_v20 }
  0x93   :  { %617 = vadd.xlane.f32.xlu2 %v521_v17 }
  0x94   :  { %649 = vadd.xlane.f32.xlu0 %v537_v18 }
  0x96   :  { %v396_v21 = vpop.f32.mrf.mxu2  ;;  %v444_v22 = vpop.f32.mrf.mxu3 }
  0x97   :  { %v2409_v23 = vadd.f32 %v2367_v1, %v444_v22  ;;  %v303_v25 = vpop.f32.mrf.mxu0  ;;  %v351_v29 = vpop.f32.mrf.mxu1  ;;  %v2421_v30 = vadd.f32 %v2367_v1, %v396_v21 }
  0x98   :  { %v2418_v28 = vadd.f32 %v2367_v1, %v303_v25  ;;  %v2433_v38 = vadd.f32 %v2367_v1, %v351_v29 }
  0x99   :  { %v538_v27 = vmul.f32 %v2409_v23, %v2409_v23  ;;  %v522_v37 = vmul.f32 %v2421_v30, %v2421_v30 }
  0x9a   :  { %v491_v34 = vmul.f32 %v2418_v28, %v2418_v28  ;;  %v507_v43 = vmul.f32 %v2433_v38, %v2433_v38 }
  0x9b   :  { %587 = vadd.xlane.f32.xlu2 %v506_v24  ;;  %651 = vadd.xlane.f32.xlu1 %v538_v27 }
  0x9c   :  { %555 = vadd.xlane.f32.xlu0 %v490_v26 }
  0x9e   :  { %v399_v31 = vpop.f32.mrf.mxu2  ;;  %v447_v32 = vpop.f32.mrf.mxu3 }
  0x9f   :  { %v2424_v33 = vadd.f32 %v2367_v1, %v447_v32  ;;  %v306_v35 = vpop.f32.mrf.mxu0  ;;  %v2436_v39 = vadd.f32 %v2367_v1, %v399_v31  ;;  %v354_v41 = vpop.f32.mrf.mxu1 }
  0xa0   :  { %v2454_v50 = vadd.f32 %v2367_v1, %v306_v35  ;;  %v2469_v58 = vadd.f32 %v2367_v1, %v354_v41 }
  0xa1   :  { %v539_v36 = vmul.f32 %v2424_v33, %v2424_v33  ;;  %v523_v46 = vmul.f32 %v2436_v39, %v2436_v39 }
  0xa2   :  { %v492_v54 = vmul.f32 %v2454_v50, %v2454_v50  ;;  %v508_v63 = vmul.f32 %v2469_v58, %v2469_v58 }
  0xa3   :  { %653 = vadd.xlane.f32.xlu2 %v539_v36  ;;  %557 = vadd.xlane.f32.xlu1 %v491_v34 }
  0xa4   :  { %619 = vadd.xlane.f32.xlu0 %v522_v37 }
  0xa6   :  { %v402_v40 = vpop.f32.mrf.mxu2  ;;  %v450_v47 = vpop.f32.mrf.mxu3 }
  0xa7   :  { %v2439_v42 = vadd.f32 %v2367_v1, %v402_v40  ;;  %v309_v44 = vpop.f32.mrf.mxu0  ;;  %v2451_v49 = vadd.f32 %v2367_v1, %v450_v47  ;;  %v357_v53 = vpop.f32.mrf.mxu1 }
  0xa8   :  { %v2448_v48 = vadd.f32 %v2367_v1, %v309_v44  ;;  %v2463_v56 = vadd.f32 %v2367_v1, %v357_v53 }
  0xa9   :  { %v524_v45 = vmul.f32 %v2439_v42, %v2439_v42  ;;  %v540_v52 = vmul.f32 %v2451_v49, %v2451_v49 }
  0xaa   :  { %v493_v51 = vmul.f32 %v2448_v48, %v2448_v48  ;;  %v509_v60 = vmul.f32 %v2463_v56, %v2463_v56 }
  0xab   :  { %623 = vadd.xlane.f32.xlu2 %v524_v45  ;;  %621 = vadd.xlane.f32.xlu1 %v523_v46 }
  0xac   :  { %589 = vadd.xlane.f32.xlu0 %v507_v43 }
  0xae   :  { %v405_v55 = vpop.f32.mrf.mxu2  ;;  %v453_v59 = vpop.f32.mrf.mxu3 }
  0xaf   :  { %v2466_v57 = vadd.f32 %v2367_v1, %v405_v55  ;;  %v312_v62 = vpop.f32.mrf.mxu0  ;;  %v360_v0 = vpop.f32.mrf.mxu1  ;;  %v2481_v3 = vadd.f32 %v2367_v1, %v453_v59 }
  0xb0   :  { %v2478_v2 = vadd.f32 %v2367_v1, %v312_v62  ;;  %v2484_v4 = vadd.f32 %v2367_v1, %v360_v0 }
  0xb1   :  { %v525_v61 = vmul.f32 %v2466_v57, %v2466_v57  ;;  %v541_v9 = vmul.f32 %v2481_v3, %v2481_v3 }
  0xb2   :  { %v494_v8 = vmul.f32 %v2478_v2, %v2478_v2  ;;  %v510_v10 = vmul.f32 %v2484_v4, %v2484_v4 }
  0xb3   :  { %561 = vadd.xlane.f32.xlu2 %v493_v51  ;;  %559 = vadd.xlane.f32.xlu1 %v492_v54 }
  0xb4   :  { %655 = vadd.xlane.f32.xlu0 %v540_v52 }
  0xb6   :  { %v408_v7 = vpop.f32.mrf.mxu2  ;;  %v456_v11 = vpop.f32.mrf.mxu3 }
  0xb7   :  { %v315_v12 = vpop.f32.mrf.mxu0  ;;  %v2493_v15 = vadd.f32 %v2367_v1, %v408_v7  ;;  %v2496_v16 = vadd.f32 %v2367_v1, %v456_v11  ;;  %v363_v18 = vpop.f32.mrf.mxu1 }
  0xb8   :  { %v2499_v17 = vadd.f32 %v2367_v1, %v315_v12  ;;  %v2508_v27 = vadd.f32 %v2367_v1, %v363_v18 }
  0xb9   :  { %v542_v21 = vmul.f32 %v2496_v16, %v2496_v16  ;;  %v526_v22 = vmul.f32 %v2493_v15, %v2493_v15 }
  0xba   :  { %v495_v24 = vmul.f32 %v2499_v17, %v2499_v17  ;;  %v511_v35 = vmul.f32 %v2508_v27, %v2508_v27 }
  0xbb   :  { %593 = vadd.xlane.f32.xlu2 %v509_v60  ;;  %591 = vadd.xlane.f32.xlu1 %v508_v63 }
  0xbc   :  { %625 = vadd.xlane.f32.xlu0 %v525_v61 }
  0xbe   :  { %v411_v25 = vpop.f32.mrf.mxu2  ;;  %v459_v26 = vpop.f32.mrf.mxu3 }
  0xbf   :  { %v2511_v29 = vadd.f32 %v2367_v1, %v411_v25  ;;  %v2514_v31 = vadd.f32 %v2367_v1, %v459_v26  ;;  %v318_v32 = vpop.f32.mrf.mxu0  ;;  %v366_v37 = vpop.f32.mrf.mxu1 }
  0xc0   :  { %v2523_v41 = vadd.f32 %v2367_v1, %v318_v32  ;;  %v2526_v43 = vadd.f32 %v2367_v1, %v366_v37 }
  0xc1   :  { %v527_v34 = vmul.f32 %v2511_v29, %v2511_v29  ;;  %v543_v36 = vmul.f32 %v2514_v31, %v2514_v31 }
  0xc2   :  { %3518 = vst [vmem:[#allocation5_spill] sm:$0xff] %v2523_v41  ;;  %v512_v46 = vmul.f32 %v2526_v43, %v2526_v43  ;;  %v496_v47 = vmul.f32 %v2523_v41, %v2523_v41 }
  0xc3   :  { %563 = vadd.xlane.f32.xlu2 %v494_v8  ;;  %657 = vadd.xlane.f32.xlu1 %v541_v9  ;;  %3519 = vst [vmem:[#allocation6_spill] sm:$0xff] %v2526_v43 }
  0xc4   :  { %595 = vadd.xlane.f32.xlu0 %v510_v10 }
  0xc6   :  { %v414_v40 = vpop.f32.mrf.mxu2  ;;  %v462_v45 = vpop.f32.mrf.mxu3 }
  0xc7   :  { %v2529_v44 = vadd.f32 %v2367_v1, %v414_v40  ;;  %v321_v52 = vpop.f32.mrf.mxu0  ;;  %v369_v53 = vpop.f32.mrf.mxu1  ;;  %v2541_v59 = vadd.f32 %v2367_v1, %v462_v45 }
  0xc8   :  { %v2538_v55 = vadd.f32 %v2367_v1, %v321_v52  ;;  %v2544_v60 = vadd.f32 %v2367_v1, %v369_v53 }
  0xc9   :  { %3520 = vst [vmem:[#allocation7_spill] sm:$0xff] %v2529_v44  ;;  %v528_v51 = vmul.f32 %v2529_v44, %v2529_v44  ;;  %v544_v62 = vmul.f32 %v2541_v59, %v2541_v59 }
  0xca   :  { %3521 = vst [vmem:[#allocation8_spill] sm:$0xff] %v2538_v55  ;;  %v497_v61 = vmul.f32 %v2538_v55, %v2538_v55  ;;  %v513_v63 = vmul.f32 %v2544_v60, %v2544_v60 }
  0xcb   :  { %659 = vadd.xlane.f32.xlu2 %v542_v21  ;;  %627 = vadd.xlane.f32.xlu1 %v526_v22  ;;  %3522 = vst [vmem:[#allocation9_spill] sm:$0xff] %v2541_v59 }
  0xcc   :  { %565 = vadd.xlane.f32.xlu0 %v495_v24  ;;  %3523 = vst [vmem:[#allocation10_spill] sm:$0xff] %v2544_v60 }
  0xce   :  { %v417_v54 = vpop.f32.mrf.mxu2  ;;  %v465_v0 = vpop.f32.mrf.mxu3 }
  0xcf   :  { %v324_v7 = vpop.f32.mrf.mxu0  ;;  %v372_v8 = vpop.f32.mrf.mxu1  ;;  %v2553_v9 = vadd.f32 %v2367_v1, %v417_v54  ;;  %v2556_v10 = vadd.f32 %v2367_v1, %v465_v0 }
  0xd0   :  { %v2559_v12 = vadd.f32 %v2367_v1, %v324_v7  ;;  %v2568_v25 = vadd.f32 %v2367_v1, %v372_v8 }
  0xd1   :  { %3524 = vst [vmem:[#allocation11_spill] sm:$0xff] %v2553_v9  ;;  %v545_v18 = vmul.f32 %v2556_v10, %v2556_v10  ;;  %v529_v21 = vmul.f32 %v2553_v9, %v2553_v9 }
  0xd2   :  { %3525 = vst [vmem:[#allocation12_spill] sm:$0xff] %v2556_v10  ;;  %v498_v22 = vmul.f32 %v2559_v12, %v2559_v12  ;;  %v514_v40 = vmul.f32 %v2568_v25, %v2568_v25 }
  0xd3   :  { %629 = vadd.xlane.f32.xlu2 %v527_v34  ;;  %597 = vadd.xlane.f32.xlu1 %v511_v35  ;;  %3526 = vst [vmem:[#allocation13_spill] sm:$0xff] %v2559_v12 }
  0xd4   :  { %661 = vadd.xlane.f32.xlu0 %v543_v36  ;;  %3527 = vst [vmem:[#allocation14_spill] sm:$0xff] %v2568_v25 }
  0xd6   :  { %v420_v11 = vpop.f32.mrf.mxu2  ;;  %v468_v24 = vpop.f32.mrf.mxu3 }
  0xd7   :  { %v2571_v26 = vadd.f32 %v2367_v1, %v420_v11  ;;  %v327_v32 = vpop.f32.mrf.mxu0  ;;  %v2574_v35 = vadd.f32 %v2367_v1, %v468_v24  ;;  %v375_v36 = vpop.f32.mrf.mxu1 }
  0xd9   :  { %3528 = vst [vmem:[#allocation15_spill] sm:$0xff] %v2571_v26  ;;  %v530_v37 = vmul.f32 %v2571_v26, %v2571_v26  ;;  %v546_v45 = vmul.f32 %v2574_v35, %v2574_v35 }
  0xda   :  { %3529 = vst [vmem:[#allocation16_spill] sm:$0xff] %v2574_v35 }
  0xdb   :  { %599 = vadd.xlane.f32.xlu2 %v512_v46  ;;  %567 = vadd.xlane.f32.xlu1 %v496_v47  ;;  %v2583_v47 = vadd.f32 %v2367_v1, %v327_v32 }
  0xdc   :  { %631 = vadd.xlane.f32.xlu0 %v528_v51  ;;  %v2586_v51 = vadd.f32 %v2367_v1, %v375_v36 }
  0xdd   :  { %3530 = vst [vmem:[#allocation17_spill] sm:$0xff] %v2583_v47 }
  0xde   :  { %v423_v34 = vpop.f32.mrf.mxu2  ;;  %v471_v46 = vpop.f32.mrf.mxu3  ;;  %3531 = vst [vmem:[#allocation18_spill] sm:$0xff] %v2586_v51 }
  0xdf   :  { %v2589_v53 = vadd.f32 %v2367_v1, %v423_v34  ;;  %v378_v54 = vpop.f32.mrf.mxu1  ;;  %v2601_v8 = vadd.f32 %v2367_v1, %v471_v46 }
  0xe0   :  { %v2604_v11 = vadd.f32 %v2367_v1, %v378_v54 }
  0xe1   :  { %3532 = vst [vmem:[#allocation19_spill] sm:$0xff] %v2589_v53  ;;  %v531_v0 = vmul.f32 %v2589_v53, %v2589_v53 }
  0xe2   :  { %3534 = vst [vmem:[#allocation21_spill] sm:$0xff] %v2601_v8  ;;  %v516_v46 = vmul.f32 %v2604_v11, %v2604_v11 }
  0xe3   :  { %569 = vadd.xlane.f32.xlu2 %v497_v61  ;;  %663 = vadd.xlane.f32.xlu1 %v544_v62  ;;  %v330_v61 = vpop.f32.mrf.mxu0  ;;  %v515_v62 = vmul.f32 %v2586_v51, %v2586_v51  ;;  %3535 = vst [vmem:[#allocation22_spill] sm:$0xff] %v2604_v11 }
  0xe4   :  { %601 = vadd.xlane.f32.xlu0 %v513_v63  ;;  %v499_v63 = vmul.f32 %v2583_v47, %v2583_v47  ;;  %v2598_v7 = vadd.f32 %v2367_v1, %v330_v61 }
  0xe6   :  { %v426_v52 = vpop.f32.mrf.mxu2  ;;  %3533 = vst [vmem:[#allocation20_spill] sm:$0xff] %v2598_v7  ;;  %v500_v36 = vmul.f32 %v2598_v7, %v2598_v7 }
  0xe7   :  { %v2619_v54 = vadd.f32 %v2367_v1, %v426_v52 }
  0xe9   :  { %3536 = vst [vmem:[#allocation23_spill] sm:$0xff] %v2619_v54  ;;  %v532_v52 = vmul.f32 %v2619_v54, %v2619_v54 }
  0xeb   :  { %665 = vadd.xlane.f32.xlu2 %v545_v18  ;;  %633 = vadd.xlane.f32.xlu1 %v529_v21  ;;  %v474_v18 = vpop.f32.mrf.mxu3  ;;  %v381_v21 = vpop.f32.mrf.mxu1 }
  0xec   :  { %571 = vadd.xlane.f32.xlu0 %v498_v22  ;;  %v333_v22 = vpop.f32.mrf.mxu0  ;;  %v2622_v61 = vadd.f32 %v2367_v1, %v474_v18 }
  0xee   :  { %v429_v24 = vpop.f32.mrf.mxu2  ;;  %3537 = vst [vmem:[#allocation24_spill] sm:$0xff] %v2622_v61 }
  0xef   :  { %v2634_v18 = vadd.f32 %v2367_v1, %v429_v24 }
  0xf1   :  { %3539 = vst [vmem:[#allocation26_spill] sm:$0xff] %v2634_v18  ;;  %v533_v54 = vmul.f32 %v2634_v18, %v2634_v18 }
  0xf3   :  { %635 = vadd.xlane.f32.xlu2 %v530_v37  ;;  %603 = vadd.xlane.f32.xlu1 %v514_v40  ;;  %v547_v37 = vmul.f32 %v2601_v8, %v2601_v8 }
  0xf4   :  { %667 = vadd.xlane.f32.xlu0 %v546_v45 }
  0xfb   :  { %605 = vadd.xlane.f32.xlu2 %v515_v62  ;;  %573 = vadd.xlane.f32.xlu1 %v499_v63  ;;  %v2625_v62 = vadd.f32 %v2367_v1, %v333_v22  ;;  %v477_v63 = vpop.f32.mrf.mxu3 }
  0xfc   :  { %637 = vadd.xlane.f32.xlu0 %v531_v0  ;;  %v336_v0 = vpop.f32.mrf.mxu0  ;;  %v2644_v53 = vadd.f32 %v2367_v1, %v477_v63 }
  0xfd   :  { %3538 = vst [vmem:[#allocation25_spill] sm:$0xff] %v2625_v62  ;;  %v501_v7 = vmul.f32 %v2625_v62, %v2625_v62 }
  0xfe   :  { %3541 = vst [vmem:[#allocation28_spill] sm:$0xff] %v2644_v53 }
  0xff   :  { %v586_v32 = vpop.xlane.xlu1 %585  ;;  %v554_v34 = vpop.xlane.xlu0 %553 }
 0x100   :  { %v2610_v40 = vmax.f32 %v586_v32, 1e-24  ;;  %v2612_v45 = vmax.f32 %v554_v34, 1e-24  ;;  %v384_v34 = vpop.f32.mrf.mxu1 }
 0x101   :  { %v2649_v24 = vadd.f32 %v2367_v1, %v384_v34 }
 0x102   :  { %1931 = vrsqrt.f32 %v2610_v40  ;;  %vm911_vm1 = vweird.f32 %v2610_v40  ;;  %vm751_vm2 = vweird.f32 %v2612_v45 }
 0x103   :  { %1933 = vrsqrt.f32 %v2612_v45  ;;  %575 = vadd.xlane.f32.xlu2 %v500_v36  ;;  %669 = vadd.xlane.f32.xlu1 %v547_v37  ;;  %v548_v36 = vmul.f32 %v2622_v61, %v2622_v61  ;;  %v432_v37 = vpop.f32.mrf.mxu2  ;;  %3542 = vst [vmem:[#allocation29_spill] sm:$0xff] %v2649_v24 }
 0x104   :  { %607 = vadd.xlane.f32.xlu0 %v516_v46  ;;  %v2654_v62 = vadd.f32 %v2367_v1, %v432_v37  ;;  %v549_v37 = vmul.f32 %v2644_v53, %v2644_v53  ;;  %v339_v12 = vpop.f32.mrf.mxu0 }
 0x105   :  { %v2704_v59 = vadd.f32 %v2367_v1, %v339_v12 }
 0x106   :  { %v618_v32 = vpop.xlane.xlu2 %617  ;;  %3543 = vst [vmem:[#allocation30_spill] sm:$0xff] %v2654_v62 }
 0x107   :  { %v2627_v11 = vmax.f32 %v618_v32, 1e-24  ;;  %v650_v8 = vpop.xlane.xlu0 %649  ;;  %v2641_v32 = vadd.f32 %v2367_v1, %v381_v21  ;;  %v2657_v21 = vadd.f32 %v2367_v1, %v336_v0  ;;  %v1401_v0 = vmul.f32 0.5, %v2610_v40  ;;  %3545 = vst [vmem:[#allocation32_spill] sm:$0xff] %v2704_v59 }
 0x108   :  { %v1932_v46 = vpop.eup %1931  ;;  %v2636_v22 = vmax.f32 %v650_v8, 1e-24  ;;  %v387_v44 = vpop.f32.mrf.mxu1 }
 0x109   :  { %3540 = vst [vmem:[#allocation27_spill] sm:$0xff] %v2641_v32  ;;  %v1934_v61 = vpop.eup %1933  ;;  %v906_v47 = vmul.f32 %v1932_v46, %v2610_v40  ;;  %1935 = vrsqrt.f32 %v2627_v11  ;;  %v517_v51 = vmul.f32 %v2641_v32, %v2641_v32  ;;  %vm912_vm3 = vweird.f32 %v1932_v46 }
 0x10a   :  { %v746_v8 = vmul.f32 %v1934_v61, %v2612_v45  ;;  %1937 = vrsqrt.f32 %v2636_v22  ;;  %3544 = vst [vmem:[#allocation31_spill] sm:$0xff] %v2657_v21  ;;  %vm752_vm4 = vweird.f32 %v1934_v61  ;;  %vm1071_vm5 = vweird.f32 %v2627_v11  ;;  %vm913_vm6 = vmor %vm911_vm1, %vm912_vm3 }
 0x10b   :  { %v907_v63 = vmul.f32 %v1932_v46, %v906_v47  ;;  %671 = vadd.xlane.f32.xlu2 %v548_v36  ;;  %639 = vadd.xlane.f32.xlu1 %v532_v52  ;;  %v1385_v47 = vmul.f32 0.5, %v2612_v45  ;;  %vm1231_vm7 = vweird.f32 %v2636_v22  ;;  %vm753_vm8 = vmor %vm751_vm2, %vm752_vm4  ;;  %v1433_v55 = vmul.f32 0.5, %v2636_v22 }
 0x10c   :  { %v747_v34 = vmul.f32 %v1934_v61, %v746_v8  ;;  %577 = vadd.xlane.f32.xlu0 %v501_v7  ;;  %v2671_v8 = vmul.f32 %v2649_v24, %v2649_v24  ;;  %v2675_v7 = vmul.f32 %v2657_v21, %v2657_v21  ;;  %v2717_v45 = vadd.f32 %v2367_v1, %v387_v44 }
 0x10d   :  { %v908_v35 = vmul.f32 0.5, %v907_v63  ;;  %v2679_v63 = vmul.f32 %v2654_v62, %v2654_v62  ;;  %v1417_v62 = vmul.f32 0.5, %v2627_v11 }
 0x10e   :  { %v748_v36 = vmul.f32 0.5, %v747_v34  ;;  %v588_v52 = vpop.xlane.xlu2 %587  ;;  %v652_v18 = vpop.xlane.xlu1 %651 }
 0x10f   :  { %v2681_v53 = vpop.eup %1935  ;;  %v909_v32 = vsub.f32 1.5, %v908_v35  ;;  %v2683_v25 = vmax.f32 %v588_v52, 1e-24  ;;  %v2685_v34 = vmax.f32 %v652_v18, 1e-24  ;;  %v556_v26 = vpop.xlane.xlu0 %555 }
 0x110   :  { %v2687_v24 = vpop.eup %1937  ;;  %v749_v9 = vsub.f32 1.5, %v748_v36  ;;  %v1066_v21 = vmul.f32 %v2681_v53, %v2627_v11  ;;  %v2696_v18 = vmax.f32 %v556_v26, 1e-24  ;;  %v435_v52 = vpop.f32.mrf.mxu2  ;;  %vm1072_vm9 = vweird.f32 %v2681_v53 }
 0x111   :  { %v910_v10 = vmul.f32 %v1932_v46, %v909_v32  ;;  %v1226_v35 = vmul.f32 %v2687_v24, %v2636_v22  ;;  %1939 = vrsqrt.f32 %v2683_v25  ;;  %v2713_v12 = vadd.f32 %v2367_v1, %v435_v52  ;;  %vm1073_vm12 = vmor %vm1071_vm5, %vm1072_vm9 }
 0x112   :  { %v750_v36 = vmul.f32 %v1934_v61, %v749_v9  ;;  %v1067_v60 = vmul.f32 %v2681_v53, %v1066_v21  ;;  %1941 = vrsqrt.f32 %v2685_v34  ;;  %vm1232_vm10 = vweird.f32 %v2687_v24 }
 0x113   :  { %v914_v32 = vsel %vm913_vm6, %v1932_v46, %v910_v10  ;;  %v1227_v26 = vmul.f32 %v2687_v24, %v1226_v35  ;;  %641 = vadd.xlane.f32.xlu2 %v533_v54  ;;  %609 = vadd.xlane.f32.xlu1 %v517_v51  ;;  %1943 = vrsqrt.f32 %v2696_v18  ;;  %vm921_vm11 = vweird.f32 %v2683_v25  ;;  %vm1233_vm13 = vmor %vm1231_vm7, %vm1232_vm10 }
 0x114   :  { %v1465_v9 = vmul.f32 %v1401_v0, %v914_v32  ;;  %v754_v40 = vsel %vm753_vm8, %v1934_v61, %v750_v36  ;;  %v1068_v21 = vmul.f32 0.5, %v1067_v60  ;;  %673 = vadd.xlane.f32.xlu0 %v549_v37  ;;  %v2722_v60 = vmul.f32 %v2704_v59, %v2704_v59 }
 0x115   :  { %v1449_v10 = vmul.f32 %v1385_v47, %v754_v40  ;;  %v1228_v46 = vmul.f32 0.5, %v1227_v26  ;;  %v1402_v36 = vmul.f32 0.5, %v2683_v25  ;;  %vm1241_vm14 = vweird.f32 %v2685_v34 }
 0x116   :  { %v1529_v35 = vmul.f32 %v1465_v9, %v914_v32  ;;  %v1069_v41 = vsub.f32 1.5, %v1068_v21  ;;  %v654_v51 = vpop.xlane.xlu2 %653  ;;  %v558_v26 = vpop.xlane.xlu1 %557  ;;  %vm761_vm2 = vweird.f32 %v2696_v18 }
 0x117   :  { %v2724_v54 = vpop.eup %1939  ;;  %v1513_v61 = vmul.f32 %v1449_v10, %v754_v40  ;;  %v1229_v37 = vsub.f32 1.5, %v1228_v46  ;;  %v2727_v0 = vmax.f32 %v654_v51, 1e-24 }
 0x118   :  { %v1593_v47 = vsub.f32 1.5, %v1529_v35  ;;  %v1070_v44 = vmul.f32 %v2681_v53, %v1069_v41  ;;  %v916_v52 = vmul.f32 %v2724_v54, %v2683_v25  ;;  %v2734_v9 = vpop.eup %1941  ;;  %v2742_v41 = vmul.f32 0.5, %v2685_v34 }
 0x119   :  { %v1577_v21 = vsub.f32 1.5, %v1513_v61  ;;  %v1230_v10 = vmul.f32 %v2687_v24, %v1229_v37  ;;  %1945 = vrsqrt.f32 %v2727_v0  ;;  %v1236_v11 = vmul.f32 %v2734_v9, %v2685_v34  ;;  %v2754_v61 = vpop.eup %1943 }
 0x11a   :  { %v1657_v46 = vmul.f32 %v1593_v47, %v914_v32  ;;  %v1074_v35 = vsel %vm1073_vm12, %v2681_v53, %v1070_v44  ;;  %v917_v51 = vmul.f32 %v2724_v54, %v916_v52  ;;  %v2757_v47 = vmax.f32 %v558_v26, 1e-24 }
 0x11b   :  { %v1641_v37 = vmul.f32 %v1577_v21, %v754_v40  ;;  %v1481_v59 = vmul.f32 %v1417_v62, %v1074_v35  ;;  %v1234_v32 = vsel %vm1233_vm13, %v2687_v24, %v1230_v10  ;;  %611 = vadd.xlane.f32.xlu2 %v2671_v8  ;;  %579 = vadd.xlane.f32.xlu1 %v2675_v7  ;;  %vm922_vm15 = vweird.f32 %v2724_v54 }
 0x11c   :  { %v1721_v53 = vmul.f32 %v1657_v46, %v2377_v6  ;;  %v1497_v22 = vmul.f32 %v1433_v55, %v1234_v32  ;;  %v918_v44 = vmul.f32 0.5, %v917_v51  ;;  %v1237_v52 = vmul.f32 %v2734_v9, %v1236_v11  ;;  %643 = vadd.xlane.f32.xlu0 %v2679_v63  ;;  %v620_v55 = vpop.xlane.xlu0 %619  ;;  %vm923_vm1 = vmor %vm921_vm11, %vm922_vm15 }
 0x11d   :  { %v1705_v43 = vmul.f32 %v1641_v37, %v2374_v5  ;;  %v1545_v40 = vmul.f32 %v1481_v59, %v1074_v35  ;;  %v756_v62 = vmul.f32 %v2754_v61, %v2696_v18  ;;  %v535_v24 = vmul.f32 %v2713_v12, %v2713_v12 }
 0x11e   :  { %1785 = vst [vmem:[#allocation2 + $0x80] sm:$0xff] %v1721_v53  ;;  %v1561_v8 = vmul.f32 %v1497_v22, %v1234_v32  ;;  %v919_v7 = vsub.f32 1.5, %v918_v44  ;;  %v1238_v6 = vmul.f32 0.5, %v1237_v52  ;;  %vm1242_vm0 = vweird.f32 %v2734_v9 }
 0x11f   :  { %v1946_v26 = vpop.eup %1945  ;;  %1769 = vst [vmem:[#allocation2] sm:$0xff] %v1705_v43  ;;  %v1609_v21 = vsub.f32 1.5, %v1545_v40  ;;  %v757_v5 = vmul.f32 %v2754_v61, %v756_v62  ;;  %1947 = vrsqrt.f32 %v2757_v47  ;;  %vm762_vm3 = vweird.f32 %v2754_v61  ;;  %v624_v43 = vpop.xlane.xlu2 %623  ;;  %vm1243_vm4 = vmor %vm1241_vm14, %vm1242_vm0 }
 0x120   :  { %v1625_v59 = vsub.f32 1.5, %v1561_v8  ;;  %v920_v63 = vmul.f32 %v2724_v54, %v919_v7  ;;  %v1239_v10 = vsub.f32 1.5, %v1238_v6  ;;  %v1246_v46 = vmul.f32 %v1946_v26, %v2727_v0  ;;  %vm763_vm5 = vmor %vm761_vm2, %vm762_vm3 }
 0x121   :  { %v1673_v51 = vmul.f32 %v1609_v21, %v1074_v35  ;;  %v758_v11 = vmul.f32 0.5, %v757_v5  ;;  %v2786_v35 = vmax.f32 %v620_v55, 1e-24  ;;  %v2791_v8 = vmax.f32 %v624_v43, 1e-24  ;;  %v622_v21 = vpop.xlane.xlu1 %621 }
 0x122   :  { %v1689_v37 = vmul.f32 %v1625_v59, %v1234_v32  ;;  %v924_v53 = vsel %vm923_vm1, %v2724_v54, %v920_v63  ;;  %v1240_v22 = vmul.f32 %v2734_v9, %v1239_v10  ;;  %v1247_v44 = vmul.f32 %v1946_v26, %v1246_v46 }
 0x123   :  { %v1737_v52 = vmul.f32 %v1673_v51, %v2393_v13  ;;  %v1466_v40 = vmul.f32 %v1402_v36, %v924_v53  ;;  %v759_v25 = vsub.f32 1.5, %v758_v11  ;;  %581 = vadd.xlane.f32.xlu2 %v2722_v60  ;;  %645 = vadd.xlane.f32.xlu1 %v535_v24  ;;  %1949 = vrsqrt.f32 %v2786_v35  ;;  %v480_v24 = vpop.f32.mrf.mxu3 }
 0x124   :  { %v1753_v32 = vmul.f32 %v1689_v37, %v2396_v14  ;;  %v1244_v54 = vsel %vm1243_vm4, %v2734_v9, %v1240_v22  ;;  %v1248_v62 = vmul.f32 0.5, %v1247_v44  ;;  %v1386_v14 = vmul.f32 0.5, %v2696_v18  ;;  %v590_v10 = vpop.xlane.xlu0 %589 }
 0x125   :  { %v1948_v13 = vpop.eup %1947  ;;  %1801 = vst [vmem:[#allocation2 + $0x100] sm:$0xff] %v1737_v52  ;;  %v1530_v36 = vmul.f32 %v1466_v40, %v924_v53  ;;  %v1498_v7 = vmul.f32 %v2742_v41, %v1244_v54  ;;  %v760_v34 = vmul.f32 %v2754_v61, %v759_v25  ;;  %vm1252_vm6 = vweird.f32 %v1946_v26 }
 0x126   :  { %1817 = vst [vmem:[#allocation2 + $0x180] sm:$0xff] %v1753_v32  ;;  %v1249_v60 = vsub.f32 1.5, %v1248_v62  ;;  %v766_v9 = vmul.f32 %v1948_v13, %v2757_v47  ;;  %vm1251_vm7 = vweird.f32 %v2727_v0  ;;  %1951 = vrsqrt.f32 %v2791_v8 }
 0x127   :  { %v1594_v6 = vsub.f32 1.5, %v1530_v36  ;;  %v1562_v55 = vmul.f32 %v1498_v7, %v1244_v54  ;;  %v764_v41 = vsel %vm763_vm5, %v2754_v61, %v760_v34  ;;  %vm1253_vm8 = vmor %vm1251_vm7, %vm1252_vm6  ;;  %v1435_v51 = vmul.f32 0.5, %v2727_v0 }
 0x128   :  { %v1450_v5 = vmul.f32 %v1386_v14, %v764_v41  ;;  %v1250_v59 = vmul.f32 %v1946_v26, %v1249_v60  ;;  %v767_v63 = vmul.f32 %v1948_v13, %v766_v9  ;;  %v2808_v11 = vadd.f32 %v2367_v1, %v480_v24 }
 0x129   :  { %v1658_v46 = vmul.f32 %v1594_v6, %v924_v53  ;;  %v1626_v18 = vsub.f32 1.5, %v1562_v55  ;;  %v2810_v22 = vmax.f32 %v622_v21, 1e-24  ;;  %v1950_v44 = vpop.eup %1949  ;;  %v2813_v32 = vmax.f32 %v590_v10, 1e-24 }
 0x12a   :  { %v1514_v43 = vmul.f32 %v1450_v5, %v764_v41  ;;  %v1254_v61 = vsel %vm1253_vm8, %v1946_v26, %v1250_v59  ;;  %v768_v37 = vmul.f32 0.5, %v767_v63  ;;  %vm772_vm9 = vweird.f32 %v1948_v13  ;;  %v560_v59 = vpop.xlane.xlu1 %559 }
 0x12b   :  { %v1722_v52 = vmul.f32 %v1658_v46, %v2403_v19  ;;  %v1690_v40 = vmul.f32 %v1626_v18, %v1244_v54  ;;  %v1499_v25 = vmul.f32 %v1435_v51, %v1254_v61  ;;  %v1076_v0 = vmul.f32 %v1950_v44, %v2786_v35 }
 0x12c   :  { %v1578_v53 = vsub.f32 1.5, %v1514_v43  ;;  %v769_v62 = vsub.f32 1.5, %v768_v37  ;;  %vm771_vm10 = vweird.f32 %v2757_v47  ;;  %1953 = vrsqrt.f32 %v2810_v22  ;;  %v2819_v26 = vpop.eup %1951 }
 0x12d   :  { %1786 = vst [vmem:[#allocation2 + $0x88] sm:$0xff] %v1722_v52  ;;  %v1754_v36 = vmul.f32 %v1690_v40, %v2409_v23  ;;  %v1563_v7 = vmul.f32 %v1499_v25, %v1254_v61  ;;  %v1387_v34 = vmul.f32 0.5, %v2757_v47  ;;  %v1077_v14 = vmul.f32 %v1950_v44, %v1076_v0  ;;  %vm773_vm11 = vmor %vm771_vm10, %vm772_vm9  ;;  %v438_v40 = vpop.f32.mrf.mxu2 }
 0x12e   :  { %v1642_v19 = vmul.f32 %v1578_v53, %v764_v41  ;;  %v770_v54 = vmul.f32 %v1948_v13, %v769_v62  ;;  %vm1081_vm12 = vweird.f32 %v2786_v35  ;;  %v1096_v23 = vmul.f32 %v2819_v26, %v2791_v8  ;;  %v562_v41 = vpop.xlane.xlu2 %561 }
 0x12f   :  { %1818 = vst [vmem:[#allocation2 + $0x188] sm:$0xff] %v1754_v36  ;;  %v1627_v60 = vsub.f32 1.5, %v1563_v7  ;;  %1955 = vrsqrt.f32 %v2813_v32  ;;  %v1078_v6 = vmul.f32 0.5, %v1077_v14  ;;  %v1418_v55 = vmul.f32 0.5, %v2786_v35 }
 0x130   :  { %v1706_v9 = vmul.f32 %v1642_v19, %v2406_v20  ;;  %v774_v24 = vsel %vm773_vm11, %v1948_v13, %v770_v54  ;;  %v1097_v5 = vmul.f32 %v2819_v26, %v1096_v23  ;;  %vm1101_vm13 = vweird.f32 %v2791_v8  ;;  %v390_v19 = vpop.f32.mrf.mxu1 }
 0x131   :  { %v1691_v21 = vmul.f32 %v1627_v60, %v1254_v61  ;;  %v1451_v47 = vmul.f32 %v1387_v34, %v774_v24  ;;  %v1079_v63 = vsub.f32 1.5, %v1078_v6  ;;  %vm1082_vm14 = vweird.f32 %v1950_v44 }
 0x132   :  { %1770 = vst [vmem:[#allocation2 + $0x8] sm:$0xff] %v1706_v9  ;;  %v1420_v10 = vmul.f32 0.5, %v2791_v8  ;;  %v519_v20 = vmul.f32 %v2717_v45, %v2717_v45  ;;  %v2833_v13 = vpop.eup %1953  ;;  %v1098_v51 = vmul.f32 0.5, %v1097_v5  ;;  %v2836_v43 = vmax.f32 %v562_v41, 1e-24  ;;  %vm1083_vm0 = vmor %vm1081_vm12, %vm1082_vm14  ;;  %v656_v9 = vpop.xlane.xlu0 %655 }
 0x133   :  { %v1755_v46 = vmul.f32 %v1691_v21, %v2424_v33  ;;  %v1515_v18 = vmul.f32 %v1451_v47, %v774_v24  ;;  %v1080_v61 = vmul.f32 %v1950_v44, %v1079_v63  ;;  %v1086_v37 = vmul.f32 %v2833_v13, %v2810_v22  ;;  %v342_v5 = vpop.f32.mrf.mxu0 }
 0x134   :  { %vm1091_vm15 = vweird.f32 %v2810_v22  ;;  %v1419_v52 = vmul.f32 0.5, %v2810_v22  ;;  %613 = vadd.xlane.f32.xlu0 %v519_v20  ;;  %v2842_v25 = vmax.f32 %v560_v59, 1e-24  ;;  %v1099_v33 = vsub.f32 1.5, %v1098_v51  ;;  %v483_v20 = vpop.f32.mrf.mxu3 }
 0x135   :  { %v1956_v53 = vpop.eup %1955  ;;  %1819 = vst [vmem:[#allocation2 + $0x190] sm:$0xff] %v1755_v46  ;;  %v1579_v62 = vsub.f32 1.5, %v1515_v18  ;;  %vm1102_vm1 = vweird.f32 %v2819_v26  ;;  %1957 = vrsqrt.f32 %v2836_v43  ;;  %v1084_v0 = vsel %vm1083_vm0, %v1950_v44, %v1080_v61 }
 0x136   :  { %v1087_v36 = vmul.f32 %v2833_v13, %v1086_v37  ;;  %v926_v7 = vmul.f32 %v1956_v53, %v2813_v32  ;;  %vm931_vm2 = vweird.f32 %v2813_v32  ;;  %v1482_v34 = vmul.f32 %v1418_v55, %v1084_v0  ;;  %vm1103_vm3 = vmor %vm1101_vm13, %vm1102_vm1 }
 0x137   :  { %v1643_v54 = vmul.f32 %v1579_v62, %v774_v24  ;;  %v1100_v14 = vmul.f32 %v2819_v26, %v1099_v33  ;;  %v2854_v35 = vadd.f32 %v2367_v1, %v438_v40  ;;  %v1403_v44 = vmul.f32 0.5, %v2813_v32 }
 0x138   :  { %v1088_v60 = vmul.f32 0.5, %v1087_v36  ;;  %v927_v23 = vmul.f32 %v1956_v53, %v926_v7  ;;  %1959 = vrsqrt.f32 %v2842_v25  ;;  %v1546_v41 = vmul.f32 %v1482_v34, %v1084_v0 }
 0x139   :  { %v1707_v6 = vmul.f32 %v1643_v54, %v2418_v28  ;;  %v1104_v24 = vsel %vm1103_vm3, %v2819_v26, %v1100_v14  ;;  %v2863_v55 = vadd.f32 %v2367_v1, %v390_v19  ;;  %vm1092_vm4 = vweird.f32 %v2833_v13  ;;  %v594_v54 = vpop.xlane.xlu2 %593 }
 0x13a   :  { %v1484_v21 = vmul.f32 %v1420_v10, %v1104_v24  ;;  %v1089_v47 = vsub.f32 1.5, %v1088_v60  ;;  %v928_v8 = vmul.f32 0.5, %v927_v23  ;;  %v1610_v63 = vsub.f32 1.5, %v1546_v41  ;;  %vm1093_vm6 = vmor %vm1091_vm15, %vm1092_vm4  ;;  %v592_v23 = vpop.xlane.xlu1 %591 }
 0x13b   :  { %v1958_v59 = vpop.eup %1957  ;;  %1771 = vst [vmem:[#allocation2 + $0x10] sm:$0xff] %v1707_v6  ;;  %vm932_vm5 = vweird.f32 %v1956_v53  ;;  %v2866_v46 = vmax.f32 %v656_v9, 1e-24  ;;  %v536_v28 = vmul.f32 %v2854_v35, %v2854_v35  ;;  %vm791_vm7 = vweird.f32 %v2836_v43 }
 0x13c   :  { %v1548_v26 = vmul.f32 %v1484_v21, %v1104_v24  ;;  %v1090_v18 = vmul.f32 %v2833_v13, %v1089_v47  ;;  %v929_v51 = vsub.f32 1.5, %v928_v8  ;;  %v786_v10 = vmul.f32 %v1958_v59, %v2836_v43  ;;  %vm933_vm8 = vmor %vm931_vm2, %vm932_vm5 }
 0x13d   :  { %v1674_v61 = vmul.f32 %v1610_v63, %v1084_v0  ;;  %v2878_v37 = vadd.f32 %v2367_v1, %v342_v5  ;;  %1961 = vrsqrt.f32 %v2866_v46  ;;  %647 = vadd.xlane.f32.xlu2 %v536_v28  ;;  %v1389_v22 = vmul.f32 0.5, %v2836_v43 }
 0x13e   :  { %v1960_v40 = vpop.eup %1959  ;;  %v1612_v62 = vsub.f32 1.5, %v1548_v26  ;;  %v1094_v33 = vsel %vm1093_vm6, %v2833_v13, %v1090_v18  ;;  %v930_v36 = vmul.f32 %v1956_v53, %v929_v51  ;;  %v787_v7 = vmul.f32 %v1958_v59, %v786_v10  ;;  %v486_v18 = vpop.f32.mrf.mxu3 }
 0x13f   :  { %v1738_v0 = vmul.f32 %v1674_v61, %v2421_v30  ;;  %v1483_v19 = vmul.f32 %v1419_v52, %v1094_v33  ;;  %v776_v1 = vmul.f32 %v1960_v40, %v2842_v25  ;;  %vm792_vm9 = vweird.f32 %v1958_v59  ;;  %v626_v51 = vpop.xlane.xlu0 %625  ;;  %v2059_v61 = vld [vmem:[%s3488_s2] ss:$0 sm:$0xff]  ;;  %s2086_s2 = smov [#allocation2]  }
 0x140   :  { %v1676_v34 = vmul.f32 %v1612_v62, %v1104_v24  ;;  %v934_v14 = vsel %vm933_vm8, %v1956_v53, %v930_v36  ;;  %v788_v60 = vmul.f32 0.5, %v787_v7  ;;  %v520_v30 = vmul.f32 %v2863_v55, %v2863_v55  ;;  %vm793_vm11 = vmor %vm791_vm7, %vm792_vm9  ;;  %s1837_s11 = sshll.u32 %s2086_s2, 4  ;;  %s1838_s11 = int_to_ptr.vmem [resolvable:$true] %s1837_s11 }
 0x141   :  { %1802 = vst [vmem:[#allocation2 + $0x108] sm:$0xff] %v1738_v0  ;;  %v1547_v13 = vmul.f32 %v1483_v19, %v1094_v33  ;;  %v1467_v9 = vmul.f32 %v1403_v44, %v934_v14  ;;  %v777_v6 = vmul.f32 %v1960_v40, %v776_v1  ;;  %v504_v41 = vmul.f32 %v2878_v37, %v2878_v37 }
 0x142   :  { %v1740_v32 = vmul.f32 %v1676_v34, %v2439_v42  ;;  %v789_v52 = vsub.f32 1.5, %v788_v60  ;;  %v2893_v21 = vmax.f32 %v594_v54, 1e-24  ;;  %615 = vadd.xlane.f32.xlu1 %v520_v30  ;;  %v2897_v5 = vmax.f32 %v592_v23, 1e-24 }
 0x143   :  { %v2895_v24 = vpop.eup %1961  ;;  %v1611_v53 = vsub.f32 1.5, %v1547_v13  ;;  %v1531_v47 = vmul.f32 %v1467_v9, %v934_v14  ;;  %v778_v8 = vmul.f32 0.5, %v777_v6  ;;  %vm781_vm10 = vweird.f32 %v2842_v25  ;;  %583 = vadd.xlane.f32.xlu0 %v504_v41 }
 0x144   :  { %1804 = vst [vmem:[#allocation2 + $0x118] sm:$0xff] %v1740_v32  ;;  %v790_v44 = vmul.f32 %v1958_v59, %v789_v52  ;;  %v1256_v42 = vmul.f32 %v2895_v24, %v2866_v46  ;;  %1963 = vrsqrt.f32 %v2893_v21  ;;  %vm782_vm12 = vweird.f32 %v1960_v40  ;;  %v658_v52 = vpop.xlane.xlu1 %657 }
 0x145   :  { %v1675_v63 = vmul.f32 %v1611_v53, %v1094_v33  ;;  %v1595_v28 = vsub.f32 1.5, %v1531_v47  ;;  %v779_v26 = vsub.f32 1.5, %v778_v8  ;;  %v2909_v62 = vadd.f32 %v2059_v61, %v483_v20  ;;  %vm783_vm13 = vmor %vm781_vm10, %vm782_vm12 }
 0x146   :  { %v794_v10 = vsel %vm793_vm11, %v1958_v59, %v790_v44  ;;  %v1257_v36 = vmul.f32 %v2895_v24, %v1256_v42  ;;  %1965 = vrsqrt.f32 %v2897_v5  ;;  %v1388_v59 = vmul.f32 0.5, %v2842_v25 }
 0x147   :  { %v1739_v33 = vmul.f32 %v1675_v63, %v2436_v39  ;;  %v1659_v7 = vmul.f32 %v1595_v28, %v934_v14  ;;  %v1453_v43 = vmul.f32 %v1389_v22, %v794_v10  ;;  %v780_v0 = vmul.f32 %v1960_v40, %v779_v26  ;;  %v564_v39 = vpop.xlane.xlu2 %563 }
 0x148   :  { %v1258_v19 = vmul.f32 0.5, %v1257_v36  ;;  %vm1262_vm14 = vweird.f32 %v2895_v24  ;;  %v2918_v1 = vadd.f32 %v2059_v61, %v486_v18  ;;  %v2921_v60 = vmax.f32 %v626_v51, 1e-24  ;;  %v596_v51 = vpop.xlane.xlu0 %595 }
 0x149   :  { %1803 = vst [vmem:[#allocation2 + $0x110] sm:$0xff] %v1739_v33  ;;  %v1723_v20 = vmul.f32 %v1659_v7, %v2433_v38  ;;  %v1517_v54 = vmul.f32 %v1453_v43, %v794_v10  ;;  %v784_v34 = vsel %vm783_vm13, %v1960_v40, %v780_v0  ;;  %v551_v13 = vmul.f32 %v2909_v62, %v2909_v62 }
 0x14a   :  { %v1964_v22 = vpop.eup %1963  ;;  %v1452_v14 = vmul.f32 %v1388_v59, %v784_v34  ;;  %v1259_v23 = vsub.f32 1.5, %v1258_v19  ;;  %v550_v25 = vmul.f32 %v2808_v11, %v2808_v11  ;;  %1967 = vrsqrt.f32 %v2921_v60 }
 0x14b   :  { %1787 = vst [vmem:[#allocation2 + $0x90] sm:$0xff] %v1723_v20  ;;  %v1581_v9 = vsub.f32 1.5, %v1517_v54  ;;  %v946_v6 = vmul.f32 %v1964_v22, %v2893_v21  ;;  %vm1261_vm15 = vweird.f32 %v2866_v46  ;;  %v1436_v32 = vmul.f32 0.5, %v2866_v46  ;;  %677 = vadd.xlane.f32.xlu2 %v551_v13 }
 0x14c   :  { %v1966_v38 = vpop.eup %1965  ;;  %v1516_v40 = vmul.f32 %v1452_v14, %v784_v34  ;;  %v1260_v30 = vmul.f32 %v2895_v24, %v1259_v23  ;;  %675 = vadd.xlane.f32.xlu1 %v550_v25  ;;  %vm1263_vm0 = vmor %vm1261_vm15, %vm1262_vm14  ;;  %vm951_vm1 = vweird.f32 %v2893_v21  ;;  %v552_v42 = vmul.f32 %v2918_v1, %v2918_v1 }
 0x14d   :  { %v1645_v41 = vmul.f32 %v1581_v9, %v794_v10  ;;  %v947_v53 = vmul.f32 %v1964_v22, %v946_v6  ;;  %v936_v47 = vmul.f32 %v1966_v38, %v2897_v5  ;;  %v2939_v63 = vmax.f32 %v564_v39, 1e-24 }
 0x14e   :  { %v1580_v8 = vsub.f32 1.5, %v1516_v40  ;;  %v1264_v44 = vsel %vm1263_vm0, %v2895_v24, %v1260_v30  ;;  %vm952_vm2 = vweird.f32 %v1964_v22  ;;  %v1405_v61 = vmul.f32 0.5, %v2893_v21  ;;  %679 = vadd.xlane.f32.xlu0 %v552_v42  ;;  %v628_v30 = vpop.xlane.xlu1 %627 }
 0x14f   :  { %v1709_v46 = vmul.f32 %v1645_v41, %v2448_v48  ;;  %v1500_v28 = vmul.f32 %v1436_v32, %v1264_v44  ;;  %v948_v26 = vmul.f32 0.5, %v947_v53  ;;  %v937_v18 = vmul.f32 %v1966_v38, %v936_v47  ;;  %vm953_vm4 = vmor %vm951_vm1, %vm952_vm2 }
 0x150   :  { %v1644_v10 = vmul.f32 %v1580_v8, %v784_v34  ;;  %1969 = vrsqrt.f32 %v2939_v63  ;;  %v1968_v36 = vpop.eup %1967  ;;  %v2944_v43 = vmax.f32 %v658_v52, 1e-24  ;;  %vm942_vm3 = vweird.f32 %v1966_v38  ;;  %v660_v34 = vpop.xlane.xlu2 %659 }
 0x151   :  { %1773 = vst [vmem:[#allocation2 + $0x20] sm:$0xff] %v1709_v46  ;;  %v1564_v24 = vmul.f32 %v1500_v28, %v1264_v44  ;;  %v949_v33 = vsub.f32 1.5, %v948_v26  ;;  %v938_v7 = vmul.f32 0.5, %v937_v18  ;;  %v1106_v0 = vmul.f32 %v1968_v36, %v2921_v60 }
 0x152   :  { %v1708_v48 = vmul.f32 %v1644_v10, %v2454_v50  ;;  %v2948_v59 = vmax.f32 %v596_v51, 1e-24  ;;  %1971 = vrsqrt.f32 %v2944_v43  ;;  %vm941_vm5 = vweird.f32 %v2897_v5 }
 0x153   :  { %v1628_v19 = vsub.f32 1.5, %v1564_v24  ;;  %v950_v20 = vmul.f32 %v1964_v22, %v949_v33  ;;  %v939_v54 = vsub.f32 1.5, %v938_v7  ;;  %v1404_v50 = vmul.f32 0.5, %v2897_v5  ;;  %vm943_vm7 = vmor %vm941_vm5, %vm942_vm3 }
 0x154   :  { %1772 = vst [vmem:[#allocation2 + $0x18] sm:$0xff] %v1708_v48  ;;  %v1107_v39 = vmul.f32 %v1968_v36, %v1106_v0  ;;  %1973 = vrsqrt.f32 %v2948_v59  ;;  %vm1111_vm6 = vweird.f32 %v2921_v60  ;;  %v1421_v21 = vmul.f32 0.5, %v2921_v60 }
 0x155   :  { %v1692_v14 = vmul.f32 %v1628_v19, %v1264_v44  ;;  %v954_v23 = vsel %vm953_vm4, %v1964_v22, %v950_v20  ;;  %v940_v13 = vmul.f32 %v1966_v38, %v939_v54  ;;  %v2960_v40 = vmax.f32 %v660_v34, 1e-24  ;;  %v566_v20 = vpop.xlane.xlu0 %565 }
 0x156   :  { %v1970_v25 = vpop.eup %1969  ;;  %v1469_v9 = vmul.f32 %v1405_v61, %v954_v23  ;;  %v1108_v6 = vmul.f32 0.5, %v1107_v39  ;;  %vm1112_vm8 = vweird.f32 %v1968_v36  ;;  %vm801_vm9 = vweird.f32 %v2939_v63 }
 0x157   :  { %v1756_v5 = vmul.f32 %v1692_v14, %v2451_v49  ;;  %v944_v32 = vsel %vm943_vm7, %v1966_v38, %v940_v13  ;;  %v796_v52 = vmul.f32 %v1970_v25, %v2939_v63  ;;  %1975 = vrsqrt.f32 %v2960_v40  ;;  %vm1113_vm11 = vmor %vm1111_vm6, %vm1112_vm8 }
 0x158   :  { %v1533_v22 = vmul.f32 %v1469_v9, %v954_v23  ;;  %v1468_v41 = vmul.f32 %v1404_v50, %v944_v32  ;;  %v1109_v53 = vsub.f32 1.5, %v1108_v6  ;;  %v1972_v47 = vpop.eup %1971  ;;  %v1390_v44 = vmul.f32 0.5, %v2939_v63 }
 0x159   :  { %1820 = vst [vmem:[#allocation2 + $0x198] sm:$0xff] %v1756_v5  ;;  %v797_v8 = vmul.f32 %v1970_v25, %v796_v52  ;;  %v1437_v42 = vmul.f32 0.5, %v2944_v43  ;;  %v2968_v46 = vmax.f32 %v628_v30, 1e-24  ;;  %v1266_v18 = vmul.f32 %v1972_v47, %v2944_v43 }
 0x15a   :  { %v1974_v49 = vpop.eup %1973  ;;  %v1597_v38 = vsub.f32 1.5, %v1533_v22  ;;  %v1532_v28 = vmul.f32 %v1468_v41, %v944_v32  ;;  %v1110_v26 = vmul.f32 %v1968_v36, %v1109_v53  ;;  %vm1271_vm10 = vweird.f32 %v2944_v43 }
 0x15b   :  { %v798_v51 = vmul.f32 0.5, %v797_v8  ;;  %vm802_vm12 = vweird.f32 %v1970_v25  ;;  %v956_v10 = vmul.f32 %v1974_v49, %v2948_v59  ;;  %vm961_vm13 = vweird.f32 %v2948_v59 }
 0x15c   :  { %v1661_v61 = vmul.f32 %v1597_v38, %v954_v23  ;;  %v1596_v24 = vsub.f32 1.5, %v1532_v28  ;;  %v1114_v33 = vsel %vm1113_vm11, %v1968_v36, %v1110_v26  ;;  %v1267_v7 = vmul.f32 %v1972_v47, %v1266_v18  ;;  %v630_v36 = vpop.xlane.xlu2 %629  ;;  %vm803_vm14 = vmor %vm801_vm9, %vm802_vm12  ;;  %v598_v26 = vpop.xlane.xlu1 %597 }
 0x15d   :  { %v1485_v48 = vmul.f32 %v1421_v21, %v1114_v33  ;;  %v799_v0 = vsub.f32 1.5, %v798_v51  ;;  %v957_v19 = vmul.f32 %v1974_v49, %v956_v10  ;;  %1977 = vrsqrt.f32 %v2968_v46  ;;  %v1976_v54 = vpop.eup %1975 }
 0x15e   :  { %v1725_v60 = vmul.f32 %v1661_v61, %v2463_v56  ;;  %v1660_v34 = vmul.f32 %v1596_v24, %v944_v32  ;;  %v1268_v50 = vmul.f32 0.5, %v1267_v7  ;;  %v1406_v39 = vmul.f32 0.5, %v2948_v59 }
 0x15f   :  { %v1549_v14 = vmul.f32 %v1485_v48, %v1114_v33  ;;  %v800_v13 = vmul.f32 %v1970_v25, %v799_v0  ;;  %v958_v9 = vmul.f32 0.5, %v957_v19  ;;  %v1276_v23 = vmul.f32 %v1976_v54, %v2960_v40  ;;  %v662_v0 = vpop.xlane.xlu0 %661 }
 0x160   :  { %1789 = vst [vmem:[#allocation2 + $0xa0] sm:$0xff] %v1725_v60  ;;  %v1724_v6 = vmul.f32 %v1660_v34, %v2469_v58  ;;  %v1269_v21 = vsub.f32 1.5, %v1268_v50  ;;  %vm1272_vm15 = vweird.f32 %v1972_v47  ;;  %vm962_vm0 = vweird.f32 %v1974_v49 }
 0x161   :  { %v1613_v56 = vsub.f32 1.5, %v1549_v14  ;;  %v804_v30 = vsel %vm803_vm14, %v1970_v25, %v800_v13  ;;  %v959_v5 = vsub.f32 1.5, %v958_v9  ;;  %v1277_v32 = vmul.f32 %v1976_v54, %v1276_v23  ;;  %vm1273_vm2 = vmor %vm1271_vm10, %vm1272_vm15 }
 0x162   :  { %1788 = vst [vmem:[#allocation2 + $0x98] sm:$0xff] %v1724_v6  ;;  %v1454_v52 = vmul.f32 %v1390_v44, %v804_v30  ;;  %v1270_v22 = vmul.f32 %v1972_v47, %v1269_v21  ;;  %vm1281_vm1 = vweird.f32 %v2960_v40  ;;  %v2986_v41 = vmax.f32 %v566_v20, 1e-24  ;;  %vm963_vm4 = vmor %vm961_vm13, %vm962_vm0 }
 0x163   :  { %v1978_v53 = vpop.eup %1977  ;;  %v1677_v58 = vmul.f32 %v1613_v56, %v1114_v33  ;;  %v960_v63 = vmul.f32 %v1974_v49, %v959_v5  ;;  %v1278_v8 = vmul.f32 0.5, %v1277_v32  ;;  %vm1282_vm3 = vweird.f32 %v1976_v54 }
 0x164   :  { %v1518_v38 = vmul.f32 %v1454_v52, %v804_v30  ;;  %v1274_v28 = vsel %vm1273_vm2, %v1972_v47, %v1270_v22  ;;  %v1116_v25 = vmul.f32 %v1978_v53, %v2968_v46  ;;  %v2994_v44 = vmax.f32 %v630_v36, 1e-24  ;;  %vm1283_vm5 = vmor %vm1281_vm1, %vm1282_vm3  ;;  %v600_v60 = vpop.xlane.xlu2 %599 }
 0x165   :  { %v1741_v18 = vmul.f32 %v1677_v58, %v2466_v57  ;;  %v1501_v51 = vmul.f32 %v1437_v42, %v1274_v28  ;;  %v964_v10 = vsel %vm963_vm4, %v1974_v49, %v960_v63  ;;  %v1279_v43 = vsub.f32 1.5, %v1278_v8 }
 0x166   :  { %v1582_v61 = vsub.f32 1.5, %v1518_v38  ;;  %v1470_v24 = vmul.f32 %v1406_v39, %v964_v10  ;;  %v1117_v33 = vmul.f32 %v1978_v53, %v1116_v25  ;;  %1979 = vrsqrt.f32 %v2986_v41 }
 0x167   :  { %1805 = vst [vmem:[#allocation2 + $0x120] sm:$0xff] %v1741_v18  ;;  %v1565_v47 = vmul.f32 %v1501_v51, %v1274_v28  ;;  %v1280_v7 = vmul.f32 %v1976_v54, %v1279_v43  ;;  %v1438_v59 = vmul.f32 0.5, %v2960_v40  ;;  %v2999_v48 = vmax.f32 %v598_v26, 1e-24  ;;  %v632_v26 = vpop.xlane.xlu0 %631 }
 0x168   :  { %v1646_v19 = vmul.f32 %v1582_v61, %v804_v30  ;;  %v1534_v20 = vmul.f32 %v1470_v24, %v964_v10  ;;  %v1118_v57 = vmul.f32 0.5, %v1117_v33  ;;  %1981 = vrsqrt.f32 %v2994_v44 }
 0x169   :  { %v1629_v42 = vsub.f32 1.5, %v1565_v47  ;;  %v1284_v49 = vsel %vm1283_vm5, %v1976_v54, %v1280_v7  ;;  %vm1122_vm6 = vweird.f32 %v1978_v53  ;;  %vm1121_vm7 = vweird.f32 %v2968_v46 }
 0x16a   :  { %v1710_v34 = vmul.f32 %v1646_v19, %v2478_v2  ;;  %v1598_v50 = vsub.f32 1.5, %v1534_v20  ;;  %v1502_v39 = vmul.f32 %v1438_v59, %v1284_v49  ;;  %v1119_v14 = vsub.f32 1.5, %v1118_v57  ;;  %vm1123_vm8 = vmor %vm1121_vm7, %vm1122_vm6 }
 0x16b   :  { %v1693_v13 = vmul.f32 %v1629_v42, %v1274_v28  ;;  %1983 = vrsqrt.f32 %v2999_v48  ;;  %v3008_v6 = vmax.f32 %v662_v0, 1e-24  ;;  %v1422_v2 = vmul.f32 0.5, %v2968_v46 }
 0x16c   :  { %v1980_v9 = vpop.eup %1979  ;;  %1774 = vst [vmem:[#allocation2 + $0x28] sm:$0xff] %v1710_v34  ;;  %v1662_v40 = vmul.f32 %v1598_v50, %v964_v10  ;;  %v1566_v23 = vmul.f32 %v1502_v39, %v1284_v49  ;;  %v1120_v36 = vmul.f32 %v1978_v53, %v1119_v14  ;;  %v3014_v56 = vmax.f32 %v600_v60, 1e-24  ;;  %v570_v33 = vpop.xlane.xlu2 %569 }
 0x16d   :  { %v1757_v54 = vmul.f32 %v1693_v13, %v2481_v3  ;;  %v806_v21 = vmul.f32 %v1980_v9, %v2986_v41  ;;  %1985 = vrsqrt.f32 %v3008_v6  ;;  %vm811_vm9 = vweird.f32 %v2986_v41 }
 0x16e   :  { %v1982_v30 = vpop.eup %1981  ;;  %v1726_v5 = vmul.f32 %v1662_v40, %v2484_v4  ;;  %v1630_v32 = vsub.f32 1.5, %v1566_v23  ;;  %v1124_v52 = vsel %vm1123_vm8, %v1978_v53, %v1120_v36  ;;  %v1391_v63 = vmul.f32 0.5, %v2986_v41  ;;  %v568_v4 = vpop.xlane.xlu1 %567 }
 0x16f   :  { %1821 = vst [vmem:[#allocation2 + $0x1a0] sm:$0xff] %v1757_v54  ;;  %v1486_v22 = vmul.f32 %v1422_v2, %v1124_v52  ;;  %v807_v58 = vmul.f32 %v1980_v9, %v806_v21  ;;  %v1126_v3 = vmul.f32 %v1982_v30, %v2994_v44  ;;  %vm1131_vm10 = vweird.f32 %v2994_v44 }
 0x170   :  { %1790 = vst [vmem:[#allocation2 + $0xa8] sm:$0xff] %v1726_v5  ;;  %v1694_v46 = vmul.f32 %v1630_v32, %v1284_v49  ;;  %1987 = vrsqrt.f32 %v3014_v56  ;;  %v1423_v25 = vmul.f32 0.5, %v2994_v44  ;;  %vm812_vm11 = vweird.f32 %v1980_v9 }
 0x171   :  { %v1984_v8 = vpop.eup %1983  ;;  %v1550_v53 = vmul.f32 %v1486_v22, %v1124_v52  ;;  %v808_v38 = vmul.f32 0.5, %v807_v58  ;;  %v1127_v28 = vmul.f32 %v1982_v30, %v1126_v3  ;;  %vm971_vm12 = vweird.f32 %v2999_v48  ;;  %vm813_vm15 = vmor %vm811_vm9, %vm812_vm11 }
 0x172   :  { %v1758_v18 = vmul.f32 %v1694_v46, %v2496_v16  ;;  %v966_v51 = vmul.f32 %v1984_v8, %v2999_v48  ;;  %v3027_v24 = vmax.f32 %v568_v4, 1e-24  ;;  %vm1132_vm13 = vweird.f32 %v1982_v30 }
 0x173   :  { %v1614_v10 = vsub.f32 1.5, %v1550_v53  ;;  %v809_v43 = vsub.f32 1.5, %v808_v38  ;;  %v1128_v61 = vmul.f32 0.5, %v1127_v28  ;;  %v1986_v47 = vpop.eup %1985  ;;  %v1407_v59 = vmul.f32 0.5, %v2999_v48  ;;  %vm1133_vm0 = vmor %vm1131_vm10, %vm1132_vm13 }
 0x174   :  { %1822 = vst [vmem:[#allocation2 + $0x1a8] sm:$0xff] %v1758_v18  ;;  %v967_v7 = vmul.f32 %v1984_v8, %v966_v51  ;;  %v3030_v0 = vmax.f32 %v632_v26, 1e-24  ;;  %v1286_v57 = vmul.f32 %v1986_v47, %v3008_v6  ;;  %vm1291_vm14 = vweird.f32 %v3008_v6 }
 0x175   :  { %v1678_v16 = vmul.f32 %v1614_v10, %v1124_v52  ;;  %v810_v19 = vmul.f32 %v1980_v9, %v809_v43  ;;  %v1129_v20 = vsub.f32 1.5, %v1128_v61  ;;  %v1439_v60 = vmul.f32 0.5, %v3008_v6 }
 0x176   :  { %v3034_v42 = vpop.eup %1987  ;;  %v968_v49 = vmul.f32 0.5, %v967_v7  ;;  %1989 = vrsqrt.f32 %v3027_v24  ;;  %v3041_v34 = vmax.f32 %v570_v33, 1e-24  ;;  %v1287_v13 = vmul.f32 %v1986_v47, %v1286_v57  ;;  %v664_v3 = vpop.xlane.xlu1 %663 }
 0x177   :  { %v1742_v50 = vmul.f32 %v1678_v16, %v2493_v15  ;;  %v814_v39 = vsel %vm813_vm15, %v1980_v9, %v810_v19  ;;  %v1130_v14 = vmul.f32 %v1982_v30, %v1129_v20  ;;  %vm972_vm1 = vweird.f32 %v1984_v8  ;;  %v602_v20 = vpop.xlane.xlu0 %601 }
 0x178   :  { %v1455_v40 = vmul.f32 %v1391_v63, %v814_v39  ;;  %v969_v23 = vsub.f32 1.5, %v968_v49  ;;  %v976_v41 = vmul.f32 %v3034_v42, %v3014_v56  ;;  %v1288_v54 = vmul.f32 0.5, %v1287_v13  ;;  %vm973_vm3 = vmor %vm971_vm12, %vm972_vm1 }
 0x179   :  { %1806 = vst [vmem:[#allocation2 + $0x128] sm:$0xff] %v1742_v50  ;;  %v1134_v36 = vsel %vm1133_vm0, %v1982_v30, %v1130_v14  ;;  %vm981_vm2 = vweird.f32 %v3014_v56  ;;  %1991 = vrsqrt.f32 %v3030_v0  ;;  %vm1292_vm4 = vweird.f32 %v1986_v47  ;;  %v666_v50 = vpop.xlane.xlu2 %665 }
 0x17a   :  { %v1519_v15 = vmul.f32 %v1455_v40, %v814_v39  ;;  %v1487_v9 = vmul.f32 %v1423_v25, %v1134_v36  ;;  %v970_v2 = vmul.f32 %v1984_v8, %v969_v23  ;;  %v977_v21 = vmul.f32 %v3034_v42, %v976_v41  ;;  %vm1293_vm6 = vmor %vm1291_vm14, %vm1292_vm4 }
 0x17b   :  { %v1289_v44 = vsub.f32 1.5, %v1288_v54  ;;  %v1408_v5 = vmul.f32 0.5, %v3014_v56  ;;  %1993 = vrsqrt.f32 %v3041_v34  ;;  %vm821_vm5 = vweird.f32 %v3027_v24 }
 0x17c   :  { %v1990_v30 = vpop.eup %1989  ;;  %v1583_v32 = vsub.f32 1.5, %v1519_v15  ;;  %v1551_v52 = vmul.f32 %v1487_v9, %v1134_v36  ;;  %v974_v22 = vsel %vm973_vm3, %v1984_v8, %v970_v2  ;;  %v978_v58 = vmul.f32 0.5, %v977_v21 }
 0x17d   :  { %v1471_v46 = vmul.f32 %v1407_v59, %v974_v22  ;;  %v1290_v63 = vmul.f32 %v1986_v47, %v1289_v44  ;;  %v816_v4 = vmul.f32 %v1990_v30, %v3027_v24  ;;  %vm982_vm7 = vweird.f32 %v3034_v42 }
 0x17e   :  { %v1647_v48 = vmul.f32 %v1583_v32, %v814_v39  ;;  %v1615_v53 = vsub.f32 1.5, %v1551_v52  ;;  %v979_v38 = vsub.f32 1.5, %v978_v58  ;;  %v1392_v18 = vmul.f32 0.5, %v3027_v24  ;;  %vm983_vm8 = vmor %vm981_vm2, %vm982_vm7  ;;  %v634_v15 = vpop.xlane.xlu1 %633 }
 0x17f   :  { %v3062_v28 = vpop.eup %1991  ;;  %v1535_v8 = vmul.f32 %v1471_v46, %v974_v22  ;;  %v1294_v25 = vsel %vm1293_vm6, %v1986_v47, %v1290_v63  ;;  %v817_v26 = vmul.f32 %v1990_v30, %v816_v4  ;;  %vm822_vm9 = vweird.f32 %v1990_v30 }
 0x180   :  { %v1711_v51 = vmul.f32 %v1647_v48, %v2499_v17  ;;  %v1679_v10 = vmul.f32 %v1615_v53, %v1134_v36  ;;  %v1503_v43 = vmul.f32 %v1439_v60, %v1294_v25  ;;  %v980_v61 = vmul.f32 %v3034_v42, %v979_v38  ;;  %vm823_vm11 = vmor %vm821_vm5, %vm822_vm9 }
 0x181   :  { %v1994_v33 = vpop.eup %1993  ;;  %v1599_v7 = vsub.f32 1.5, %v1535_v8  ;;  %v818_v6 = vmul.f32 0.5, %v817_v26  ;;  %v1136_v59 = vmul.f32 %v3062_v28, %v3030_v0  ;;  %vm1141_vm10 = vweird.f32 %v3030_v0  ;;  %v572_v8 = vpop.xlane.xlu0 %571 }
 0x182   :  { %1775 = vst [vmem:[#allocation2 + $0x30] sm:$0xff] %v1711_v51  ;;  %v1743_v47 = vmul.f32 %v1679_v10, %v2511_v29  ;;  %v1567_v17 = vmul.f32 %v1503_v43, %v1294_v25  ;;  %v984_v16 = vsel %vm983_vm8, %v3034_v42, %v980_v61  ;;  %v826_v19 = vmul.f32 %v1994_v33, %v3041_v34 }
 0x183   :  { %v1663_v57 = vmul.f32 %v1599_v7, %v974_v22  ;;  %v1472_v49 = vmul.f32 %v1408_v5, %v984_v16  ;;  %v819_v56 = vsub.f32 1.5, %v818_v6  ;;  %v1137_v60 = vmul.f32 %v3062_v28, %v1136_v59  ;;  %v3547_v7 = vld [vmem:[#allocation5_spill] sm:$0xff] }
 0x184   :  { %1807 = vst [vmem:[#allocation2 + $0x130] sm:$0xff] %v1743_v47  ;;  %v1631_v39 = vsub.f32 1.5, %v1567_v17  ;;  %v1424_v14 = vmul.f32 0.5, %v3030_v0  ;;  %v827_v13 = vmul.f32 %v1994_v33, %v826_v19  ;;  %v3077_v40 = vmax.f32 %v664_v3, 1e-24  ;;  %v3546_v3 = vld [vmem:[#allocation6_spill] sm:$0xff] }
 0x185   :  { %v1727_v29 = vmul.f32 %v1663_v57, %v2508_v27  ;;  %v1536_v23 = vmul.f32 %v1472_v49, %v984_v16  ;;  %v820_v42 = vmul.f32 %v1990_v30, %v819_v56  ;;  %v1138_v41 = vmul.f32 0.5, %v1137_v60 }
 0x186   :  { %v1695_v36 = vmul.f32 %v1631_v39, %v1294_v25  ;;  %vm1142_vm12 = vweird.f32 %v3062_v28  ;;  %v828_v54 = vmul.f32 0.5, %v827_v13  ;;  %1995 = vrsqrt.f32 %v3077_v40  ;;  %v604_v17 = vpop.xlane.xlu1 %603 }
 0x187   :  { %1791 = vst [vmem:[#allocation2 + $0xb0] sm:$0xff] %v1727_v29  ;;  %v1600_v9 = vsub.f32 1.5, %v1536_v23  ;;  %v824_v2 = vsel %vm823_vm11, %v1990_v30, %v820_v42  ;;  %v1139_v21 = vsub.f32 1.5, %v1138_v41  ;;  %vm832_vm13 = vweird.f32 %v1994_v33  ;;  %vm1143_vm15 = vmor %vm1141_vm10, %vm1142_vm12  ;;  %v3548_v23 = vld [vmem:[#allocation7_spill] sm:$0xff] }
 0x188   :  { %v1759_v27 = vmul.f32 %v1695_v36, %v2514_v31  ;;  %v1456_v44 = vmul.f32 %v1392_v18, %v824_v2  ;;  %v829_v5 = vsub.f32 1.5, %v828_v54  ;;  %v3086_v32 = vmax.f32 %v602_v20, 1e-24  ;;  %v636_v18 = vpop.xlane.xlu2 %635  ;;  %v3549_v54 = vld [vmem:[#allocation8_spill] sm:$0xff] }
 0x189   :  { %v1664_v52 = vmul.f32 %v1600_v9, %v984_v16  ;;  %v1140_v24 = vmul.f32 %v3062_v28, %v1139_v21  ;;  %vm831_vm14 = vweird.f32 %v3041_v34  ;;  %v3090_v22 = vmax.f32 %v666_v50, 1e-24 }
 0x18a   :  { %1823 = vst [vmem:[#allocation2 + $0x1b0] sm:$0xff] %v1759_v27  ;;  %v1520_v58 = vmul.f32 %v1456_v44, %v824_v2  ;;  %v830_v30 = vmul.f32 %v1994_v33, %v829_v5  ;;  %1997 = vrsqrt.f32 %v3086_v32  ;;  %v3097_v31 = vmax.f32 %v634_v15, 1e-24  ;;  %vm833_vm0 = vmor %vm831_vm14, %vm832_vm13 }
 0x18b   :  { %v1728_v46 = vmul.f32 %v1664_v52, %v3546_v3  ;;  %v1144_v63 = vsel %vm1143_vm15, %v3062_v28, %v1140_v24  ;;  %v1393_v4 = vmul.f32 0.5, %v3041_v34  ;;  %1999 = vrsqrt.f32 %v3090_v22 }
 0x18c   :  { %v1996_v48 = vpop.eup %1995  ;;  %v1584_v53 = vsub.f32 1.5, %v1520_v58  ;;  %v1488_v38 = vmul.f32 %v1424_v14, %v1144_v63  ;;  %v834_v0 = vsel %vm833_vm0, %v1994_v33, %v830_v30  ;;  %2001 = vrsqrt.f32 %v3097_v31  ;;  %v668_v58 = vpop.xlane.xlu0 %667 }
 0x18d   :  { %1792 = vst [vmem:[#allocation2 + $0xb8] sm:$0xff] %v1728_v46  ;;  %v1457_v25 = vmul.f32 %v1393_v4, %v834_v0  ;;  %v1296_v26 = vmul.f32 %v1996_v48, %v3077_v40  ;;  %vm1301_vm1 = vweird.f32 %v3077_v40  ;;  %v3107_v34 = vmax.f32 %v572_v8, 1e-24 }
 0x18e   :  { %v1648_v51 = vmul.f32 %v1584_v53, %v824_v2  ;;  %v1552_v10 = vmul.f32 %v1488_v38, %v1144_v63  ;;  %v1440_v59 = vmul.f32 0.5, %v3077_v40  ;;  %v3111_v47 = vmax.f32 %v636_v18, 1e-24 }
 0x18f   :  { %v1521_v28 = vmul.f32 %v1457_v25, %v834_v0  ;;  %v1297_v43 = vmul.f32 %v1996_v48, %v1296_v26  ;;  %vm991_vm2 = vweird.f32 %v3086_v32  ;;  %v1409_v49 = vmul.f32 0.5, %v3086_v32 }
 0x190   :  { %v1998_v61 = vpop.eup %1997  ;;  %v1712_v6 = vmul.f32 %v1648_v51, %v3547_v7  ;;  %v1616_v33 = vsub.f32 1.5, %v1552_v10  ;;  %vm1302_vm3 = vweird.f32 %v1996_v48  ;;  %vm1311_vm4 = vweird.f32 %v3090_v22 }
 0x191   :  { %v3113_v16 = vpop.eup %1999  ;;  %v1585_v19 = vsub.f32 1.5, %v1521_v28  ;;  %v1298_v20 = vmul.f32 0.5, %v1297_v43  ;;  %v986_v57 = vmul.f32 %v1998_v61, %v3086_v32  ;;  %2003 = vrsqrt.f32 %v3107_v34  ;;  %vm1303_vm5 = vmor %vm1301_vm1, %vm1302_vm3 }
 0x192   :  { %1776 = vst [vmem:[#allocation2 + $0x38] sm:$0xff] %v1712_v6  ;;  %v1680_v56 = vmul.f32 %v1616_v33, %v1144_v63  ;;  %v1306_v60 = vmul.f32 %v3113_v16, %v3090_v22  ;;  %v3122_v13 = vmax.f32 %v604_v17, 1e-24  ;;  %v2002_v29 = vpop.eup %2001  ;;  %v1441_v36 = vmul.f32 0.5, %v3090_v22 }
 0x193   :  { %v1649_v50 = vmul.f32 %v1585_v19, %v834_v0  ;;  %v1299_v39 = vsub.f32 1.5, %v1298_v20  ;;  %v987_v14 = vmul.f32 %v1998_v61, %v986_v57  ;;  %2005 = vrsqrt.f32 %v3111_v47 }
 0x194   :  { %v1744_v42 = vmul.f32 %v1680_v56, %v3548_v23  ;;  %v1307_v41 = vmul.f32 %v3113_v16, %v1306_v60  ;;  %v1146_v21 = vmul.f32 %v2002_v29, %v3097_v31  ;;  %vm992_vm6 = vweird.f32 %v1998_v61  ;;  %v3550_v60 = vld [vmem:[#allocation9_spill] sm:$0xff] }
 0x195   :  { %v1713_v15 = vmul.f32 %v1649_v50, %v3549_v54  ;;  %v1300_v9 = vmul.f32 %v1996_v48, %v1299_v39  ;;  %v988_v2 = vmul.f32 0.5, %v987_v14  ;;  %vm1151_vm7 = vweird.f32 %v3097_v31  ;;  %vm993_vm11 = vmor %vm991_vm2, %vm992_vm6  ;;  %v574_v54 = vpop.xlane.xlu1 %573 }
 0x196   :  { %1808 = vst [vmem:[#allocation2 + $0x138] sm:$0xff] %v1744_v42  ;;  %v1308_v27 = vmul.f32 0.5, %v1307_v41  ;;  %v1425_v44 = vmul.f32 0.5, %v3097_v31  ;;  %v1147_v24 = vmul.f32 %v2002_v29, %v1146_v21  ;;  %2007 = vrsqrt.f32 %v3122_v13 }
 0x197   :  { %1777 = vst [vmem:[#allocation2 + $0x40] sm:$0xff] %v1713_v15  ;;  %v1304_v5 = vsel %vm1303_vm5, %v1996_v48, %v1300_v9  ;;  %v989_v52 = vsub.f32 1.5, %v988_v2  ;;  %v2004_v30 = vpop.eup %2003  ;;  %vm1312_vm8 = vweird.f32 %v3113_v16  ;;  %v1394_v40 = vmul.f32 0.5, %v3107_v34  ;;  %v606_v48 = vpop.xlane.xlu2 %605 }
 0x198   :  { %v1504_v3 = vmul.f32 %v1440_v59, %v1304_v5  ;;  %v1309_v46 = vsub.f32 1.5, %v1308_v27  ;;  %v1148_v4 = vmul.f32 0.5, %v1147_v24  ;;  %vm1152_vm9 = vweird.f32 %v2002_v29  ;;  %vm1313_vm13 = vmor %vm1311_vm4, %vm1312_vm8  ;;  %v638_v2 = vpop.xlane.xlu0 %637 }
 0x199   :  { %v990_v63 = vmul.f32 %v1998_v61, %v989_v52  ;;  %v836_v53 = vmul.f32 %v2004_v30, %v3107_v34  ;;  %vm841_vm10 = vweird.f32 %v3107_v34  ;;  %v2006_v38 = vpop.eup %2005  ;;  %vm842_vm12 = vweird.f32 %v2004_v30  ;;  %vm1153_vm15 = vmor %vm1151_vm7, %vm1152_vm9 }
 0x19a   :  { %v1568_v0 = vmul.f32 %v1504_v3, %v1304_v5  ;;  %v1310_v8 = vmul.f32 %v3113_v16, %v1309_v46  ;;  %v3144_v25 = vmax.f32 %v668_v58, 1e-24  ;;  %v1149_v18 = vsub.f32 1.5, %v1148_v4  ;;  %vm843_vm1 = vmor %vm841_vm10, %vm842_vm12  ;;  %v3552_v46 = vld [vmem:[#allocation12_spill] sm:$0xff] }
 0x19b   :  { %v994_v26 = vsel %vm993_vm11, %v1998_v61, %v990_v63  ;;  %v837_v51 = vmul.f32 %v2004_v30, %v836_v53  ;;  %v1156_v10 = vmul.f32 %v2006_v38, %v3111_v47  ;;  %vm1161_vm14 = vweird.f32 %v3111_v47 }
 0x19c   :  { %v1632_v28 = vsub.f32 1.5, %v1568_v0  ;;  %v1473_v32 = vmul.f32 %v1409_v49, %v994_v26  ;;  %v1314_v43 = vsel %vm1313_vm13, %v3113_v16, %v1310_v8  ;;  %v3153_v7 = vmax.f32 %v606_v48, 1e-24  ;;  %v2008_v6 = vpop.eup %2007 }
 0x19d   :  { %v1505_v33 = vmul.f32 %v1441_v36, %v1314_v43  ;;  %v1150_v61 = vmul.f32 %v2002_v29, %v1149_v18  ;;  %v838_v59 = vmul.f32 0.5, %v837_v51  ;;  %v1157_v17 = vmul.f32 %v2006_v38, %v1156_v10 }
 0x19e   :  { %v1696_v19 = vmul.f32 %v1632_v28, %v1304_v5  ;;  %v1537_v22 = vmul.f32 %v1473_v32, %v994_v26  ;;  %vm1162_vm0 = vweird.f32 %v2006_v38  ;;  %v996_v20 = vmul.f32 %v2008_v6, %v3122_v13  ;;  %v3551_v5 = vld [vmem:[#allocation10_spill] sm:$0xff] }
 0x19f   :  { %v1569_v57 = vmul.f32 %v1505_v33, %v1314_v43  ;;  %v1154_v49 = vsel %vm1153_vm15, %v2002_v29, %v1150_v61  ;;  %v839_v56 = vsub.f32 1.5, %v838_v59  ;;  %v1158_v16 = vmul.f32 0.5, %v1157_v17  ;;  %vm1163_vm3 = vmor %vm1161_vm14, %vm1162_vm0  ;;  %v576_v28 = vpop.xlane.xlu2 %575 }
 0x1a0   :  { %v1760_v50 = vmul.f32 %v1696_v19, %v3550_v60  ;;  %v1601_v39 = vsub.f32 1.5, %v1537_v22  ;;  %v1489_v14 = vmul.f32 %v1425_v44, %v1154_v49  ;;  %v997_v23 = vmul.f32 %v2008_v6, %v996_v20  ;;  %v670_v19 = vpop.xlane.xlu1 %669  ;;  %v3554_v22 = vld [vmem:[#allocation13_spill] sm:$0xff] }
 0x1a1   :  { %v1633_v42 = vsub.f32 1.5, %v1569_v57  ;;  %v840_v41 = vmul.f32 %v2004_v30, %v839_v56  ;;  %v1159_v36 = vsub.f32 1.5, %v1158_v16  ;;  %2009 = vrsqrt.f32 %v3144_v25 }
 0x1a2   :  { %1824 = vst [vmem:[#allocation2 + $0x1b8] sm:$0xff] %v1760_v50  ;;  %v1665_v31 = vmul.f32 %v1601_v39, %v994_v26  ;;  %v1553_v15 = vmul.f32 %v1489_v14, %v1154_v49  ;;  %v1426_v29 = vmul.f32 0.5, %v3111_v47  ;;  %v998_v9 = vmul.f32 0.5, %v997_v23  ;;  %v3555_v39 = vld [vmem:[#allocation15_spill] sm:$0xff] }
 0x1a3   :  { %v1697_v21 = vmul.f32 %v1633_v42, %v1314_v43  ;;  %v844_v27 = vsel %vm843_vm1, %v2004_v30, %v840_v41  ;;  %v1160_v44 = vmul.f32 %v2006_v38, %v1159_v36  ;;  %vm1002_vm2 = vweird.f32 %v2008_v6 }
 0x1a4   :  { %v1729_v52 = vmul.f32 %v1665_v31, %v3551_v5  ;;  %v1617_v24 = vsub.f32 1.5, %v1553_v15  ;;  %v1458_v58 = vmul.f32 %v1394_v40, %v844_v27  ;;  %v999_v3 = vsub.f32 1.5, %v998_v9 }
 0x1a5   :  { %v1761_v34 = vmul.f32 %v1697_v21, %v3552_v46  ;;  %v1164_v63 = vsel %vm1163_vm3, %v2006_v38, %v1160_v44  ;;  %vm1001_vm4 = vweird.f32 %v3122_v13  ;;  %2011 = vrsqrt.f32 %v3153_v7  ;;  %v3553_v38 = vld [vmem:[#allocation11_spill] sm:$0xff]  ;;  %v3556_v21 = vld [vmem:[#allocation14_spill] sm:$0xff] }
 0x1a6   :  { %1793 = vst [vmem:[#allocation2 + $0xc0] sm:$0xff] %v1729_v52  ;;  %v1681_v30 = vmul.f32 %v1617_v24, %v1154_v49  ;;  %v1522_v4 = vmul.f32 %v1458_v58, %v844_v27  ;;  %v1490_v53 = vmul.f32 %v1426_v29, %v1164_v63  ;;  %v1000_v48 = vmul.f32 %v2008_v6, %v999_v3  ;;  %vm1003_vm5 = vmor %vm1001_vm4, %vm1002_vm2  ;;  %v608_v49 = vpop.xlane.xlu0 %607 }
 0x1a7   :  { %v2010_v0 = vpop.eup %2009  ;;  %1825 = vst [vmem:[#allocation2 + $0x1c0] sm:$0xff] %v1761_v34  ;;  %v1410_v47 = vmul.f32 0.5, %v3122_v13  ;;  %v3174_v40 = vmax.f32 %v574_v54, 1e-24  ;;  %v3176_v8 = vmax.f32 %v638_v2, 1e-24  ;;  %vm1321_vm6 = vweird.f32 %v3144_v25  ;;  %v672_v58 = vpop.xlane.xlu2 %671 }
 0x1a8   :  { %v1745_v26 = vmul.f32 %v1681_v30, %v3553_v38  ;;  %v1586_v18 = vsub.f32 1.5, %v1522_v4  ;;  %v1554_v51 = vmul.f32 %v1490_v53, %v1164_v63  ;;  %v1004_v10 = vsel %vm1003_vm5, %v2008_v6, %v1000_v48 }
 0x1a9   :  { %v1474_v32 = vmul.f32 %v1410_v47, %v1004_v10  ;;  %v1316_v43 = vmul.f32 %v2010_v0, %v3144_v25  ;;  %2013 = vrsqrt.f32 %v3174_v40  ;;  %v1442_v60 = vmul.f32 0.5, %v3144_v25 }
 0x1aa   :  { %1809 = vst [vmem:[#allocation2 + $0x140] sm:$0xff] %v1745_v26  ;;  %v1650_v33 = vmul.f32 %v1586_v18, %v844_v27  ;;  %v1618_v61 = vsub.f32 1.5, %v1554_v51  ;;  %2015 = vrsqrt.f32 %v3176_v8  ;;  %v3186_v50 = vmax.f32 %v576_v28, 1e-24  ;;  %v640_v51 = vpop.xlane.xlu1 %639 }
 0x1ab   :  { %v2012_v59 = vpop.eup %2011  ;;  %v1538_v13 = vmul.f32 %v1474_v32, %v1004_v10  ;;  %v1317_v17 = vmul.f32 %v2010_v0, %v1316_v43  ;;  %vm1322_vm7 = vweird.f32 %v2010_v0  ;;  %v3189_v42 = vmax.f32 %v670_v19, 1e-24 }
 0x1ac   :  { %v1714_v20 = vmul.f32 %v1650_v33, %v3554_v22  ;;  %v1682_v57 = vmul.f32 %v1618_v61, %v1164_v63  ;;  %v1006_v6 = vmul.f32 %v2012_v59, %v3153_v7  ;;  %2017 = vrsqrt.f32 %v3186_v50  ;;  %vm1323_vm10 = vmor %vm1321_vm6, %vm1322_vm7 }
 0x1ad   :  { %v1602_v56 = vsub.f32 1.5, %v1538_v13  ;;  %v1318_v16 = vmul.f32 0.5, %v1317_v17  ;;  %v3192_v31 = vmax.f32 %v608_v49, 1e-24  ;;  %vm1011_vm8 = vweird.f32 %v3153_v7 }
 0x1ae   :  { %1778 = vst [vmem:[#allocation2 + $0x48] sm:$0xff] %v1714_v20  ;;  %v1746_v14 = vmul.f32 %v1682_v57, %v3555_v39  ;;  %v1007_v23 = vmul.f32 %v2012_v59, %v1006_v6  ;;  %v1411_v29 = vmul.f32 0.5, %v3153_v7  ;;  %vm851_vm9 = vweird.f32 %v3174_v40  ;;  %v3557_v39 = vld [vmem:[#allocation16_spill] sm:$0xff] }
 0x1af   :  { %v2014_v41 = vpop.eup %2013  ;;  %v1666_v36 = vmul.f32 %v1602_v56, %v1004_v10  ;;  %v1319_v54 = vsub.f32 1.5, %v1318_v16  ;;  %2019 = vrsqrt.f32 %v3189_v42  ;;  %vm1012_vm11 = vweird.f32 %v2012_v59 }
 0x1b0   :  { %1810 = vst [vmem:[#allocation2 + $0x148] sm:$0xff] %v1746_v14  ;;  %v1008_v15 = vmul.f32 0.5, %v1007_v23  ;;  %v846_v9 = vmul.f32 %v2014_v41, %v3174_v40  ;;  %v2016_v2 = vpop.eup %2015  ;;  %v1395_v46 = vmul.f32 0.5, %v3174_v40  ;;  %vm1171_vm12 = vweird.f32 %v3176_v8  ;;  %vm1013_vm13 = vmor %vm1011_vm8, %vm1012_vm11 }
 0x1b1   :  { %v1730_v27 = vmul.f32 %v1666_v36, %v3556_v21  ;;  %v1320_v44 = vmul.f32 %v2010_v0, %v1319_v54  ;;  %v1166_v24 = vmul.f32 %v2016_v2, %v3176_v8  ;;  %2021 = vrsqrt.f32 %v3192_v31  ;;  %v578_v21 = vpop.xlane.xlu0 %577 }
 0x1b2   :  { %v1009_v5 = vsub.f32 1.5, %v1008_v15  ;;  %v847_v52 = vmul.f32 %v2014_v41, %v846_v9  ;;  %v3207_v25 = vpop.eup %2017  ;;  %vm852_vm14 = vweird.f32 %v2014_v41  ;;  %v1427_v53 = vmul.f32 0.5, %v3176_v8 }
 0x1b3   :  { %1794 = vst [vmem:[#allocation2 + $0xc8] sm:$0xff] %v1730_v27  ;;  %v1324_v3 = vsel %vm1323_vm10, %v2010_v0, %v1320_v44  ;;  %v1167_v4 = vmul.f32 %v2016_v2, %v1166_v24  ;;  %v3213_v48 = vmul.f32 0.5, %v3186_v50  ;;  %v3215_v0 = vmax.f32 %v672_v58, 1e-24  ;;  %vm853_vm2 = vmor %vm851_vm9, %vm852_vm14 }
 0x1b4   :  { %v1506_v34 = vmul.f32 %v1442_v60, %v1324_v3  ;;  %v1010_v63 = vmul.f32 %v2012_v59, %v1009_v5  ;;  %v848_v30 = vmul.f32 0.5, %v847_v52  ;;  %vm1172_vm15 = vweird.f32 %v2016_v2  ;;  %v3558_v5 = vld [vmem:[#allocation18_spill] sm:$0xff] }
 0x1b5   :  { %v1168_v18 = vmul.f32 0.5, %v1167_v4  ;;  %v2020_v10 = vpop.eup %2019  ;;  %v856_v7 = vmul.f32 %v3207_v25, %v3186_v50  ;;  %vm861_vm0 = vweird.f32 %v3186_v50  ;;  %2023 = vrsqrt.f32 %v3215_v0  ;;  %vm1173_vm3 = vmor %vm1171_vm12, %vm1172_vm15 }
 0x1b6   :  { %v1570_v47 = vmul.f32 %v1506_v34, %v1324_v3  ;;  %v1014_v38 = vsel %vm1013_vm13, %v2012_v59, %v1010_v63  ;;  %v849_v26 = vsub.f32 1.5, %v848_v30  ;;  %v1326_v61 = vmul.f32 %v2020_v10, %v3189_v42  ;;  %v642_v63 = vpop.xlane.xlu2 %641 }
 0x1b7   :  { %v1475_v28 = vmul.f32 %v1411_v29, %v1014_v38  ;;  %v1169_v33 = vsub.f32 1.5, %v1168_v18  ;;  %vm1331_vm1 = vweird.f32 %v3189_v42  ;;  %v3223_v59 = vpop.eup %2021  ;;  %v857_v17 = vmul.f32 %v3207_v25, %v856_v7 }
 0x1b8   :  { %v1634_v32 = vsub.f32 1.5, %v1570_v47  ;;  %v850_v43 = vmul.f32 %v2014_v41, %v849_v26  ;;  %v1443_v19 = vmul.f32 0.5, %v3189_v42  ;;  %v3230_v22 = vmax.f32 %v640_v51, 1e-24  ;;  %v610_v47 = vpop.xlane.xlu1 %609  ;;  %v3559_v51 = vld [vmem:[#allocation17_spill] sm:$0xff]  ;;  %v3560_v42 = vld [vmem:[#allocation19_spill] sm:$0xff] }
 0x1b9   :  { %v1539_v13 = vmul.f32 %v1475_v28, %v1014_v38  ;;  %v1170_v6 = vmul.f32 %v2016_v2, %v1169_v33  ;;  %v1327_v49 = vmul.f32 %v2020_v10, %v1326_v61  ;;  %v858_v60 = vmul.f32 0.5, %v857_v17 }
 0x1ba   :  { %v1698_v20 = vmul.f32 %v1634_v32, %v1324_v3  ;;  %v854_v57 = vsel %vm853_vm2, %v2014_v41, %v850_v43  ;;  %v1016_v40 = vmul.f32 %v3223_v59, %v3192_v31  ;;  %vm862_vm4 = vweird.f32 %v3207_v25 }
 0x1bb   :  { %v1603_v56 = vsub.f32 1.5, %v1539_v13  ;;  %v1459_v16 = vmul.f32 %v1395_v46, %v854_v57  ;;  %v1174_v23 = vsel %vm1173_vm3, %v2016_v2, %v1170_v6  ;;  %v1328_v36 = vmul.f32 0.5, %v1327_v49  ;;  %v2024_v41 = vpop.eup %2023  ;;  %vm863_vm7 = vmor %vm861_vm0, %vm862_vm4 }
 0x1bc   :  { %v1762_v14 = vmul.f32 %v1698_v20, %v3557_v39  ;;  %vm1021_vm5 = vweird.f32 %v3192_v31  ;;  %v1491_v29 = vmul.f32 %v1427_v53, %v1174_v23  ;;  %v859_v9 = vsub.f32 1.5, %v858_v60 }
 0x1bd   :  { %v1667_v54 = vmul.f32 %v1603_v56, %v1014_v38  ;;  %v1523_v15 = vmul.f32 %v1459_v16, %v854_v57  ;;  %v1329_v8 = vsub.f32 1.5, %v1328_v36  ;;  %vm1332_vm6 = vweird.f32 %v2020_v10 }
 0x1be   :  { %1826 = vst [vmem:[#allocation2 + $0x1c8] sm:$0xff] %v1762_v14  ;;  %v1017_v27 = vmul.f32 %v3223_v59, %v1016_v40  ;;  %v1336_v44 = vmul.f32 %v2024_v41, %v3215_v0  ;;  %v1555_v24 = vmul.f32 %v1491_v29, %v1174_v23  ;;  %v860_v58 = vmul.f32 %v3207_v25, %v859_v9  ;;  %vm1333_vm9 = vmor %vm1331_vm1, %vm1332_vm6  ;;  %v612_v9 = vpop.xlane.xlu2 %611 }
 0x1bf   :  { %v1731_v2 = vmul.f32 %v1667_v54, %v3558_v5  ;;  %v1587_v52 = vsub.f32 1.5, %v1523_v15  ;;  %v1330_v3 = vmul.f32 %v2020_v10, %v1329_v8  ;;  %vm1022_vm8 = vweird.f32 %v3223_v59  ;;  %v3561_v54 = vld [vmem:[#allocation20_spill] sm:$0xff] }
 0x1c0   :  { %v1018_v46 = vmul.f32 0.5, %v1017_v27  ;;  %v1337_v34 = vmul.f32 %v2024_v41, %v1336_v44  ;;  %v1619_v4 = vsub.f32 1.5, %v1555_v24  ;;  %v864_v53 = vsel %vm863_vm7, %v3207_v25, %v860_v58  ;;  %vm1023_vm11 = vmor %vm1021_vm5, %vm1022_vm8  ;;  %v580_v44 = vpop.xlane.xlu1 %579 }
 0x1c1   :  { %1795 = vst [vmem:[#allocation2 + $0xd0] sm:$0xff] %v1731_v2  ;;  %v1651_v30 = vmul.f32 %v1587_v52, %v854_v57  ;;  %2025 = vrsqrt.f32 %v3230_v22  ;;  %v1460_v50 = vmul.f32 %v3213_v48, %v864_v53  ;;  %v1334_v38 = vsel %vm1333_vm9, %v2020_v10, %v1330_v3 }
 0x1c2   :  { %v1019_v26 = vsub.f32 1.5, %v1018_v46  ;;  %v1338_v18 = vmul.f32 0.5, %v1337_v34  ;;  %v1683_v7 = vmul.f32 %v1619_v4, %v1174_v23  ;;  %v1507_v32 = vmul.f32 %v1443_v19, %v1334_v38 }
 0x1c3   :  { %v1715_v28 = vmul.f32 %v1651_v30, %v3559_v51  ;;  %v1412_v43 = vmul.f32 0.5, %v3192_v31  ;;  %v1524_v33 = vmul.f32 %v1460_v50, %v864_v53  ;;  %vm1342_vm10 = vweird.f32 %v2024_v41  ;;  %v674_v31 = vpop.xlane.xlu0 %673  ;;  %v3563_v30 = vld [vmem:[#allocation22_spill] sm:$0xff] }
 0x1c4   :  { %v1020_v25 = vmul.f32 %v3223_v59, %v1019_v26  ;;  %v1339_v61 = vsub.f32 1.5, %v1338_v18  ;;  %v1747_v13 = vmul.f32 %v1683_v7, %v3560_v42  ;;  %v1571_v17 = vmul.f32 %v1507_v32, %v1334_v38  ;;  %v3564_v18 = vld [vmem:[#allocation24_spill] sm:$0xff] }
 0x1c5   :  { %1779 = vst [vmem:[#allocation2 + $0x50] sm:$0xff] %v1715_v28  ;;  %vm1341_vm12 = vweird.f32 %v3215_v0  ;;  %v3264_v48 = vmax.f32 %v578_v21, 1e-24  ;;  %v1588_v10 = vsub.f32 1.5, %v1524_v33  ;;  %v3267_v57 = vmax.f32 %v642_v63, 1e-24 }
 0x1c6   :  { %v1024_v19 = vsel %vm1023_vm11, %v3223_v59, %v1020_v25  ;;  %v1340_v20 = vmul.f32 %v2024_v41, %v1339_v61  ;;  %1811 = vst [vmem:[#allocation2 + $0x150] sm:$0xff] %v1747_v13  ;;  %v1635_v49 = vsub.f32 1.5, %v1571_v17  ;;  %vm1343_vm13 = vmor %vm1341_vm12, %vm1342_vm10  ;;  %v1444_v16 = vmul.f32 0.5, %v3215_v0  ;;  %v3562_v21 = vld [vmem:[#allocation21_spill] sm:$0xff] }
 0x1c7   :  { %v2026_v6 = vpop.eup %2025  ;;  %v1476_v56 = vmul.f32 %v1412_v43, %v1024_v19  ;;  %2027 = vrsqrt.f32 %v3264_v48  ;;  %v1652_v60 = vmul.f32 %v1588_v10, %v864_v53  ;;  %v3273_v14 = vmax.f32 %v610_v47, 1e-24 }
 0x1c8   :  { %v1344_v40 = vsel %vm1343_vm13, %v2024_v41, %v1340_v20  ;;  %v1176_v39 = vmul.f32 %v2026_v6, %v3230_v22  ;;  %v1699_v59 = vmul.f32 %v1635_v49, %v1334_v38  ;;  %2029 = vrsqrt.f32 %v3267_v57 }
 0x1c9   :  { %v1540_v23 = vmul.f32 %v1476_v56, %v1024_v19  ;;  %v1508_v36 = vmul.f32 %v1444_v16, %v1344_v40  ;;  %v1716_v15 = vmul.f32 %v1652_v60, %v3561_v54  ;;  %vm1181_vm14 = vweird.f32 %v3230_v22 }
 0x1ca   :  { %v1177_v29 = vmul.f32 %v2026_v6, %v1176_v39  ;;  %v1763_v0 = vmul.f32 %v1699_v59, %v3562_v21  ;;  %v1428_v5 = vmul.f32 0.5, %v3230_v22  ;;  %2031 = vrsqrt.f32 %v3273_v14 }
 0x1cb   :  { %v1604_v8 = vsub.f32 1.5, %v1540_v23  ;;  %v1572_v27 = vmul.f32 %v1508_v36, %v1344_v40  ;;  %1780 = vst [vmem:[#allocation2 + $0x58] sm:$0xff] %v1716_v15  ;;  %v3281_v58 = vmax.f32 %v674_v31, 1e-24  ;;  %v3283_v3 = vmax.f32 %v612_v9, 1e-24  ;;  %v644_v43 = vpop.xlane.xlu0 %643  ;;  %v582_v31 = vpop.xlane.xlu2 %581 }
 0x1cc   :  { %v1178_v41 = vmul.f32 0.5, %v1177_v29  ;;  %1827 = vst [vmem:[#allocation2 + $0x1d0] sm:$0xff] %v1763_v0  ;;  %vm1182_vm15 = vweird.f32 %v2026_v6  ;;  %v3286_v63 = vmax.f32 %v580_v44, 1e-24  ;;  %vm871_vm0 = vweird.f32 %v3264_v48 }
 0x1cd   :  { %v2028_v2 = vpop.eup %2027  ;;  %v1668_v52 = vmul.f32 %v1604_v8, %v1024_v19  ;;  %v1636_v24 = vsub.f32 1.5, %v1572_v27  ;;  %2033 = vrsqrt.f32 %v3281_v58  ;;  %v1397_v26 = vmul.f32 0.5, %v3264_v48  ;;  %vm1183_vm1 = vmor %vm1181_vm14, %vm1182_vm15 }
 0x1ce   :  { %v1179_v46 = vsub.f32 1.5, %v1178_v41  ;;  %v866_v34 = vmul.f32 %v2028_v2, %v3264_v48  ;;  %v3291_v47 = vpop.eup %2029  ;;  %2035 = vrsqrt.f32 %v3283_v3  ;;  %vm1191_vm2 = vweird.f32 %v3267_v57 }
 0x1cf   :  { %v1732_v4 = vmul.f32 %v1668_v52, %v3563_v30  ;;  %v1700_v53 = vmul.f32 %v1636_v24, %v1344_v40  ;;  %v1186_v28 = vmul.f32 %v3291_v47, %v3267_v57  ;;  %v1429_v7 = vmul.f32 0.5, %v3267_v57  ;;  %v3565_v52 = vld [vmem:[#allocation23_spill] sm:$0xff] }
 0x1d0   :  { %v1180_v50 = vmul.f32 %v2026_v6, %v1179_v46  ;;  %v867_v38 = vmul.f32 %v2028_v2, %v866_v34  ;;  %v3303_v32 = vmul.f32 0.5, %v3273_v14  ;;  %v2032_v33 = vpop.eup %2031  ;;  %vm872_vm3 = vweird.f32 %v2028_v2 }
 0x1d1   :  { %1796 = vst [vmem:[#allocation2 + $0xd8] sm:$0xff] %v1732_v4  ;;  %v1764_v51 = vmul.f32 %v1700_v53, %v3564_v18  ;;  %2037 = vrsqrt.f32 %v3286_v63  ;;  %v1187_v42 = vmul.f32 %v3291_v47, %v1186_v28  ;;  %v1026_v13 = vmul.f32 %v2032_v33, %v3273_v14  ;;  %vm873_vm8 = vmor %vm871_vm0, %vm872_vm3 }
 0x1d2   :  { %v1184_v25 = vsel %vm1183_vm1, %v2026_v6, %v1180_v50  ;;  %v868_v61 = vmul.f32 0.5, %v867_v38  ;;  %vm1031_vm4 = vweird.f32 %v3273_v14  ;;  %v3310_v17 = vmul.f32 0.5, %v3281_v58 }
 0x1d3   :  { %1828 = vst [vmem:[#allocation2 + $0x1d8] sm:$0xff] %v1764_v51  ;;  %v1492_v22 = vmul.f32 %v1428_v5, %v1184_v25  ;;  %vm1192_vm5 = vweird.f32 %v3291_v47  ;;  %v3314_v19 = vmul.f32 0.5, %v3283_v3  ;;  %v3316_v20 = vmax.f32 %v644_v43, 1e-24  ;;  %v2034_v6 = vpop.eup %2033  ;;  %v646_v51 = vpop.xlane.xlu1 %645 }
 0x1d4   :  { %v869_v10 = vsub.f32 1.5, %v868_v61  ;;  %v1188_v56 = vmul.f32 0.5, %v1187_v42  ;;  %v1027_v16 = vmul.f32 %v2032_v33, %v1026_v13  ;;  %vm1032_vm6 = vweird.f32 %v2032_v33  ;;  %v3318_v60 = vpop.eup %2035  ;;  %vm1193_vm11 = vmor %vm1191_vm2, %vm1192_vm5 }
 0x1d5   :  { %v1556_v49 = vmul.f32 %v1492_v22, %v1184_v25  ;;  %v1346_v39 = vmul.f32 %v2034_v6, %v3281_v58  ;;  %vm1351_vm7 = vweird.f32 %v3281_v58  ;;  %v3323_v59 = vmul.f32 0.5, %v3286_v63  ;;  %vm1033_vm14 = vmor %vm1031_vm4, %vm1032_vm6 }
 0x1d6   :  { %v870_v40 = vmul.f32 %v2028_v2, %v869_v10  ;;  %2039 = vrsqrt.f32 %v3316_v20  ;;  %v1189_v36 = vsub.f32 1.5, %v1188_v56  ;;  %v1028_v54 = vmul.f32 0.5, %v1027_v16 }
 0x1d7   :  { %v1620_v23 = vsub.f32 1.5, %v1556_v49  ;;  %v1036_v15 = vmul.f32 %v3318_v60, %v3283_v3  ;;  %v3331_v29 = vpop.eup %2037  ;;  %v1347_v21 = vmul.f32 %v2034_v6, %v1346_v39  ;;  %vm1352_vm9 = vweird.f32 %v2034_v6  ;;  %v3566_v49 = vld [vmem:[#allocation25_spill] sm:$0xff] }
 0x1d8   :  { %v874_v9 = vsel %vm873_vm8, %v2028_v2, %v870_v40  ;;  %vm1041_vm10 = vweird.f32 %v3283_v3  ;;  %v3334_v0 = vmax.f32 %v582_v31, 1e-24  ;;  %v1190_v44 = vmul.f32 %v3291_v47, %v1189_v36  ;;  %vm1353_vm0 = vmor %vm1351_vm7, %vm1352_vm9  ;;  %v614_v31 = vpop.xlane.xlu0 %613  ;;  %v648_v40 = vpop.xlane.xlu2 %647 }
 0x1d9   :  { %v1684_v8 = vmul.f32 %v1620_v23, %v1184_v25  ;;  %v1461_v27 = vmul.f32 %v1397_v26, %v874_v9  ;;  %v1029_v48 = vsub.f32 1.5, %v1028_v54  ;;  %v1348_v41 = vmul.f32 0.5, %v1347_v21 }
 0x1da   :  { %v1037_v5 = vmul.f32 %v3318_v60, %v1036_v15  ;;  %vm1042_vm12 = vweird.f32 %v3318_v60  ;;  %v876_v2 = vmul.f32 %v3331_v29, %v3286_v63  ;;  %v1194_v34 = vsel %vm1193_vm11, %v3291_v47, %v1190_v44 }
 0x1db   :  { %v1748_v24 = vmul.f32 %v1684_v8, %v3565_v52  ;;  %v1525_v46 = vmul.f32 %v1461_v27, %v874_v9  ;;  %v1030_v30 = vmul.f32 %v2032_v33, %v1029_v48  ;;  %vm881_vm13 = vweird.f32 %v3286_v63  ;;  %vm1043_vm2 = vmor %vm1041_vm10, %vm1042_vm12  ;;  %v3568_v48 = vld [vmem:[#allocation27_spill] sm:$0xff] }
 0x1dc   :  { %v2040_v4 = vpop.eup %2039  ;;  %v1493_v53 = vmul.f32 %v1429_v7, %v1194_v34  ;;  %v1349_v57 = vsub.f32 1.5, %v1348_v41  ;;  %v1038_v50 = vmul.f32 0.5, %v1037_v5  ;;  %v877_v38 = vmul.f32 %v3331_v29, %v876_v2 }
 0x1dd   :  { %1812 = vst [vmem:[#allocation2 + $0x158] sm:$0xff] %v1748_v24  ;;  %v1589_v26 = vsub.f32 1.5, %v1525_v46  ;;  %v1034_v18 = vsel %vm1033_vm14, %v2032_v33, %v1030_v30  ;;  %vm882_vm15 = vweird.f32 %v3331_v29  ;;  %v1196_v47 = vmul.f32 %v2040_v4, %v3316_v20 }
 0x1de   :  { %v1557_v28 = vmul.f32 %v1493_v53, %v1194_v34  ;;  %v1477_v43 = vmul.f32 %v3303_v32, %v1034_v18  ;;  %v1350_v7 = vmul.f32 %v2034_v6, %v1349_v57  ;;  %v1039_v25 = vsub.f32 1.5, %v1038_v50  ;;  %vm883_vm3 = vmor %vm881_vm13, %vm882_vm15  ;;  %v3569_v57 = vld [vmem:[#allocation28_spill] sm:$0xff] }
 0x1df   :  { %v1653_v61 = vmul.f32 %v1589_v26, %v874_v9  ;;  %v878_v14 = vmul.f32 0.5, %v877_v38  ;;  %v1197_v22 = vmul.f32 %v2040_v4, %v1196_v47  ;;  %vm1202_vm1 = vweird.f32 %v2040_v4  ;;  %v3567_v9 = vld [vmem:[#allocation26_spill] sm:$0xff] }
 0x1e0   :  { %v1621_v42 = vsub.f32 1.5, %v1557_v28  ;;  %v1541_v33 = vmul.f32 %v1477_v43, %v1034_v18  ;;  %v1354_v13 = vsel %vm1353_vm0, %v2034_v6, %v1350_v7  ;;  %v1040_v10 = vmul.f32 %v3318_v60, %v1039_v25  ;;  %v584_v28 = vpop.xlane.xlu0 %583  ;;  %v678_v43 = vpop.xlane.xlu2 %677 }
 0x1e1   :  { %v1717_v56 = vmul.f32 %v1653_v61, %v3566_v49  ;;  %v1509_v16 = vmul.f32 %v3310_v17, %v1354_v13  ;;  %v879_v32 = vsub.f32 1.5, %v878_v14  ;;  %v1198_v58 = vmul.f32 0.5, %v1197_v22 }
 0x1e2   :  { %v1685_v39 = vmul.f32 %v1621_v42, %v1194_v34  ;;  %v1605_v23 = vsub.f32 1.5, %v1541_v33  ;;  %v1044_v36 = vsel %vm1043_vm2, %v3318_v60, %v1040_v10  ;;  %2041 = vrsqrt.f32 %v3334_v0  ;;  %v3571_v33 = vld [vmem:[#allocation31_spill] sm:$0xff] }
 0x1e3   :  { %1781 = vst [vmem:[#allocation2 + $0x60] sm:$0xff] %v1717_v56  ;;  %v1573_v6 = vmul.f32 %v1509_v16, %v1354_v13  ;;  %v1478_v54 = vmul.f32 %v3314_v19, %v1044_v36  ;;  %v880_v17 = vmul.f32 %v3331_v29, %v879_v32  ;;  %v1199_v15 = vsub.f32 1.5, %v1198_v58 }
 0x1e4   :  { %v1749_v3 = vmul.f32 %v1685_v39, %v3567_v9  ;;  %v1669_v21 = vmul.f32 %v1605_v23, %v1034_v18  ;;  %vm1201_vm4 = vweird.f32 %v3316_v20  ;;  %v1430_v60 = vmul.f32 0.5, %v3316_v20  ;;  %v616_v20 = vpop.xlane.xlu1 %615 }
 0x1e5   :  { %v1637_v8 = vsub.f32 1.5, %v1573_v6  ;;  %v1542_v27 = vmul.f32 %v1478_v54, %v1044_v36  ;;  %v884_v44 = vsel %vm883_vm3, %v3331_v29, %v880_v17  ;;  %v1200_v19 = vmul.f32 %v2040_v4, %v1199_v15  ;;  %vm1203_vm5 = vmor %vm1201_vm4, %vm1202_vm1 }
 0x1e6   :  { %1813 = vst [vmem:[#allocation2 + $0x160] sm:$0xff] %v1749_v3  ;;  %v1733_v41 = vmul.f32 %v1669_v21, %v3568_v48  ;;  %v1462_v5 = vmul.f32 %v3323_v59, %v884_v44  ;;  %v3380_v2 = vmax.f32 %v646_v51, 1e-24  ;;  %v3382_v63 = vmax.f32 %v614_v31, 1e-24  ;;  %v3572_v31 = vld [vmem:[#allocation30_spill] sm:$0xff] }
 0x1e7   :  { %v1701_v52 = vmul.f32 %v1637_v8, %v1354_v13  ;;  %v1606_v24 = vsub.f32 1.5, %v1542_v27  ;;  %v1204_v46 = vsel %vm1203_vm5, %v2040_v4, %v1200_v19  ;;  %v3385_v53 = vmax.f32 %v648_v40, 1e-24  ;;  %v3570_v4 = vld [vmem:[#allocation29_spill] sm:$0xff] }
 0x1e8   :  { %v2042_v34 = vpop.eup %2041  ;;  %1797 = vst [vmem:[#allocation2 + $0xe0] sm:$0xff] %v1733_v41  ;;  %v1526_v30 = vmul.f32 %v1462_v5, %v884_v44  ;;  %v1494_v29 = vmul.f32 %v1430_v60, %v1204_v46  ;;  %2043 = vrsqrt.f32 %v3380_v2  ;;  %vm891_vm6 = vweird.f32 %v3334_v0 }
 0x1e9   :  { %v1765_v59 = vmul.f32 %v1701_v52, %v3569_v57  ;;  %v1670_v50 = vmul.f32 %v1606_v24, %v1044_v36  ;;  %v886_v38 = vmul.f32 %v2042_v34, %v3334_v0  ;;  %2045 = vrsqrt.f32 %v3382_v63  ;;  %v680_v24 = vpop.xlane.xlu0 %679 }
 0x1ea   :  { %v1590_v26 = vsub.f32 1.5, %v1526_v30  ;;  %v1558_v18 = vmul.f32 %v1494_v29, %v1204_v46  ;;  %2047 = vrsqrt.f32 %v3385_v53  ;;  %v1399_v14 = vmul.f32 0.5, %v3334_v0 }
 0x1eb   :  { %1829 = vst [vmem:[#allocation2 + $0x1e0] sm:$0xff] %v1765_v59  ;;  %v1734_v47 = vmul.f32 %v1670_v50, %v3570_v4  ;;  %v887_v51 = vmul.f32 %v2042_v34, %v886_v38  ;;  %v3394_v22 = vmax.f32 %v616_v20, 1e-24  ;;  %v3397_v49 = vmax.f32 %v584_v28, 1e-24 }
 0x1ec   :  { %v1654_v7 = vmul.f32 %v1590_v26, %v884_v44  ;;  %v1622_v25 = vsub.f32 1.5, %v1558_v18  ;;  %v3399_v56 = vmax.f32 %v678_v43, 1e-24  ;;  %vm892_vm7 = vweird.f32 %v2042_v34  ;;  %v676_v17 = vpop.xlane.xlu1 %675 }
 0x1ed   :  { %1798 = vst [vmem:[#allocation2 + $0xe8] sm:$0xff] %v1734_v47  ;;  %v888_v61 = vmul.f32 0.5, %v887_v51  ;;  %2049 = vrsqrt.f32 %v3394_v22  ;;  %vm1211_vm8 = vweird.f32 %v3380_v2  ;;  %v1431_v39 = vmul.f32 0.5, %v3380_v2  ;;  %vm893_vm10 = vmor %vm891_vm6, %vm892_vm7 }
 0x1ee   :  { %v2044_v42 = vpop.eup %2043  ;;  %v1718_v13 = vmul.f32 %v1654_v7, %v3571_v33  ;;  %v1686_v10 = vmul.f32 %v1622_v25, %v1204_v46  ;;  %2051 = vrsqrt.f32 %v3397_v49  ;;  %vm1051_vm9 = vweird.f32 %v3382_v63 }
 0x1ef   :  { %v889_v16 = vsub.f32 1.5, %v888_v61  ;;  %v1206_v32 = vmul.f32 %v2044_v42, %v3380_v2  ;;  %v2046_v58 = vpop.eup %2045  ;;  %v1415_v54 = vmul.f32 0.5, %v3382_v63  ;;  %vm1212_vm11 = vweird.f32 %v2044_v42 }
 0x1f0   :  { %1782 = vst [vmem:[#allocation2 + $0x68] sm:$0xff] %v1718_v13  ;;  %v1750_v40 = vmul.f32 %v1686_v10, %v3572_v31  ;;  %v1046_v6 = vmul.f32 %v2046_v58, %v3382_v63  ;;  %v2048_v15 = vpop.eup %2047  ;;  %v1432_v9 = vmul.f32 0.5, %v3385_v53  ;;  %v3415_v3 = vmul.f32 0.5, %v3394_v22  ;;  %vm1213_vm1 = vmor %vm1211_vm8, %vm1212_vm11  ;;  %v3573_v10 = vld [vmem:[#allocation32_spill] sm:$0xff] }
 0x1f1   :  { %v890_v23 = vmul.f32 %v2042_v34, %v889_v16  ;;  %v1207_v36 = vmul.f32 %v2044_v42, %v1206_v32  ;;  %2053 = vrsqrt.f32 %v3399_v56  ;;  %v1216_v27 = vmul.f32 %v2048_v15, %v3385_v53 }
 0x1f2   :  { %1814 = vst [vmem:[#allocation2 + $0x168] sm:$0xff] %v1750_v40  ;;  %v1047_v8 = vmul.f32 %v2046_v58, %v1046_v6  ;;  %vm1221_vm12 = vweird.f32 %v3385_v53  ;;  %vm1052_vm13 = vweird.f32 %v2046_v58  ;;  %v3421_v0 = vmul.f32 0.5, %v3397_v49 }
 0x1f3   :  { %v894_v21 = vsel %vm893_vm10, %v2042_v34, %v890_v23  ;;  %v1208_v60 = vmul.f32 0.5, %v1207_v36  ;;  %v3423_v19 = vmax.f32 %v676_v17, 1e-24  ;;  %v2050_v48 = vpop.eup %2049  ;;  %v1217_v52 = vmul.f32 %v2048_v15, %v1216_v27  ;;  %vm1053_vm3 = vmor %vm1051_vm9, %vm1052_vm13 }
 0x1f4   :  { %v1463_v44 = vmul.f32 %v1399_v14, %v894_v21  ;;  %v1048_v5 = vmul.f32 0.5, %v1047_v8  ;;  %vm1222_vm14 = vweird.f32 %v2048_v15  ;;  %v2052_v46 = vpop.eup %2051  ;;  %v1056_v34 = vmul.f32 %v2050_v48, %v3394_v22 }
 0x1f5   :  { %v1209_v41 = vsub.f32 1.5, %v1208_v60  ;;  %vm1061_vm15 = vweird.f32 %v3394_v22  ;;  %v3428_v30 = vmul.f32 0.5, %v3399_v56  ;;  %2055 = vrsqrt.f32 %v3423_v19  ;;  %vm1223_vm6 = vmor %vm1221_vm12, %vm1222_vm14 }
 0x1f6   :  { %v1527_v20 = vmul.f32 %v1463_v44, %v894_v21  ;;  %v1049_v57 = vsub.f32 1.5, %v1048_v5  ;;  %v1218_v59 = vmul.f32 0.5, %v1217_v52  ;;  %v896_v50 = vmul.f32 %v2052_v46, %v3397_v49 }
 0x1f7   :  { %v1210_v29 = vmul.f32 %v2044_v42, %v1209_v41  ;;  %vm901_vm0 = vweird.f32 %v3397_v49  ;;  %v3433_v38 = vpop.eup %2053  ;;  %v1057_v18 = vmul.f32 %v2050_v48, %v1056_v34  ;;  %vm1062_vm2 = vweird.f32 %v2050_v48 }
 0x1f8   :  { %v1591_v26 = vsub.f32 1.5, %v1527_v20  ;;  %v3438_v4 = vmax.f32 %v680_v24, 1e-24  ;;  %v1050_v51 = vmul.f32 %v2046_v58, %v1049_v57  ;;  %v1219_v28 = vsub.f32 1.5, %v1218_v59  ;;  %vm1063_vm7 = vmor %vm1061_vm15, %vm1062_vm2 }
 0x1f9   :  { %v1214_v47 = vsel %vm1213_vm1, %v2044_v42, %v1210_v29  ;;  %v897_v43 = vmul.f32 %v2052_v46, %v896_v50  ;;  %v1058_v61 = vmul.f32 0.5, %v1057_v18  ;;  %v1366_v14 = vmul.f32 %v3433_v38, %v3399_v56 }
 0x1fa   :  { %v1655_v7 = vmul.f32 %v1591_v26, %v894_v21  ;;  %v1495_v25 = vmul.f32 %v1431_v39, %v1214_v47  ;;  %v1054_v2 = vsel %vm1053_vm3, %v2046_v58, %v1050_v51  ;;  %v1220_v33 = vmul.f32 %v2048_v15, %v1219_v28 }
 0x1fb   :  { %v898_v13 = vmul.f32 0.5, %v897_v43  ;;  %vm902_vm4 = vweird.f32 %v2052_v46  ;;  %vm1371_vm5 = vweird.f32 %v3399_v56  ;;  %v2056_v42 = vpop.eup %2055  ;;  %v1479_v31 = vmul.f32 %v1415_v54, %v1054_v2 }
 0x1fc   :  { %v1719_v16 = vmul.f32 %v1655_v7, %v3573_v10  ;;  %v1559_v32 = vmul.f32 %v1495_v25, %v1214_v47  ;;  %v1059_v63 = vsub.f32 1.5, %v1058_v61  ;;  %v1224_v40 = vsel %vm1223_vm6, %v2048_v15, %v1220_v33  ;;  %vm903_vm9 = vmor %vm901_vm0, %vm902_vm4 }
 0x1fd   :  { %v899_v39 = vsub.f32 1.5, %v898_v13  ;;  %v1367_v23 = vmul.f32 %v3433_v38, %v1366_v14  ;;  %v1356_v58 = vmul.f32 %v2056_v42, %v3423_v19  ;;  %v1543_v6 = vmul.f32 %v1479_v31, %v1054_v2 }
 0x1fe   :  { %1783 = vst [vmem:[#allocation2 + $0x70] sm:$0xff] %v1719_v16  ;;  %v1623_v36 = vsub.f32 1.5, %v1559_v32  ;;  %v1496_v17 = vmul.f32 %v1432_v9, %v1224_v40  ;;  %v1060_v21 = vmul.f32 %v2050_v48, %v1059_v63  ;;  %vm1372_vm8 = vweird.f32 %v3433_v38 }
 0x1ff   :  { %v900_v54 = vmul.f32 %v2052_v46, %v899_v39  ;;  %v1368_v60 = vmul.f32 0.5, %v1367_v23  ;;  %v1357_v53 = vmul.f32 %v2056_v42, %v1356_v58  ;;  %v1607_v8 = vsub.f32 1.5, %v1543_v6  ;;  %vm1373_vm11 = vmor %vm1371_vm5, %vm1372_vm8 }
 0x200   :  { %v1687_v15 = vmul.f32 %v1623_v36, %v1214_v47  ;;  %v1560_v27 = vmul.f32 %v1496_v17, %v1224_v40  ;;  %v1064_v44 = vsel %vm1063_vm7, %v2050_v48, %v1060_v21  ;;  %vm1362_vm10 = vweird.f32 %v2056_v42 }
 0x201   :  { %v1480_v9 = vmul.f32 %v3415_v3, %v1064_v44  ;;  %v904_v41 = vsel %vm903_vm9, %v2052_v46, %v900_v54  ;;  %v1369_v5 = vsub.f32 1.5, %v1368_v60  ;;  %v1358_v52 = vmul.f32 0.5, %v1357_v53 }
 0x202   :  { %v1751_v22 = vmul.f32 %v1687_v15, %v2713_v12  ;;  %v1671_v24 = vmul.f32 %v1607_v8, %v1054_v2  ;;  %v1624_v20 = vsub.f32 1.5, %v1560_v27  ;;  %v1464_v34 = vmul.f32 %v3421_v0, %v904_v41 }
 0x203   :  { %v1544_v29 = vmul.f32 %v1480_v9, %v1064_v44  ;;  %v1370_v57 = vmul.f32 %v3433_v38, %v1369_v5  ;;  %v1359_v59 = vsub.f32 1.5, %v1358_v52  ;;  %2057 = vrsqrt.f32 %v3438_v4 }
 0x204   :  { %1815 = vst [vmem:[#allocation2 + $0x170] sm:$0xff] %v1751_v22  ;;  %v1735_v49 = vmul.f32 %v1671_v24, %v2717_v45  ;;  %v1688_v48 = vmul.f32 %v1624_v20, %v1224_v40  ;;  %v1528_v50 = vmul.f32 %v1464_v34, %v904_v41  ;;  %vm1361_vm12 = vweird.f32 %v3423_v19 }
 0x205   :  { %v1608_v12 = vsub.f32 1.5, %v1544_v29  ;;  %v1374_v3 = vsel %vm1373_vm11, %v3433_v38, %v1370_v57  ;;  %v1360_v0 = vmul.f32 %v2056_v42, %v1359_v59  ;;  %vm1363_vm13 = vmor %vm1361_vm12, %vm1362_vm10  ;;  %v1446_v18 = vmul.f32 0.5, %v3423_v19 }
 0x206   :  { %1799 = vst [vmem:[#allocation2 + $0xf0] sm:$0xff] %v1735_v49  ;;  %v1752_v46 = vmul.f32 %v1688_v48, %v2854_v35  ;;  %v1592_v26 = vsub.f32 1.5, %v1528_v50  ;;  %v1511_v45 = vmul.f32 %v3428_v30, %v1374_v3  ;;  %vm1381_vm15 = vweird.f32 %v3438_v4 }
 0x207   :  { %v1672_v56 = vmul.f32 %v1608_v12, %v1064_v44  ;;  %v1364_v47 = vsel %vm1363_vm13, %v2056_v42, %v1360_v0  ;;  %v1448_v16 = vmul.f32 0.5, %v3438_v4 }
 0x208   :  { %1816 = vst [vmem:[#allocation2 + $0x178] sm:$0xff] %v1752_v46  ;;  %v1656_v51 = vmul.f32 %v1592_v26, %v904_v41  ;;  %v1575_v28 = vmul.f32 %v1511_v45, %v1374_v3  ;;  %v1510_v43 = vmul.f32 %v1446_v18, %v1364_v47 }
 0x209   :  { %v1736_v38 = vmul.f32 %v1672_v56, %v2863_v55  ;;  %v2058_v7 = vpop.eup %2057 }
 0x20a   :  { %v1720_v25 = vmul.f32 %v1656_v51, %v2878_v37  ;;  %v1639_v61 = vsub.f32 1.5, %v1575_v28  ;;  %v1574_v35 = vmul.f32 %v1510_v43, %v1364_v47  ;;  %v1376_v30 = vmul.f32 %v2058_v7, %v3438_v4 }
 0x20b   :  { %1800 = vst [vmem:[#allocation2 + $0xf8] sm:$0xff] %v1736_v38  ;;  %vm1382_vm14 = vweird.f32 %v2058_v7 }
 0x20c   :  { %1784 = vst [vmem:[#allocation2 + $0x78] sm:$0xff] %v1720_v25  ;;  %v1703_v14 = vmul.f32 %v1639_v61, %v1374_v3  ;;  %v1638_v2 = vsub.f32 1.5, %v1574_v35  ;;  %v1377_v19 = vmul.f32 %v2058_v7, %v1376_v30  ;;  %vm1383_vm0 = vmor %vm1381_vm15, %vm1382_vm14 }
 0x20e   :  { %v1767_v33 = vmul.f32 %v1703_v14, %v2909_v62  ;;  %v1702_v13 = vmul.f32 %v1638_v2, %v1364_v47  ;;  %v1378_v42 = vmul.f32 0.5, %v1377_v19 }
 0x210   :  { %1831 = vst [vmem:[#allocation2 + $0x1f0] sm:$0xff] %v1767_v33  ;;  %v1766_v10 = vmul.f32 %v1702_v13, %v2808_v11  ;;  %v1379_v55 = vsub.f32 1.5, %v1378_v42 }
 0x212   :  { %1830 = vst [vmem:[#allocation2 + $0x1e8] sm:$0xff] %v1766_v10  ;;  %v1380_v37 = vmul.f32 %v2058_v7, %v1379_v55 }
 0x214   :  { %v1384_v32 = vsel %vm1383_vm0, %v2058_v7, %v1380_v37 }
 0x215   :  { %v1512_v31 = vmul.f32 %v1448_v16, %v1384_v32 }
 0x217   :  { %v1576_v63 = vmul.f32 %v1512_v31, %v1384_v32 }
 0x219   :  { %v1640_v40 = vsub.f32 1.5, %v1576_v63 }
 0x21b   :  { %v1704_v11 = vmul.f32 %v1640_v40, %v1384_v32 }
 0x21d   :  { %v1768_v62 = vmul.f32 %v1704_v11, %v2918_v1 }
 0x21f   :  { %1832 = vst [vmem:[#allocation2 + $0x1f8] sm:$0xff] %v1768_v62 }
 0x220   :  { %1845 = dma.vmem_to_hbm [thread:$0]  %s1838_s11, 8192, %s1840_s14, [#allocation3], %s2087_s15, %s2087_s15, %s2088_s16  }
 0x221   :  { %2084 = dma.done.wait [#allocation3], 8192  }
 0x222   :  { %2085 = vsyncadd [#allocation3], 4294959104 }
 0x223   :  { %1850 = vsyncpa [#allocation3], 1 }

// kernel: tpu_custom_call.1
= control target key start
LH: loop header
LB: loop body
LE: loop exit
PB: predicated region body
PF: predicated region fallthrough
CT: control target
= control target key end

     0   :  { %vm87_vm0 = vcmask 261120   ;;  %s3486_s0 = inlined_call_operand.vmem [shape: f32[512,32], index: 0, kind: input, shape index: {}]   ;;  %s3487_s1 = inlined_call_operand.vmem [shape: f32[32,128], index: 1, kind: input, shape index: {}]   ;;  %s3488_s2 = inlined_call_operand.vmem [shape: f32[1,128], index: 2, kind: input, shape index: {}]   ;;  %s3489_s3 = inlined_call_operand.hbm [shape: f32[512,128], index: 3, kind: output, shape index: {}]  }
   0x1   :  { %v82_v0 = vld [vmem:[%s3487_s1 + $0x18] sm:$0xff]  ;;  %v81_v1 = vld [vmem:[%s3487_s1 + $0x10] sm:$0xff]  ;;  %v80_v2 = vld [vmem:[%s3487_s1 + $0x8] sm:$0xff] }
   0x2   :  { %292 = vmatpush.msra.mxu0 %v82_v0  ;;  %1915 = vmatpush.msra.mxu1 %v82_v0  ;;  %v79_v3 = vld [vmem:[%s3487_s1] sm:$0xff] }
   0x3   :  { %1916 = vmatpush.msra.mxu2 %v82_v0  ;;  %1917 = vmatpush.msra.mxu3 %v82_v0  ;;  %v15_v4 = vld [vmem:[%s3486_s0] sm:$0xff] }
   0x4   :  { %293 = vmatpush.msra.mxu0 %v81_v1  ;;  %1918 = vmatpush.msra.mxu1 %v81_v1  ;;  %v31_v5 = vld [vmem:[%s3486_s0 + $0x80] sm:$0xff] }
   0x5   :  { %1919 = vmatpush.msra.mxu2 %v81_v1  ;;  %1920 = vmatpush.msra.mxu3 %v81_v1  ;;  %v47_v6 = vld [vmem:[%s3486_s0 + $0x100] sm:$0xff] }
   0x6   :  { %294 = vmatpush.msra.mxu0 %v80_v2  ;;  %1921 = vmatpush.msra.mxu1 %v80_v2  ;;  %v63_v7 = vld [vmem:[%s3486_s0 + $0x180] sm:$0xff] }
   0x7   :  { %1922 = vmatpush.msra.mxu2 %v80_v2  ;;  %1923 = vmatpush.msra.mxu3 %v80_v2 }
   0x8   :  { %295 = vmatpush.msra.mxu0 %v79_v3  ;;  %1924 = vmatpush.msra.mxu1 %v79_v3 }
   0x9   :  { %8 = vsyncpa [#allocation3], 0  ;;  %1925 = vmatpush.msra.mxu2 %v79_v3  ;;  %1926 = vmatpush.msra.mxu3 %v79_v3  ;;  %v16_v8 = vld [vmem:[%s3486_s0 + $0x8] sm:$0xff]  ;;  %v17_v12 = vld [vmem:[%s3486_s0 + $0x10] sm:$0xff]  ;;  %s1839_s14 = sshll.u32 %s3489_s3, 4  ;;  %s2087_s15 = smov 128   ;;  %s1840_s14 = int_to_ptr.hbm [resolvable:$true] %s1839_s14 }
   0xa   :  { %1851 = vmatmul.msk.f32.vlgmr.msra.gmra.mxu0 %vm87_vm0, %v15_v4  ;;  %1867 = vmatmul.msk.f32.vlgmr.msra.gmra.mxu1 %vm87_vm0, %v31_v5  ;;  %v32_v9 = vld [vmem:[%s3486_s0 + $0x88] sm:$0xff]  ;;  %v33_v13 = vld [vmem:[%s3486_s0 + $0x90] sm:$0xff]  ;;  %v18_v16 = vld [vmem:[%s3486_s0 + $0x18] sm:$0xff]  ;;  %s2088_s16 = smov 8  }
   0xb   :  { %1883 = vmatmul.msk.f32.vlgmr.msra.gmra.mxu2 %vm87_vm0, %v47_v6  ;;  %1899 = vmatmul.msk.f32.vlgmr.msra.gmra.mxu3 %vm87_vm0, %v63_v7  ;;  %v48_v10 = vld [vmem:[%s3486_s0 + $0x108] sm:$0xff]  ;;  %v49_v14 = vld [vmem:[%s3486_s0 + $0x110] sm:$0xff]  ;;  %v34_v17 = vld [vmem:[%s3486_s0 + $0x98] sm:$0xff] }
   0xc   :  { %v64_v11 = vld [vmem:[%s3486_s0 + $0x188] sm:$0xff]  ;;  %v65_v15 = vld [vmem:[%s3486_s0 + $0x190] sm:$0xff]  ;;  %v50_v18 = vld [vmem:[%s3486_s0 + $0x118] sm:$0xff] }
   0xd   :  { %v66_v19 = vld [vmem:[%s3486_s0 + $0x198] sm:$0xff]  ;;  %v19_v20 = vld [vmem:[%s3486_s0 + $0x20] sm:$0xff]  ;;  %v20_v24 = vld [vmem:[%s3486_s0 + $0x28] sm:$0xff] }
   0xe   :  { %v35_v21 = vld [vmem:[%s3486_s0 + $0xa0] sm:$0xff]  ;;  %v36_v25 = vld [vmem:[%s3486_s0 + $0xa8] sm:$0xff]  ;;  %v21_v28 = vld [vmem:[%s3486_s0 + $0x30] sm:$0xff] }
   0xf   :  { %v51_v22 = vld [vmem:[%s3486_s0 + $0x120] sm:$0xff]  ;;  %v52_v26 = vld [vmem:[%s3486_s0 + $0x128] sm:$0xff]  ;;  %v37_v29 = vld [vmem:[%s3486_s0 + $0xb0] sm:$0xff] }
  0x10   :  { %v67_v23 = vld [vmem:[%s3486_s0 + $0x1a0] sm:$0xff]  ;;  %v68_v27 = vld [vmem:[%s3486_s0 + $0x1a8] sm:$0xff]  ;;  %v53_v30 = vld [vmem:[%s3486_s0 + $0x130] sm:$0xff] }
  0x11   :  { %v69_v31 = vld [vmem:[%s3486_s0 + $0x1b0] sm:$0xff]  ;;  %v22_v32 = vld [vmem:[%s3486_s0 + $0x38] sm:$0xff]  ;;  %v23_v36 = vld [vmem:[%s3486_s0 + $0x40] sm:$0xff] }
  0x12   :  { %1852 = vmatmul.msk.f32.gmra.mxu0 %vm87_vm0, %v16_v8  ;;  %1868 = vmatmul.msk.f32.gmra.mxu1 %vm87_vm0, %v32_v9  ;;  %v38_v33 = vld [vmem:[%s3486_s0 + $0xb8] sm:$0xff]  ;;  %v39_v37 = vld [vmem:[%s3486_s0 + $0xc0] sm:$0xff]  ;;  %v24_v40 = vld [vmem:[%s3486_s0 + $0x48] sm:$0xff] }
  0x13   :  { %1884 = vmatmul.msk.f32.gmra.mxu2 %vm87_vm0, %v48_v10  ;;  %1900 = vmatmul.msk.f32.gmra.mxu3 %vm87_vm0, %v64_v11  ;;  %v54_v34 = vld [vmem:[%s3486_s0 + $0x138] sm:$0xff]  ;;  %v55_v38 = vld [vmem:[%s3486_s0 + $0x140] sm:$0xff]  ;;  %v40_v41 = vld [vmem:[%s3486_s0 + $0xc8] sm:$0xff] }
  0x14   :  { %v70_v35 = vld [vmem:[%s3486_s0 + $0x1b8] sm:$0xff]  ;;  %v71_v39 = vld [vmem:[%s3486_s0 + $0x1c0] sm:$0xff]  ;;  %v56_v42 = vld [vmem:[%s3486_s0 + $0x148] sm:$0xff] }
  0x15   :  { %v72_v43 = vld [vmem:[%s3486_s0 + $0x1c8] sm:$0xff]  ;;  %v25_v44 = vld [vmem:[%s3486_s0 + $0x50] sm:$0xff]  ;;  %v26_v48 = vld [vmem:[%s3486_s0 + $0x58] sm:$0xff] }
  0x16   :  { %v41_v45 = vld [vmem:[%s3486_s0 + $0xd0] sm:$0xff]  ;;  %v42_v49 = vld [vmem:[%s3486_s0 + $0xd8] sm:$0xff]  ;;  %v27_v52 = vld [vmem:[%s3486_s0 + $0x60] sm:$0xff] }
  0x17   :  { %v57_v46 = vld [vmem:[%s3486_s0 + $0x150] sm:$0xff]  ;;  %v58_v50 = vld [vmem:[%s3486_s0 + $0x158] sm:$0xff]  ;;  %v59_v53 = vld [vmem:[%s3486_s0 + $0x160] sm:$0xff] }
  0x18   :  { %v73_v47 = vld [vmem:[%s3486_s0 + $0x1d0] sm:$0xff]  ;;  %v74_v51 = vld [vmem:[%s3486_s0 + $0x1d8] sm:$0xff]  ;;  %v75_v54 = vld [vmem:[%s3486_s0 + $0x1e0] sm:$0xff] }
  0x19   :  { %v43_v55 = vld [vmem:[%s3486_s0 + $0xe0] sm:$0xff]  ;;  %v60_v56 = vld [vmem:[%s3486_s0 + $0x168] sm:$0xff]  ;;  %v61_v59 = vld [vmem:[%s3486_s0 + $0x170] sm:$0xff] }
  0x1a   :  { %1853 = vmatmul.msk.f32.gmra.mxu0 %vm87_vm0, %v17_v12  ;;  %1869 = vmatmul.msk.f32.gmra.mxu1 %vm87_vm0, %v33_v13  ;;  %v28_v57 = vld [vmem:[%s3486_s0 + $0x68] sm:$0xff]  ;;  %v29_v61 = vld [vmem:[%s3486_s0 + $0x70] sm:$0xff]  ;;  %v62_v63 = vld [vmem:[%s3486_s0 + $0x178] sm:$0xff] }
  0x1b   :  { %1885 = vmatmul.msk.f32.gmra.mxu2 %vm87_vm0, %v49_v14  ;;  %1901 = vmatmul.msk.f32.gmra.mxu3 %vm87_vm0, %v65_v15  ;;  %v44_v58 = vld [vmem:[%s3486_s0 + $0xe8] sm:$0xff]  ;;  %v45_v62 = vld [vmem:[%s3486_s0 + $0xf0] sm:$0xff]  ;;  %v2367_v1 = vld [vmem:[%s3488_s2] ss:$0 sm:$0xff] }
  0x1c   :  { %v76_v60 = vld [vmem:[%s3486_s0 + $0x1e8] sm:$0xff]  ;;  %v77_v0 = vld [vmem:[%s3486_s0 + $0x1f0] sm:$0xff]  ;;  %v46_v4 = vld [vmem:[%s3486_s0 + $0xf8] sm:$0xff] }
  0x1d   :  { %v30_v9 = vld [vmem:[%s3486_s0 + $0x78] sm:$0xff] }
  0x1e   :  { %v78_v10 = vld [vmem:[%s3486_s0 + $0x1f8] sm:$0xff] }
  0x22   :  { %1854 = vmatmul.msk.f32.gmra.mxu0 %vm87_vm0, %v18_v16  ;;  %1870 = vmatmul.msk.f32.gmra.mxu1 %vm87_vm0, %v34_v17 }
  0x23   :  { %1886 = vmatmul.msk.f32.gmra.mxu2 %vm87_vm0, %v50_v18  ;;  %1902 = vmatmul.msk.f32.gmra.mxu3 %vm87_vm0, %v66_v19 }
  0x2a   :  { %1855 = vmatmul.msk.f32.gmra.mxu0 %vm87_vm0, %v19_v20  ;;  %1871 = vmatmul.msk.f32.gmra.mxu1 %vm87_vm0, %v35_v21 }
  0x2b   :  { %1887 = vmatmul.msk.f32.gmra.mxu2 %vm87_vm0, %v51_v22  ;;  %1903 = vmatmul.msk.f32.gmra.mxu3 %vm87_vm0, %v67_v23 }
  0x32   :  { %1856 = vmatmul.msk.f32.gmra.mxu0 %vm87_vm0, %v20_v24  ;;  %1872 = vmatmul.msk.f32.gmra.mxu1 %vm87_vm0, %v36_v25 }
  0x33   :  { %1888 = vmatmul.msk.f32.gmra.mxu2 %vm87_vm0, %v52_v26  ;;  %1904 = vmatmul.msk.f32.gmra.mxu3 %vm87_vm0, %v68_v27 }
  0x3a   :  { %1857 = vmatmul.msk.f32.gmra.mxu0 %vm87_vm0, %v21_v28  ;;  %1873 = vmatmul.msk.f32.gmra.mxu1 %vm87_vm0, %v37_v29 }
  0x3b   :  { %1889 = vmatmul.msk.f32.gmra.mxu2 %vm87_vm0, %v53_v30  ;;  %1905 = vmatmul.msk.f32.gmra.mxu3 %vm87_vm0, %v69_v31 }
  0x42   :  { %1858 = vmatmul.msk.f32.gmra.mxu0 %vm87_vm0, %v22_v32  ;;  %1874 = vmatmul.msk.f32.gmra.mxu1 %vm87_vm0, %v38_v33 }
  0x43   :  { %1890 = vmatmul.msk.f32.gmra.mxu2 %vm87_vm0, %v54_v34  ;;  %1906 = vmatmul.msk.f32.gmra.mxu3 %vm87_vm0, %v70_v35 }
  0x4a   :  { %1859 = vmatmul.msk.f32.gmra.mxu0 %vm87_vm0, %v23_v36  ;;  %1875 = vmatmul.msk.f32.gmra.mxu1 %vm87_vm0, %v39_v37 }
  0x4b   :  { %1891 = vmatmul.msk.f32.gmra.mxu2 %vm87_vm0, %v55_v38  ;;  %1907 = vmatmul.msk.f32.gmra.mxu3 %vm87_vm0, %v71_v39 }
  0x52   :  { %1860 = vmatmul.msk.f32.gmra.mxu0 %vm87_vm0, %v24_v40  ;;  %1876 = vmatmul.msk.f32.gmra.mxu1 %vm87_vm0, %v40_v41 }
  0x53   :  { %1892 = vmatmul.msk.f32.gmra.mxu2 %vm87_vm0, %v56_v42  ;;  %1908 = vmatmul.msk.f32.gmra.mxu3 %vm87_vm0, %v72_v43 }
  0x5a   :  { %1861 = vmatmul.msk.f32.gmra.mxu0 %vm87_vm0, %v25_v44  ;;  %1877 = vmatmul.msk.f32.gmra.mxu1 %vm87_vm0, %v41_v45 }
  0x5b   :  { %1893 = vmatmul.msk.f32.gmra.mxu2 %vm87_vm0, %v57_v46  ;;  %1909 = vmatmul.msk.f32.gmra.mxu3 %vm87_vm0, %v73_v47 }
  0x62   :  { %1862 = vmatmul.msk.f32.gmra.mxu0 %vm87_vm0, %v26_v48  ;;  %1878 = vmatmul.msk.f32.gmra.mxu1 %vm87_vm0, %v42_v49 }
  0x63   :  { %1894 = vmatmul.msk.f32.gmra.mxu2 %vm87_vm0, %v58_v50  ;;  %1910 = vmatmul.msk.f32.gmra.mxu3 %vm87_vm0, %v74_v51 }
  0x6a   :  { %1863 = vmatmul.msk.f32.gmra.mxu0 %vm87_vm0, %v27_v52  ;;  %1879 = vmatmul.msk.f32.gmra.mxu1 %vm87_vm0, %v43_v55 }
  0x6b   :  { %1895 = vmatmul.msk.f32.gmra.mxu2 %vm87_vm0, %v59_v53  ;;  %1911 = vmatmul.msk.f32.gmra.mxu3 %vm87_vm0, %v75_v54 }
  0x72   :  { %1864 = vmatmul.msk.f32.gmra.mxu0 %vm87_vm0, %v28_v57  ;;  %1880 = vmatmul.msk.f32.gmra.mxu1 %vm87_vm0, %v44_v58 }
  0x73   :  { %1896 = vmatmul.msk.f32.gmra.mxu2 %vm87_vm0, %v60_v56  ;;  %1912 = vmatmul.msk.f32.gmra.mxu3 %vm87_vm0, %v76_v60 }
  0x7a   :  { %1865 = vmatmul.msk.f32.gmra.mxu0 %vm87_vm0, %v29_v61  ;;  %1881 = vmatmul.msk.f32.gmra.mxu1 %vm87_vm0, %v45_v62 }
  0x7b   :  { %1897 = vmatmul.msk.f32.gmra.mxu2 %vm87_vm0, %v61_v59  ;;  %1913 = vmatmul.msk.f32.gmra.mxu3 %vm87_vm0, %v77_v0 }
  0x82   :  { %1882 = vmatmul.msk.f32.gmra.mxu1 %vm87_vm0, %v46_v4  ;;  %1866 = vmatmul.msk.f32.gmra.mxu0 %vm87_vm0, %v30_v9 }
  0x83   :  { %1898 = vmatmul.msk.f32.gmra.mxu2 %vm87_vm0, %v62_v63  ;;  %1914 = vmatmul.msk.f32.gmra.mxu3 %vm87_vm0, %v78_v10 }
  0x87   :  { %v297_v2 = vpop.f32.mrf.mxu0  ;;  %v345_v3 = vpop.f32.mrf.mxu1 }
  0x88   :  { %v2374_v5 = vadd.f32 %v2367_v1, %v297_v2  ;;  %v2377_v6 = vadd.f32 %v2367_v1, %v345_v3 }
  0x8a   :  { %v505_v7 = vmul.f32 %v2377_v6, %v2377_v6  ;;  %v489_v8 = vmul.f32 %v2374_v5, %v2374_v5 }
  0x8c   :  { %585 = vadd.xlane.f32.xlu1 %v505_v7  ;;  %553 = vadd.xlane.f32.xlu0 %v489_v8 }
  0x8e   :  { %v393_v11 = vpop.f32.mrf.mxu2  ;;  %v441_v12 = vpop.f32.mrf.mxu3 }
  0x8f   :  { %v2393_v13 = vadd.f32 %v2367_v1, %v393_v11  ;;  %v2396_v14 = vadd.f32 %v2367_v1, %v441_v12  ;;  %v300_v15 = vpop.f32.mrf.mxu0  ;;  %v348_v16 = vpop.f32.mrf.mxu1 }
  0x90   :  { %v2403_v19 = vadd.f32 %v2367_v1, %v348_v16  ;;  %v2406_v20 = vadd.f32 %v2367_v1, %v300_v15 }
  0x91   :  { %v521_v17 = vmul.f32 %v2393_v13, %v2393_v13  ;;  %v537_v18 = vmul.f32 %v2396_v14, %v2396_v14 }
  0x92   :  { %v506_v24 = vmul.f32 %v2403_v19, %v2403_v19  ;;  %v490_v26 = vmul.f32 %v2406_v20, %v2406_v20 }
  0x93   :  { %617 = vadd.xlane.f32.xlu2 %v521_v17 }
  0x94   :  { %649 = vadd.xlane.f32.xlu0 %v537_v18 }
  0x96   :  { %v396_v21 = vpop.f32.mrf.mxu2  ;;  %v444_v22 = vpop.f32.mrf.mxu3 }
  0x97   :  { %v2409_v23 = vadd.f32 %v2367_v1, %v444_v22  ;;  %v303_v25 = vpop.f32.mrf.mxu0  ;;  %v351_v29 = vpop.f32.mrf.mxu1  ;;  %v2421_v30 = vadd.f32 %v2367_v1, %v396_v21 }
  0x98   :  { %v2418_v28 = vadd.f32 %v2367_v1, %v303_v25  ;;  %v2433_v38 = vadd.f32 %v2367_v1, %v351_v29 }
  0x99   :  { %v538_v27 = vmul.f32 %v2409_v23, %v2409_v23  ;;  %v522_v37 = vmul.f32 %v2421_v30, %v2421_v30 }
  0x9a   :  { %v491_v34 = vmul.f32 %v2418_v28, %v2418_v28  ;;  %v507_v43 = vmul.f32 %v2433_v38, %v2433_v38 }
  0x9b   :  { %587 = vadd.xlane.f32.xlu2 %v506_v24  ;;  %651 = vadd.xlane.f32.xlu1 %v538_v27 }
  0x9c   :  { %555 = vadd.xlane.f32.xlu0 %v490_v26 }
  0x9e   :  { %v399_v31 = vpop.f32.mrf.mxu2  ;;  %v447_v32 = vpop.f32.mrf.mxu3 }
  0x9f   :  { %v2424_v33 = vadd.f32 %v2367_v1, %v447_v32  ;;  %v306_v35 = vpop.f32.mrf.mxu0  ;;  %v2436_v39 = vadd.f32 %v2367_v1, %v399_v31  ;;  %v354_v41 = vpop.f32.mrf.mxu1 }
  0xa0   :  { %v2454_v50 = vadd.f32 %v2367_v1, %v306_v35  ;;  %v2469_v58 = vadd.f32 %v2367_v1, %v354_v41 }
  0xa1   :  { %v539_v36 = vmul.f32 %v2424_v33, %v2424_v33  ;;  %v523_v46 = vmul.f32 %v2436_v39, %v2436_v39 }
  0xa2   :  { %v492_v54 = vmul.f32 %v2454_v50, %v2454_v50  ;;  %v508_v63 = vmul.f32 %v2469_v58, %v2469_v58 }
  0xa3   :  { %653 = vadd.xlane.f32.xlu2 %v539_v36  ;;  %557 = vadd.xlane.f32.xlu1 %v491_v34 }
  0xa4   :  { %619 = vadd.xlane.f32.xlu0 %v522_v37 }
  0xa6   :  { %v402_v40 = vpop.f32.mrf.mxu2  ;;  %v450_v47 = vpop.f32.mrf.mxu3 }
  0xa7   :  { %v2439_v42 = vadd.f32 %v2367_v1, %v402_v40  ;;  %v309_v44 = vpop.f32.mrf.mxu0  ;;  %v2451_v49 = vadd.f32 %v2367_v1, %v450_v47  ;;  %v357_v53 = vpop.f32.mrf.mxu1 }
  0xa8   :  { %v2448_v48 = vadd.f32 %v2367_v1, %v309_v44  ;;  %v2463_v56 = vadd.f32 %v2367_v1, %v357_v53 }
  0xa9   :  { %v524_v45 = vmul.f32 %v2439_v42, %v2439_v42  ;;  %v540_v52 = vmul.f32 %v2451_v49, %v2451_v49 }
  0xaa   :  { %v493_v51 = vmul.f32 %v2448_v48, %v2448_v48  ;;  %v509_v60 = vmul.f32 %v2463_v56, %v2463_v56 }
  0xab   :  { %623 = vadd.xlane.f32.xlu2 %v524_v45  ;;  %621 = vadd.xlane.f32.xlu1 %v523_v46 }
  0xac   :  { %589 = vadd.xlane.f32.xlu0 %v507_v43 }
  0xae   :  { %v405_v55 = vpop.f32.mrf.mxu2  ;;  %v453_v59 = vpop.f32.mrf.mxu3 }
  0xaf   :  { %v2466_v57 = vadd.f32 %v2367_v1, %v405_v55  ;;  %v312_v62 = vpop.f32.mrf.mxu0  ;;  %v360_v0 = vpop.f32.mrf.mxu1  ;;  %v2481_v3 = vadd.f32 %v2367_v1, %v453_v59 }
  0xb0   :  { %v2478_v2 = vadd.f32 %v2367_v1, %v312_v62  ;;  %v2484_v4 = vadd.f32 %v2367_v1, %v360_v0 }
  0xb1   :  { %v525_v61 = vmul.f32 %v2466_v57, %v2466_v57  ;;  %v541_v9 = vmul.f32 %v2481_v3, %v2481_v3 }
  0xb2   :  { %v494_v8 = vmul.f32 %v2478_v2, %v2478_v2  ;;  %v510_v10 = vmul.f32 %v2484_v4, %v2484_v4 }
  0xb3   :  { %561 = vadd.xlane.f32.xlu2 %v493_v51  ;;  %559 = vadd.xlane.f32.xlu1 %v492_v54 }
  0xb4   :  { %655 = vadd.xlane.f32.xlu0 %v540_v52 }
  0xb6   :  { %v408_v7 = vpop.f32.mrf.mxu2  ;;  %v456_v11 = vpop.f32.mrf.mxu3 }
  0xb7   :  { %v315_v12 = vpop.f32.mrf.mxu0  ;;  %v2493_v15 = vadd.f32 %v2367_v1, %v408_v7  ;;  %v2496_v16 = vadd.f32 %v2367_v1, %v456_v11  ;;  %v363_v18 = vpop.f32.mrf.mxu1 }
  0xb8   :  { %v2499_v17 = vadd.f32 %v2367_v1, %v315_v12  ;;  %v2508_v27 = vadd.f32 %v2367_v1, %v363_v18 }
  0xb9   :  { %v542_v21 = vmul.f32 %v2496_v16, %v2496_v16  ;;  %v526_v22 = vmul.f32 %v2493_v15, %v2493_v15 }
  0xba   :  { %v495_v24 = vmul.f32 %v2499_v17, %v2499_v17  ;;  %v511_v35 = vmul.f32 %v2508_v27, %v2508_v27 }
  0xbb   :  { %593 = vadd.xlane.f32.xlu2 %v509_v60  ;;  %591 = vadd.xlane.f32.xlu1 %v508_v63 }
  0xbc   :  { %625 = vadd.xlane.f32.xlu0 %v525_v61 }
  0xbe   :  { %v411_v25 = vpop.f32.mrf.mxu2  ;;  %v459_v26 = vpop.f32.mrf.mxu3 }
  0xbf   :  { %v2511_v29 = vadd.f32 %v2367_v1, %v411_v25  ;;  %v2514_v31 = vadd.f32 %v2367_v1, %v459_v26  ;;  %v318_v32 = vpop.f32.mrf.mxu0  ;;  %v366_v37 = vpop.f32.mrf.mxu1 }
  0xc0   :  { %v2523_v41 = vadd.f32 %v2367_v1, %v318_v32  ;;  %v2526_v43 = vadd.f32 %v2367_v1, %v366_v37 }
  0xc1   :  { %v527_v34 = vmul.f32 %v2511_v29, %v2511_v29  ;;  %v543_v36 = vmul.f32 %v2514_v31, %v2514_v31 }
  0xc2   :  { %3518 = vst [vmem:[#allocation5_spill] sm:$0xff] %v2523_v41  ;;  %v512_v46 = vmul.f32 %v2526_v43, %v2526_v43  ;;  %v496_v47 = vmul.f32 %v2523_v41, %v2523_v41 }
  0xc3   :  { %563 = vadd.xlane.f32.xlu2 %v494_v8  ;;  %657 = vadd.xlane.f32.xlu1 %v541_v9  ;;  %3519 = vst [vmem:[#allocation6_spill] sm:$0xff] %v2526_v43 }
  0xc4   :  { %595 = vadd.xlane.f32.xlu0 %v510_v10 }
  0xc6   :  { %v414_v40 = vpop.f32.mrf.mxu2  ;;  %v462_v45 = vpop.f32.mrf.mxu3 }
  0xc7   :  { %v2529_v44 = vadd.f32 %v2367_v1, %v414_v40  ;;  %v321_v52 = vpop.f32.mrf.mxu0  ;;  %v369_v53 = vpop.f32.mrf.mxu1  ;;  %v2541_v59 = vadd.f32 %v2367_v1, %v462_v45 }
  0xc8   :  { %v2538_v55 = vadd.f32 %v2367_v1, %v321_v52  ;;  %v2544_v60 = vadd.f32 %v2367_v1, %v369_v53 }
  0xc9   :  { %3520 = vst [vmem:[#allocation7_spill] sm:$0xff] %v2529_v44  ;;  %v528_v51 = vmul.f32 %v2529_v44, %v2529_v44  ;;  %v544_v62 = vmul.f32 %v2541_v59, %v2541_v59 }
  0xca   :  { %3521 = vst [vmem:[#allocation8_spill] sm:$0xff] %v2538_v55  ;;  %v497_v61 = vmul.f32 %v2538_v55, %v2538_v55  ;;  %v513_v63 = vmul.f32 %v2544_v60, %v2544_v60 }
  0xcb   :  { %659 = vadd.xlane.f32.xlu2 %v542_v21  ;;  %627 = vadd.xlane.f32.xlu1 %v526_v22  ;;  %3522 = vst [vmem:[#allocation9_spill] sm:$0xff] %v2541_v59 }
  0xcc   :  { %565 = vadd.xlane.f32.xlu0 %v495_v24  ;;  %3523 = vst [vmem:[#allocation10_spill] sm:$0xff] %v2544_v60 }
  0xce   :  { %v417_v54 = vpop.f32.mrf.mxu2  ;;  %v465_v0 = vpop.f32.mrf.mxu3 }
  0xcf   :  { %v324_v7 = vpop.f32.mrf.mxu0  ;;  %v372_v8 = vpop.f32.mrf.mxu1  ;;  %v2553_v9 = vadd.f32 %v2367_v1, %v417_v54  ;;  %v2556_v10 = vadd.f32 %v2367_v1, %v465_v0 }
  0xd0   :  { %v2559_v12 = vadd.f32 %v2367_v1, %v324_v7  ;;  %v2568_v25 = vadd.f32 %v2367_v1, %v372_v8 }
  0xd1   :  { %3524 = vst [vmem:[#allocation11_spill] sm:$0xff] %v2553_v9  ;;  %v545_v18 = vmul.f32 %v2556_v10, %v2556_v10  ;;  %v529_v21 = vmul.f32 %v2553_v9, %v2553_v9 }
  0xd2   :  { %3525 = vst [vmem:[#allocation12_spill] sm:$0xff] %v2556_v10  ;;  %v498_v22 = vmul.f32 %v2559_v12, %v2559_v12  ;;  %v514_v40 = vmul.f32 %v2568_v25, %v2568_v25 }
  0xd3   :  { %629 = vadd.xlane.f32.xlu2 %v527_v34  ;;  %597 = vadd.xlane.f32.xlu1 %v511_v35  ;;  %3526 = vst [vmem:[#allocation13_spill] sm:$0xff] %v2559_v12 }
  0xd4   :  { %661 = vadd.xlane.f32.xlu0 %v543_v36  ;;  %3527 = vst [vmem:[#allocation14_spill] sm:$0xff] %v2568_v25 }
  0xd6   :  { %v420_v11 = vpop.f32.mrf.mxu2  ;;  %v468_v24 = vpop.f32.mrf.mxu3 }
  0xd7   :  { %v2571_v26 = vadd.f32 %v2367_v1, %v420_v11  ;;  %v327_v32 = vpop.f32.mrf.mxu0  ;;  %v2574_v35 = vadd.f32 %v2367_v1, %v468_v24  ;;  %v375_v36 = vpop.f32.mrf.mxu1 }
  0xd9   :  { %3528 = vst [vmem:[#allocation15_spill] sm:$0xff] %v2571_v26  ;;  %v530_v37 = vmul.f32 %v2571_v26, %v2571_v26  ;;  %v546_v45 = vmul.f32 %v2574_v35, %v2574_v35 }
  0xda   :  { %3529 = vst [vmem:[#allocation16_spill] sm:$0xff] %v2574_v35 }
  0xdb   :  { %599 = vadd.xlane.f32.xlu2 %v512_v46  ;;  %567 = vadd.xlane.f32.xlu1 %v496_v47  ;;  %v2583_v47 = vadd.f32 %v2367_v1, %v327_v32 }
  0xdc   :  { %631 = vadd.xlane.f32.xlu0 %v528_v51  ;;  %v2586_v51 = vadd.f32 %v2367_v1, %v375_v36 }
  0xdd   :  { %3530 = vst [vmem:[#allocation17_spill] sm:$0xff] %v2583_v47 }
  0xde   :  { %v423_v34 = vpop.f32.mrf.mxu2  ;;  %v471_v46 = vpop.f32.mrf.mxu3  ;;  %3531 = vst [vmem:[#allocation18_spill] sm:$0xff] %v2586_v51 }
  0xdf   :  { %v2589_v53 = vadd.f32 %v2367_v1, %v423_v34  ;;  %v378_v54 = vpop.f32.mrf.mxu1  ;;  %v2601_v8 = vadd.f32 %v2367_v1, %v471_v46 }
  0xe0   :  { %v2604_v11 = vadd.f32 %v2367_v1, %v378_v54 }
  0xe1   :  { %3532 = vst [vmem:[#allocation19_spill] sm:$0xff] %v2589_v53  ;;  %v531_v0 = vmul.f32 %v2589_v53, %v2589_v53 }
  0xe2   :  { %3534 = vst [vmem:[#allocation21_spill] sm:$0xff] %v2601_v8  ;;  %v516_v46 = vmul.f32 %v2604_v11, %v2604_v11 }
  0xe3   :  { %569 = vadd.xlane.f32.xlu2 %v497_v61  ;;  %663 = vadd.xlane.f32.xlu1 %v544_v62  ;;  %v330_v61 = vpop.f32.mrf.mxu0  ;;  %v515_v62 = vmul.f32 %v2586_v51, %v2586_v51  ;;  %3535 = vst [vmem:[#allocation22_spill] sm:$0xff] %v2604_v11 }
  0xe4   :  { %601 = vadd.xlane.f32.xlu0 %v513_v63  ;;  %v499_v63 = vmul.f32 %v2583_v47, %v2583_v47  ;;  %v2598_v7 = vadd.f32 %v2367_v1, %v330_v61 }
  0xe6   :  { %v426_v52 = vpop.f32.mrf.mxu2  ;;  %3533 = vst [vmem:[#allocation20_spill] sm:$0xff] %v2598_v7  ;;  %v500_v36 = vmul.f32 %v2598_v7, %v2598_v7 }
  0xe7   :  { %v2619_v54 = vadd.f32 %v2367_v1, %v426_v52 }
  0xe9   :  { %3536 = vst [vmem:[#allocation23_spill] sm:$0xff] %v2619_v54  ;;  %v532_v52 = vmul.f32 %v2619_v54, %v2619_v54 }
  0xeb   :  { %665 = vadd.xlane.f32.xlu2 %v545_v18  ;;  %633 = vadd.xlane.f32.xlu1 %v529_v21  ;;  %v474_v18 = vpop.f32.mrf.mxu3  ;;  %v381_v21 = vpop.f32.mrf.mxu1 }
  0xec   :  { %571 = vadd.xlane.f32.xlu0 %v498_v22  ;;  %v333_v22 = vpop.f32.mrf.mxu0  ;;  %v2622_v61 = vadd.f32 %v2367_v1, %v474_v18 }
  0xee   :  { %v429_v24 = vpop.f32.mrf.mxu2  ;;  %3537 = vst [vmem:[#allocation24_spill] sm:$0xff] %v2622_v61 }
  0xef   :  { %v2634_v18 = vadd.f32 %v2367_v1, %v429_v24 }
  0xf1   :  { %3539 = vst [vmem:[#allocation26_spill] sm:$0xff] %v2634_v18  ;;  %v533_v54 = vmul.f32 %v2634_v18, %v2634_v18 }
  0xf3   :  { %635 = vadd.xlane.f32.xlu2 %v530_v37  ;;  %603 = vadd.xlane.f32.xlu1 %v514_v40  ;;  %v547_v37 = vmul.f32 %v2601_v8, %v2601_v8 }
  0xf4   :  { %667 = vadd.xlane.f32.xlu0 %v546_v45 }
  0xfb   :  { %605 = vadd.xlane.f32.xlu2 %v515_v62  ;;  %573 = vadd.xlane.f32.xlu1 %v499_v63  ;;  %v2625_v62 = vadd.f32 %v2367_v1, %v333_v22  ;;  %v477_v63 = vpop.f32.mrf.mxu3 }
  0xfc   :  { %637 = vadd.xlane.f32.xlu0 %v531_v0  ;;  %v336_v0 = vpop.f32.mrf.mxu0  ;;  %v2644_v53 = vadd.f32 %v2367_v1, %v477_v63 }
  0xfd   :  { %3538 = vst [vmem:[#allocation25_spill] sm:$0xff] %v2625_v62  ;;  %v501_v7 = vmul.f32 %v2625_v62, %v2625_v62 }
  0xfe   :  { %3541 = vst [vmem:[#allocation28_spill] sm:$0xff] %v2644_v53 }
  0xff   :  { %v586_v32 = vpop.xlane.xlu1 %585  ;;  %v554_v34 = vpop.xlane.xlu0 %553 }
 0x100   :  { %v2610_v40 = vmax.f32 %v586_v32, 1e-24  ;;  %v2612_v45 = vmax.f32 %v554_v34, 1e-24  ;;  %v384_v34 = vpop.f32.mrf.mxu1 }
 0x101   :  { %v2649_v24 = vadd.f32 %v2367_v1, %v384_v34 }
 0x102   :  { %1931 = vrsqrt.f32 %v2610_v40  ;;  %vm911_vm1 = vweird.f32 %v2610_v40  ;;  %vm751_vm2 = vweird.f32 %v2612_v45 }
 0x103   :  { %1933 = vrsqrt.f32 %v2612_v45  ;;  %575 = vadd.xlane.f32.xlu2 %v500_v36  ;;  %669 = vadd.xlane.f32.xlu1 %v547_v37  ;;  %v548_v36 = vmul.f32 %v2622_v61, %v2622_v61  ;;  %v432_v37 = vpop.f32.mrf.mxu2  ;;  %3542 = vst [vmem:[#allocation29_spill] sm:$0xff] %v2649_v24 }
 0x104   :  { %607 = vadd.xlane.f32.xlu0 %v516_v46  ;;  %v2654_v62 = vadd.f32 %v2367_v1, %v432_v37  ;;  %v549_v37 = vmul.f32 %v2644_v53, %v2644_v53  ;;  %v339_v12 = vpop.f32.mrf.mxu0 }
 0x105   :  { %v2704_v59 = vadd.f32 %v2367_v1, %v339_v12 }
 0x106   :  { %v618_v32 = vpop.xlane.xlu2 %617  ;;  %3543 = vst [vmem:[#allocation30_spill] sm:$0xff] %v2654_v62 }
 0x107   :  { %v2627_v11 = vmax.f32 %v618_v32, 1e-24  ;;  %v650_v8 = vpop.xlane.xlu0 %649  ;;  %v2641_v32 = vadd.f32 %v2367_v1, %v381_v21  ;;  %v2657_v21 = vadd.f32 %v2367_v1, %v336_v0  ;;  %v1401_v0 = vmul.f32 0.5, %v2610_v40  ;;  %3545 = vst [vmem:[#allocation32_spill] sm:$0xff] %v2704_v59 }
 0x108   :  { %v1932_v46 = vpop.eup %1931  ;;  %v2636_v22 = vmax.f32 %v650_v8, 1e-24  ;;  %v387_v44 = vpop.f32.mrf.mxu1 }
 0x109   :  { %3540 = vst [vmem:[#allocation27_spill] sm:$0xff] %v2641_v32  ;;  %v1934_v61 = vpop.eup %1933  ;;  %v906_v47 = vmul.f32 %v1932_v46, %v2610_v40  ;;  %1935 = vrsqrt.f32 %v2627_v11  ;;  %v517_v51 = vmul.f32 %v2641_v32, %v2641_v32  ;;  %vm912_vm3 = vweird.f32 %v1932_v46 }
 0x10a   :  { %v746_v8 = vmul.f32 %v1934_v61, %v2612_v45  ;;  %1937 = vrsqrt.f32 %v2636_v22  ;;  %3544 = vst [vmem:[#allocation31_spill] sm:$0xff] %v2657_v21  ;;  %vm752_vm4 = vweird.f32 %v1934_v61  ;;  %vm1071_vm5 = vweird.f32 %v2627_v11  ;;  %vm913_vm6 = vmor %vm911_vm1, %vm912_vm3 }
 0x10b   :  { %v907_v63 = vmul.f32 %v1932_v46, %v906_v47  ;;  %671 = vadd.xlane.f32.xlu2 %v548_v36  ;;  %639 = vadd.xlane.f32.xlu1 %v532_v52  ;;  %v1385_v47 = vmul.f32 0.5, %v2612_v45  ;;  %vm1231_vm7 = vweird.f32 %v2636_v22  ;;  %vm753_vm8 = vmor %vm751_vm2, %vm752_vm4  ;;  %v1433_v55 = vmul.f32 0.5, %v2636_v22 }
 0x10c   :  { %v747_v34 = vmul.f32 %v1934_v61, %v746_v8  ;;  %577 = vadd.xlane.f32.xlu0 %v501_v7  ;;  %v2671_v8 = vmul.f32 %v2649_v24, %v2649_v24  ;;  %v2675_v7 = vmul.f32 %v2657_v21, %v2657_v21  ;;  %v2717_v45 = vadd.f32 %v2367_v1, %v387_v44 }
 0x10d   :  { %v908_v35 = vmul.f32 0.5, %v907_v63  ;;  %v2679_v63 = vmul.f32 %v2654_v62, %v2654_v62  ;;  %v1417_v62 = vmul.f32 0.5, %v2627_v11 }
 0x10e   :  { %v748_v36 = vmul.f32 0.5, %v747_v34  ;;  %v588_v52 = vpop.xlane.xlu2 %587  ;;  %v652_v18 = vpop.xlane.xlu1 %651 }
 0x10f   :  { %v2681_v53 = vpop.eup %1935  ;;  %v909_v32 = vsub.f32 1.5, %v908_v35  ;;  %v2683_v25 = vmax.f32 %v588_v52, 1e-24  ;;  %v2685_v34 = vmax.f32 %v652_v18, 1e-24  ;;  %v556_v26 = vpop.xlane.xlu0 %555 }
 0x110   :  { %v2687_v24 = vpop.eup %1937  ;;  %v749_v9 = vsub.f32 1.5, %v748_v36  ;;  %v1066_v21 = vmul.f32 %v2681_v53, %v2627_v11  ;;  %v2696_v18 = vmax.f32 %v556_v26, 1e-24  ;;  %v435_v52 = vpop.f32.mrf.mxu2  ;;  %vm1072_vm9 = vweird.f32 %v2681_v53 }
 0x111   :  { %v910_v10 = vmul.f32 %v1932_v46, %v909_v32  ;;  %v1226_v35 = vmul.f32 %v2687_v24, %v2636_v22  ;;  %1939 = vrsqrt.f32 %v2683_v25  ;;  %v2713_v12 = vadd.f32 %v2367_v1, %v435_v52  ;;  %vm1073_vm12 = vmor %vm1071_vm5, %vm1072_vm9 }
 0x112   :  { %v750_v36 = vmul.f32 %v1934_v61, %v749_v9  ;;  %v1067_v60 = vmul.f32 %v2681_v53, %v1066_v21  ;;  %1941 = vrsqrt.f32 %v2685_v34  ;;  %vm1232_vm10 = vweird.f32 %v2687_v24 }
 0x113   :  { %v914_v32 = vsel %vm913_vm6, %v1932_v46, %v910_v10  ;;  %v1227_v26 = vmul.f32 %v2687_v24, %v1226_v35  ;;  %641 = vadd.xlane.f32.xlu2 %v533_v54  ;;  %609 = vadd.xlane.f32.xlu1 %v517_v51  ;;  %1943 = vrsqrt.f32 %v2696_v18  ;;  %vm921_vm11 = vweird.f32 %v2683_v25  ;;  %vm1233_vm13 = vmor %vm1231_vm7, %vm1232_vm10 }
 0x114   :  { %v1465_v9 = vmul.f32 %v1401_v0, %v914_v32  ;;  %v754_v40 = vsel %vm753_vm8, %v1934_v61, %v750_v36  ;;  %v1068_v21 = vmul.f32 0.5, %v1067_v60  ;;  %673 = vadd.xlane.f32.xlu0 %v549_v37  ;;  %v2722_v60 = vmul.f32 %v2704_v59, %v2704_v59 }
 0x115   :  { %v1449_v10 = vmul.f32 %v1385_v47, %v754_v40  ;;  %v1228_v46 = vmul.f32 0.5, %v1227_v26  ;;  %v1402_v36 = vmul.f32 0.5, %v2683_v25  ;;  %vm1241_vm14 = vweird.f32 %v2685_v34 }
 0x116   :  { %v1529_v35 = vmul.f32 %v1465_v9, %v914_v32  ;;  %v1069_v41 = vsub.f32 1.5, %v1068_v21  ;;  %v654_v51 = vpop.xlane.xlu2 %653  ;;  %v558_v26 = vpop.xlane.xlu1 %557  ;;  %vm761_vm2 = vweird.f32 %v2696_v18 }
 0x117   :  { %v2724_v54 = vpop.eup %1939  ;;  %v1513_v61 = vmul.f32 %v1449_v10, %v754_v40  ;;  %v1229_v37 = vsub.f32 1.5, %v1228_v46  ;;  %v2727_v0 = vmax.f32 %v654_v51, 1e-24 }
 0x118   :  { %v1593_v47 = vsub.f32 1.5, %v1529_v35  ;;  %v1070_v44 = vmul.f32 %v2681_v53, %v1069_v41  ;;  %v916_v52 = vmul.f32 %v2724_v54, %v2683_v25  ;;  %v2734_v9 = vpop.eup %1941  ;;  %v2742_v41 = vmul.f32 0.5, %v2685_v34 }
 0x119   :  { %v1577_v21 = vsub.f32 1.5, %v1513_v61  ;;  %v1230_v10 = vmul.f32 %v2687_v24, %v1229_v37  ;;  %1945 = vrsqrt.f32 %v2727_v0  ;;  %v1236_v11 = vmul.f32 %v2734_v9, %v2685_v34  ;;  %v2754_v61 = vpop.eup %1943 }
 0x11a   :  { %v1657_v46 = vmul.f32 %v1593_v47, %v914_v32  ;;  %v1074_v35 = vsel %vm1073_vm12, %v2681_v53, %v1070_v44  ;;  %v917_v51 = vmul.f32 %v2724_v54, %v916_v52  ;;  %v2757_v47 = vmax.f32 %v558_v26, 1e-24 }
 0x11b   :  { %v1641_v37 = vmul.f32 %v1577_v21, %v754_v40  ;;  %v1481_v59 = vmul.f32 %v1417_v62, %v1074_v35  ;;  %v1234_v32 = vsel %vm1233_vm13, %v2687_v24, %v1230_v10  ;;  %611 = vadd.xlane.f32.xlu2 %v2671_v8  ;;  %579 = vadd.xlane.f32.xlu1 %v2675_v7  ;;  %vm922_vm15 = vweird.f32 %v2724_v54 }
 0x11c   :  { %v1721_v53 = vmul.f32 %v1657_v46, %v2377_v6  ;;  %v1497_v22 = vmul.f32 %v1433_v55, %v1234_v32  ;;  %v918_v44 = vmul.f32 0.5, %v917_v51  ;;  %v1237_v52 = vmul.f32 %v2734_v9, %v1236_v11  ;;  %643 = vadd.xlane.f32.xlu0 %v2679_v63  ;;  %v620_v55 = vpop.xlane.xlu0 %619  ;;  %vm923_vm1 = vmor %vm921_vm11, %vm922_vm15 }
 0x11d   :  { %v1705_v43 = vmul.f32 %v1641_v37, %v2374_v5  ;;  %v1545_v40 = vmul.f32 %v1481_v59, %v1074_v35  ;;  %v756_v62 = vmul.f32 %v2754_v61, %v2696_v18  ;;  %v535_v24 = vmul.f32 %v2713_v12, %v2713_v12 }
 0x11e   :  { %1785 = vst [vmem:[#allocation2 + $0x80] sm:$0xff] %v1721_v53  ;;  %v1561_v8 = vmul.f32 %v1497_v22, %v1234_v32  ;;  %v919_v7 = vsub.f32 1.5, %v918_v44  ;;  %v1238_v6 = vmul.f32 0.5, %v1237_v52  ;;  %vm1242_vm0 = vweird.f32 %v2734_v9 }
 0x11f   :  { %v1946_v26 = vpop.eup %1945  ;;  %1769 = vst [vmem:[#allocation2] sm:$0xff] %v1705_v43  ;;  %v1609_v21 = vsub.f32 1.5, %v1545_v40  ;;  %v757_v5 = vmul.f32 %v2754_v61, %v756_v62  ;;  %1947 = vrsqrt.f32 %v2757_v47  ;;  %vm762_vm3 = vweird.f32 %v2754_v61  ;;  %v624_v43 = vpop.xlane.xlu2 %623  ;;  %vm1243_vm4 = vmor %vm1241_vm14, %vm1242_vm0 }
 0x120   :  { %v1625_v59 = vsub.f32 1.5, %v1561_v8  ;;  %v920_v63 = vmul.f32 %v2724_v54, %v919_v7  ;;  %v1239_v10 = vsub.f32 1.5, %v1238_v6  ;;  %v1246_v46 = vmul.f32 %v1946_v26, %v2727_v0  ;;  %vm763_vm5 = vmor %vm761_vm2, %vm762_vm3 }
 0x121   :  { %v1673_v51 = vmul.f32 %v1609_v21, %v1074_v35  ;;  %v758_v11 = vmul.f32 0.5, %v757_v5  ;;  %v2786_v35 = vmax.f32 %v620_v55, 1e-24  ;;  %v2791_v8 = vmax.f32 %v624_v43, 1e-24  ;;  %v622_v21 = vpop.xlane.xlu1 %621 }
 0x122   :  { %v1689_v37 = vmul.f32 %v1625_v59, %v1234_v32  ;;  %v924_v53 = vsel %vm923_vm1, %v2724_v54, %v920_v63  ;;  %v1240_v22 = vmul.f32 %v2734_v9, %v1239_v10  ;;  %v1247_v44 = vmul.f32 %v1946_v26, %v1246_v46 }
 0x123   :  { %v1737_v52 = vmul.f32 %v1673_v51, %v2393_v13  ;;  %v1466_v40 = vmul.f32 %v1402_v36, %v924_v53  ;;  %v759_v25 = vsub.f32 1.5, %v758_v11  ;;  %581 = vadd.xlane.f32.xlu2 %v2722_v60  ;;  %645 = vadd.xlane.f32.xlu1 %v535_v24  ;;  %1949 = vrsqrt.f32 %v2786_v35  ;;  %v480_v24 = vpop.f32.mrf.mxu3 }
 0x124   :  { %v1753_v32 = vmul.f32 %v1689_v37, %v2396_v14  ;;  %v1244_v54 = vsel %vm1243_vm4, %v2734_v9, %v1240_v22  ;;  %v1248_v62 = vmul.f32 0.5, %v1247_v44  ;;  %v1386_v14 = vmul.f32 0.5, %v2696_v18  ;;  %v590_v10 = vpop.xlane.xlu0 %589 }
 0x125   :  { %v1948_v13 = vpop.eup %1947  ;;  %1801 = vst [vmem:[#allocation2 + $0x100] sm:$0xff] %v1737_v52  ;;  %v1530_v36 = vmul.f32 %v1466_v40, %v924_v53  ;;  %v1498_v7 = vmul.f32 %v2742_v41, %v1244_v54  ;;  %v760_v34 = vmul.f32 %v2754_v61, %v759_v25  ;;  %vm1252_vm6 = vweird.f32 %v1946_v26 }
 0x126   :  { %1817 = vst [vmem:[#allocation2 + $0x180] sm:$0xff] %v1753_v32  ;;  %v1249_v60 = vsub.f32 1.5, %v1248_v62  ;;  %v766_v9 = vmul.f32 %v1948_v13, %v2757_v47  ;;  %vm1251_vm7 = vweird.f32 %v2727_v0  ;;  %1951 = vrsqrt.f32 %v2791_v8 }
 0x127   :  { %v1594_v6 = vsub.f32 1.5, %v1530_v36  ;;  %v1562_v55 = vmul.f32 %v1498_v7, %v1244_v54  ;;  %v764_v41 = vsel %vm763_vm5, %v2754_v61, %v760_v34  ;;  %vm1253_vm8 = vmor %vm1251_vm7, %vm1252_vm6  ;;  %v1435_v51 = vmul.f32 0.5, %v2727_v0 }
 0x128   :  { %v1450_v5 = vmul.f32 %v1386_v14, %v764_v41  ;;  %v1250_v59 = vmul.f32 %v1946_v26, %v1249_v60  ;;  %v767_v63 = vmul.f32 %v1948_v13, %v766_v9  ;;  %v2808_v11 = vadd.f32 %v2367_v1, %v480_v24 }
 0x129   :  { %v1658_v46 = vmul.f32 %v1594_v6, %v924_v53  ;;  %v1626_v18 = vsub.f32 1.5, %v1562_v55  ;;  %v2810_v22 = vmax.f32 %v622_v21, 1e-24  ;;  %v1950_v44 = vpop.eup %1949  ;;  %v2813_v32 = vmax.f32 %v590_v10, 1e-24 }
 0x12a   :  { %v1514_v43 = vmul.f32 %v1450_v5, %v764_v41  ;;  %v1254_v61 = vsel %vm1253_vm8, %v1946_v26, %v1250_v59  ;;  %v768_v37 = vmul.f32 0.5, %v767_v63  ;;  %vm772_vm9 = vweird.f32 %v1948_v13  ;;  %v560_v59 = vpop.xlane.xlu1 %559 }
 0x12b   :  { %v1722_v52 = vmul.f32 %v1658_v46, %v2403_v19  ;;  %v1690_v40 = vmul.f32 %v1626_v18, %v1244_v54  ;;  %v1499_v25 = vmul.f32 %v1435_v51, %v1254_v61  ;;  %v1076_v0 = vmul.f32 %v1950_v44, %v2786_v35 }
 0x12c   :  { %v1578_v53 = vsub.f32 1.5, %v1514_v43  ;;  %v769_v62 = vsub.f32 1.5, %v768_v37  ;;  %vm771_vm10 = vweird.f32 %v2757_v47  ;;  %1953 = vrsqrt.f32 %v2810_v22  ;;  %v2819_v26 = vpop.eup %1951 }
 0x12d   :  { %1786 = vst [vmem:[#allocation2 + $0x88] sm:$0xff] %v1722_v52  ;;  %v1754_v36 = vmul.f32 %v1690_v40, %v2409_v23  ;;  %v1563_v7 = vmul.f32 %v1499_v25, %v1254_v61  ;;  %v1387_v34 = vmul.f32 0.5, %v2757_v47  ;;  %v1077_v14 = vmul.f32 %v1950_v44, %v1076_v0  ;;  %vm773_vm11 = vmor %vm771_vm10, %vm772_vm9  ;;  %v438_v40 = vpop.f32.mrf.mxu2 }
 0x12e   :  { %v1642_v19 = vmul.f32 %v1578_v53, %v764_v41  ;;  %v770_v54 = vmul.f32 %v1948_v13, %v769_v62  ;;  %vm1081_vm12 = vweird.f32 %v2786_v35  ;;  %v1096_v23 = vmul.f32 %v2819_v26, %v2791_v8  ;;  %v562_v41 = vpop.xlane.xlu2 %561 }
 0x12f   :  { %1818 = vst [vmem:[#allocation2 + $0x188] sm:$0xff] %v1754_v36  ;;  %v1627_v60 = vsub.f32 1.5, %v1563_v7  ;;  %1955 = vrsqrt.f32 %v2813_v32  ;;  %v1078_v6 = vmul.f32 0.5, %v1077_v14  ;;  %v1418_v55 = vmul.f32 0.5, %v2786_v35 }
 0x130   :  { %v1706_v9 = vmul.f32 %v1642_v19, %v2406_v20  ;;  %v774_v24 = vsel %vm773_vm11, %v1948_v13, %v770_v54  ;;  %v1097_v5 = vmul.f32 %v2819_v26, %v1096_v23  ;;  %vm1101_vm13 = vweird.f32 %v2791_v8  ;;  %v390_v19 = vpop.f32.mrf.mxu1 }
 0x131   :  { %v1691_v21 = vmul.f32 %v1627_v60, %v1254_v61  ;;  %v1451_v47 = vmul.f32 %v1387_v34, %v774_v24  ;;  %v1079_v63 = vsub.f32 1.5, %v1078_v6  ;;  %vm1082_vm14 = vweird.f32 %v1950_v44 }
 0x132   :  { %1770 = vst [vmem:[#allocation2 + $0x8] sm:$0xff] %v1706_v9  ;;  %v1420_v10 = vmul.f32 0.5, %v2791_v8  ;;  %v519_v20 = vmul.f32 %v2717_v45, %v2717_v45  ;;  %v2833_v13 = vpop.eup %1953  ;;  %v1098_v51 = vmul.f32 0.5, %v1097_v5  ;;  %v2836_v43 = vmax.f32 %v562_v41, 1e-24  ;;  %vm1083_vm0 = vmor %vm1081_vm12, %vm1082_vm14  ;;  %v656_v9 = vpop.xlane.xlu0 %655 }
 0x133   :  { %v1755_v46 = vmul.f32 %v1691_v21, %v2424_v33  ;;  %v1515_v18 = vmul.f32 %v1451_v47, %v774_v24  ;;  %v1080_v61 = vmul.f32 %v1950_v44, %v1079_v63  ;;  %v1086_v37 = vmul.f32 %v2833_v13, %v2810_v22  ;;  %v342_v5 = vpop.f32.mrf.mxu0 }
 0x134   :  { %vm1091_vm15 = vweird.f32 %v2810_v22  ;;  %v1419_v52 = vmul.f32 0.5, %v2810_v22  ;;  %613 = vadd.xlane.f32.xlu0 %v519_v20  ;;  %v2842_v25 = vmax.f32 %v560_v59, 1e-24  ;;  %v1099_v33 = vsub.f32 1.5, %v1098_v51  ;;  %v483_v20 = vpop.f32.mrf.mxu3 }
 0x135   :  { %v1956_v53 = vpop.eup %1955  ;;  %1819 = vst [vmem:[#allocation2 + $0x190] sm:$0xff] %v1755_v46  ;;  %v1579_v62 = vsub.f32 1.5, %v1515_v18  ;;  %vm1102_vm1 = vweird.f32 %v2819_v26  ;;  %1957 = vrsqrt.f32 %v2836_v43  ;;  %v1084_v0 = vsel %vm1083_vm0, %v1950_v44, %v1080_v61 }
 0x136   :  { %v1087_v36 = vmul.f32 %v2833_v13, %v1086_v37  ;;  %v926_v7 = vmul.f32 %v1956_v53, %v2813_v32  ;;  %vm931_vm2 = vweird.f32 %v2813_v32  ;;  %v1482_v34 = vmul.f32 %v1418_v55, %v1084_v0  ;;  %vm1103_vm3 = vmor %vm1101_vm13, %vm1102_vm1 }
 0x137   :  { %v1643_v54 = vmul.f32 %v1579_v62, %v774_v24  ;;  %v1100_v14 = vmul.f32 %v2819_v26, %v1099_v33  ;;  %v2854_v35 = vadd.f32 %v2367_v1, %v438_v40  ;;  %v1403_v44 = vmul.f32 0.5, %v2813_v32 }
 0x138   :  { %v1088_v60 = vmul.f32 0.5, %v1087_v36  ;;  %v927_v23 = vmul.f32 %v1956_v53, %v926_v7  ;;  %1959 = vrsqrt.f32 %v2842_v25  ;;  %v1546_v41 = vmul.f32 %v1482_v34, %v1084_v0 }
 0x139   :  { %v1707_v6 = vmul.f32 %v1643_v54, %v2418_v28  ;;  %v1104_v24 = vsel %vm1103_vm3, %v2819_v26, %v1100_v14  ;;  %v2863_v55 = vadd.f32 %v2367_v1, %v390_v19  ;;  %vm1092_vm4 = vweird.f32 %v2833_v13  ;;  %v594_v54 = vpop.xlane.xlu2 %593 }
 0x13a   :  { %v1484_v21 = vmul.f32 %v1420_v10, %v1104_v24  ;;  %v1089_v47 = vsub.f32 1.5, %v1088_v60  ;;  %v928_v8 = vmul.f32 0.5, %v927_v23  ;;  %v1610_v63 = vsub.f32 1.5, %v1546_v41  ;;  %vm1093_vm6 = vmor %vm1091_vm15, %vm1092_vm4  ;;  %v592_v23 = vpop.xlane.xlu1 %591 }
 0x13b   :  { %v1958_v59 = vpop.eup %1957  ;;  %1771 = vst [vmem:[#allocation2 + $0x10] sm:$0xff] %v1707_v6  ;;  %vm932_vm5 = vweird.f32 %v1956_v53  ;;  %v2866_v46 = vmax.f32 %v656_v9, 1e-24  ;;  %v536_v28 = vmul.f32 %v2854_v35, %v2854_v35  ;;  %vm791_vm7 = vweird.f32 %v2836_v43 }
 0x13c   :  { %v1548_v26 = vmul.f32 %v1484_v21, %v1104_v24  ;;  %v1090_v18 = vmul.f32 %v2833_v13, %v1089_v47  ;;  %v929_v51 = vsub.f32 1.5, %v928_v8  ;;  %v786_v10 = vmul.f32 %v1958_v59, %v2836_v43  ;;  %vm933_vm8 = vmor %vm931_vm2, %vm932_vm5 }
 0x13d   :  { %v1674_v61 = vmul.f32 %v1610_v63, %v1084_v0  ;;  %v2878_v37 = vadd.f32 %v2367_v1, %v342_v5  ;;  %1961 = vrsqrt.f32 %v2866_v46  ;;  %647 = vadd.xlane.f32.xlu2 %v536_v28  ;;  %v1389_v22 = vmul.f32 0.5, %v2836_v43 }
 0x13e   :  { %v1960_v40 = vpop.eup %1959  ;;  %v1612_v62 = vsub.f32 1.5, %v1548_v26  ;;  %v1094_v33 = vsel %vm1093_vm6, %v2833_v13, %v1090_v18  ;;  %v930_v36 = vmul.f32 %v1956_v53, %v929_v51  ;;  %v787_v7 = vmul.f32 %v1958_v59, %v786_v10  ;;  %v486_v18 = vpop.f32.mrf.mxu3 }
 0x13f   :  { %v1738_v0 = vmul.f32 %v1674_v61, %v2421_v30  ;;  %v1483_v19 = vmul.f32 %v1419_v52, %v1094_v33  ;;  %v776_v1 = vmul.f32 %v1960_v40, %v2842_v25  ;;  %vm792_vm9 = vweird.f32 %v1958_v59  ;;  %v626_v51 = vpop.xlane.xlu0 %625  ;;  %v2059_v61 = vld [vmem:[%s3488_s2] ss:$0 sm:$0xff]  ;;  %s2086_s2 = smov [#allocation2]  }
 0x140   :  { %v1676_v34 = vmul.f32 %v1612_v62, %v1104_v24  ;;  %v934_v14 = vsel %vm933_vm8, %v1956_v53, %v930_v36  ;;  %v788_v60 = vmul.f32 0.5, %v787_v7  ;;  %v520_v30 = vmul.f32 %v2863_v55, %v2863_v55  ;;  %vm793_vm11 = vmor %vm791_vm7, %vm792_vm9  ;;  %s1837_s11 = sshll.u32 %s2086_s2, 4  ;;  %s1838_s11 = int_to_ptr.vmem [resolvable:$true] %s1837_s11 }
 0x141   :  { %1802 = vst [vmem:[#allocation2 + $0x108] sm:$0xff] %v1738_v0  ;;  %v1547_v13 = vmul.f32 %v1483_v19, %v1094_v33  ;;  %v1467_v9 = vmul.f32 %v1403_v44, %v934_v14  ;;  %v777_v6 = vmul.f32 %v1960_v40, %v776_v1  ;;  %v504_v41 = vmul.f32 %v2878_v37, %v2878_v37 }
 0x142   :  { %v1740_v32 = vmul.f32 %v1676_v34, %v2439_v42  ;;  %v789_v52 = vsub.f32 1.5, %v788_v60  ;;  %v2893_v21 = vmax.f32 %v594_v54, 1e-24  ;;  %615 = vadd.xlane.f32.xlu1 %v520_v30  ;;  %v2897_v5 = vmax.f32 %v592_v23, 1e-24 }
 0x143   :  { %v2895_v24 = vpop.eup %1961  ;;  %v1611_v53 = vsub.f32 1.5, %v1547_v13  ;;  %v1531_v47 = vmul.f32 %v1467_v9, %v934_v14  ;;  %v778_v8 = vmul.f32 0.5, %v777_v6  ;;  %vm781_vm10 = vweird.f32 %v2842_v25  ;;  %583 = vadd.xlane.f32.xlu0 %v504_v41 }
 0x144   :  { %1804 = vst [vmem:[#allocation2 + $0x118] sm:$0xff] %v1740_v32  ;;  %v790_v44 = vmul.f32 %v1958_v59, %v789_v52  ;;  %v1256_v42 = vmul.f32 %v2895_v24, %v2866_v46  ;;  %1963 = vrsqrt.f32 %v2893_v21  ;;  %vm782_vm12 = vweird.f32 %v1960_v40  ;;  %v658_v52 = vpop.xlane.xlu1 %657 }
 0x145   :  { %v1675_v63 = vmul.f32 %v1611_v53, %v1094_v33  ;;  %v1595_v28 = vsub.f32 1.5, %v1531_v47  ;;  %v779_v26 = vsub.f32 1.5, %v778_v8  ;;  %v2909_v62 = vadd.f32 %v2059_v61, %v483_v20  ;;  %vm783_vm13 = vmor %vm781_vm10, %vm782_vm12 }
 0x146   :  { %v794_v10 = vsel %vm793_vm11, %v1958_v59, %v790_v44  ;;  %v1257_v36 = vmul.f32 %v2895_v24, %v1256_v42  ;;  %1965 = vrsqrt.f32 %v2897_v5  ;;  %v1388_v59 = vmul.f32 0.5, %v2842_v25 }
 0x147   :  { %v1739_v33 = vmul.f32 %v1675_v63, %v2436_v39  ;;  %v1659_v7 = vmul.f32 %v1595_v28, %v934_v14  ;;  %v1453_v43 = vmul.f32 %v1389_v22, %v794_v10  ;;  %v780_v0 = vmul.f32 %v1960_v40, %v779_v26  ;;  %v564_v39 = vpop.xlane.xlu2 %563 }
 0x148   :  { %v1258_v19 = vmul.f32 0.5, %v1257_v36  ;;  %vm1262_vm14 = vweird.f32 %v2895_v24  ;;  %v2918_v1 = vadd.f32 %v2059_v61, %v486_v18  ;;  %v2921_v60 = vmax.f32 %v626_v51, 1e-24  ;;  %v596_v51 = vpop.xlane.xlu0 %595 }
 0x149   :  { %1803 = vst [vmem:[#allocation2 + $0x110] sm:$0xff] %v1739_v33  ;;  %v1723_v20 = vmul.f32 %v1659_v7, %v2433_v38  ;;  %v1517_v54 = vmul.f32 %v1453_v43, %v794_v10  ;;  %v784_v34 = vsel %vm783_vm13, %v1960_v40, %v780_v0  ;;  %v551_v13 = vmul.f32 %v2909_v62, %v2909_v62 }
 0x14a   :  { %v1964_v22 = vpop.eup %1963  ;;  %v1452_v14 = vmul.f32 %v1388_v59, %v784_v34  ;;  %v1259_v23 = vsub.f32 1.5, %v1258_v19  ;;  %v550_v25 = vmul.f32 %v2808_v11, %v2808_v11  ;;  %1967 = vrsqrt.f32 %v2921_v60 }
 0x14b   :  { %1787 = vst [vmem:[#allocation2 + $0x90] sm:$0xff] %v1723_v20  ;;  %v1581_v9 = vsub.f32 1.5, %v1517_v54  ;;  %v946_v6 = vmul.f32 %v1964_v22, %v2893_v21  ;;  %vm1261_vm15 = vweird.f32 %v2866_v46  ;;  %v1436_v32 = vmul.f32 0.5, %v2866_v46  ;;  %677 = vadd.xlane.f32.xlu2 %v551_v13 }
 0x14c   :  { %v1966_v38 = vpop.eup %1965  ;;  %v1516_v40 = vmul.f32 %v1452_v14, %v784_v34  ;;  %v1260_v30 = vmul.f32 %v2895_v24, %v1259_v23  ;;  %675 = vadd.xlane.f32.xlu1 %v550_v25  ;;  %vm1263_vm0 = vmor %vm1261_vm15, %vm1262_vm14  ;;  %vm951_vm1 = vweird.f32 %v2893_v21  ;;  %v552_v42 = vmul.f32 %v2918_v1, %v2918_v1 }
 0x14d   :  { %v1645_v41 = vmul.f32 %v1581_v9, %v794_v10  ;;  %v947_v53 = vmul.f32 %v1964_v22, %v946_v6  ;;  %v936_v47 = vmul.f32 %v1966_v38, %v2897_v5  ;;  %v2939_v63 = vmax.f32 %v564_v39, 1e-24 }
 0x14e   :  { %v1580_v8 = vsub.f32 1.5, %v1516_v40  ;;  %v1264_v44 = vsel %vm1263_vm0, %v2895_v24, %v1260_v30  ;;  %vm952_vm2 = vweird.f32 %v1964_v22  ;;  %v1405_v61 = vmul.f32 0.5, %v2893_v21  ;;  %679 = vadd.xlane.f32.xlu0 %v552_v42  ;;  %v628_v30 = vpop.xlane.xlu1 %627 }
 0x14f   :  { %v1709_v46 = vmul.f32 %v1645_v41, %v2448_v48  ;;  %v1500_v28 = vmul.f32 %v1436_v32, %v1264_v44  ;;  %v948_v26 = vmul.f32 0.5, %v947_v53  ;;  %v937_v18 = vmul.f32 %v1966_v38, %v936_v47  ;;  %vm953_vm4 = vmor %vm951_vm1, %vm952_vm2 }
 0x150   :  { %v1644_v10 = vmul.f32 %v1580_v8, %v784_v34  ;;  %1969 = vrsqrt.f32 %v2939_v63  ;;  %v1968_v36 = vpop.eup %1967  ;;  %v2944_v43 = vmax.f32 %v658_v52, 1e-24  ;;  %vm942_vm3 = vweird.f32 %v1966_v38  ;;  %v660_v34 = vpop.xlane.xlu2 %659 }
 0x151   :  { %1773 = vst [vmem:[#allocation2 + $0x20] sm:$0xff] %v1709_v46  ;;  %v1564_v24 = vmul.f32 %v1500_v28, %v1264_v44  ;;  %v949_v33 = vsub.f32 1.5, %v948_v26  ;;  %v938_v7 = vmul.f32 0.5, %v937_v18  ;;  %v1106_v0 = vmul.f32 %v1968_v36, %v2921_v60 }
 0x152   :  { %v1708_v48 = vmul.f32 %v1644_v10, %v2454_v50  ;;  %v2948_v59 = vmax.f32 %v596_v51, 1e-24  ;;  %1971 = vrsqrt.f32 %v2944_v43  ;;  %vm941_vm5 = vweird.f32 %v2897_v5 }
 0x153   :  { %v1628_v19 = vsub.f32 1.5, %v1564_v24  ;;  %v950_v20 = vmul.f32 %v1964_v22, %v949_v33  ;;  %v939_v54 = vsub.f32 1.5, %v938_v7  ;;  %v1404_v50 = vmul.f32 0.5, %v2897_v5  ;;  %vm943_vm7 = vmor %vm941_vm5, %vm942_vm3 }
 0x154   :  { %1772 = vst [vmem:[#allocation2 + $0x18] sm:$0xff] %v1708_v48  ;;  %v1107_v39 = vmul.f32 %v1968_v36, %v1106_v0  ;;  %1973 = vrsqrt.f32 %v2948_v59  ;;  %vm1111_vm6 = vweird.f32 %v2921_v60  ;;  %v1421_v21 = vmul.f32 0.5, %v2921_v60 }
 0x155   :  { %v1692_v14 = vmul.f32 %v1628_v19, %v1264_v44  ;;  %v954_v23 = vsel %vm953_vm4, %v1964_v22, %v950_v20  ;;  %v940_v13 = vmul.f32 %v1966_v38, %v939_v54  ;;  %v2960_v40 = vmax.f32 %v660_v34, 1e-24  ;;  %v566_v20 = vpop.xlane.xlu0 %565 }
 0x156   :  { %v1970_v25 = vpop.eup %1969  ;;  %v1469_v9 = vmul.f32 %v1405_v61, %v954_v23  ;;  %v1108_v6 = vmul.f32 0.5, %v1107_v39  ;;  %vm1112_vm8 = vweird.f32 %v1968_v36  ;;  %vm801_vm9 = vweird.f32 %v2939_v63 }
 0x157   :  { %v1756_v5 = vmul.f32 %v1692_v14, %v2451_v49  ;;  %v944_v32 = vsel %vm943_vm7, %v1966_v38, %v940_v13  ;;  %v796_v52 = vmul.f32 %v1970_v25, %v2939_v63  ;;  %1975 = vrsqrt.f32 %v2960_v40  ;;  %vm1113_vm11 = vmor %vm1111_vm6, %vm1112_vm8 }
 0x158   :  { %v1533_v22 = vmul.f32 %v1469_v9, %v954_v23  ;;  %v1468_v41 = vmul.f32 %v1404_v50, %v944_v32  ;;  %v1109_v53 = vsub.f32 1.5, %v1108_v6  ;;  %v1972_v47 = vpop.eup %1971  ;;  %v1390_v44 = vmul.f32 0.5, %v2939_v63 }
 0x159   :  { %1820 = vst [vmem:[#allocation2 + $0x198] sm:$0xff] %v1756_v5  ;;  %v797_v8 = vmul.f32 %v1970_v25, %v796_v52  ;;  %v1437_v42 = vmul.f32 0.5, %v2944_v43  ;;  %v2968_v46 = vmax.f32 %v628_v30, 1e-24  ;;  %v1266_v18 = vmul.f32 %v1972_v47, %v2944_v43 }
 0x15a   :  { %v1974_v49 = vpop.eup %1973  ;;  %v1597_v38 = vsub.f32 1.5, %v1533_v22  ;;  %v1532_v28 = vmul.f32 %v1468_v41, %v944_v32  ;;  %v1110_v26 = vmul.f32 %v1968_v36, %v1109_v53  ;;  %vm1271_vm10 = vweird.f32 %v2944_v43 }
 0x15b   :  { %v798_v51 = vmul.f32 0.5, %v797_v8  ;;  %vm802_vm12 = vweird.f32 %v1970_v25  ;;  %v956_v10 = vmul.f32 %v1974_v49, %v2948_v59  ;;  %vm961_vm13 = vweird.f32 %v2948_v59 }
 0x15c   :  { %v1661_v61 = vmul.f32 %v1597_v38, %v954_v23  ;;  %v1596_v24 = vsub.f32 1.5, %v1532_v28  ;;  %v1114_v33 = vsel %vm1113_vm11, %v1968_v36, %v1110_v26  ;;  %v1267_v7 = vmul.f32 %v1972_v47, %v1266_v18  ;;  %v630_v36 = vpop.xlane.xlu2 %629  ;;  %vm803_vm14 = vmor %vm801_vm9, %vm802_vm12  ;;  %v598_v26 = vpop.xlane.xlu1 %597 }
 0x15d   :  { %v1485_v48 = vmul.f32 %v1421_v21, %v1114_v33  ;;  %v799_v0 = vsub.f32 1.5, %v798_v51  ;;  %v957_v19 = vmul.f32 %v1974_v49, %v956_v10  ;;  %1977 = vrsqrt.f32 %v2968_v46  ;;  %v1976_v54 = vpop.eup %1975 }
 0x15e   :  { %v1725_v60 = vmul.f32 %v1661_v61, %v2463_v56  ;;  %v1660_v34 = vmul.f32 %v1596_v24, %v944_v32  ;;  %v1268_v50 = vmul.f32 0.5, %v1267_v7  ;;  %v1406_v39 = vmul.f32 0.5, %v2948_v59 }
 0x15f   :  { %v1549_v14 = vmul.f32 %v1485_v48, %v1114_v33  ;;  %v800_v13 = vmul.f32 %v1970_v25, %v799_v0  ;;  %v958_v9 = vmul.f32 0.5, %v957_v19  ;;  %v1276_v23 = vmul.f32 %v1976_v54, %v2960_v40  ;;  %v662_v0 = vpop.xlane.xlu0 %661 }
 0x160   :  { %1789 = vst [vmem:[#allocation2 + $0xa0] sm:$0xff] %v1725_v60  ;;  %v1724_v6 = vmul.f32 %v1660_v34, %v2469_v58  ;;  %v1269_v21 = vsub.f32 1.5, %v1268_v50  ;;  %vm1272_vm15 = vweird.f32 %v1972_v47  ;;  %vm962_vm0 = vweird.f32 %v1974_v49 }
 0x161   :  { %v1613_v56 = vsub.f32 1.5, %v1549_v14  ;;  %v804_v30 = vsel %vm803_vm14, %v1970_v25, %v800_v13  ;;  %v959_v5 = vsub.f32 1.5, %v958_v9  ;;  %v1277_v32 = vmul.f32 %v1976_v54, %v1276_v23  ;;  %vm1273_vm2 = vmor %vm1271_vm10, %vm1272_vm15 }
 0x162   :  { %1788 = vst [vmem:[#allocation2 + $0x98] sm:$0xff] %v1724_v6  ;;  %v1454_v52 = vmul.f32 %v1390_v44, %v804_v30  ;;  %v1270_v22 = vmul.f32 %v1972_v47, %v1269_v21  ;;  %vm1281_vm1 = vweird.f32 %v2960_v40  ;;  %v2986_v41 = vmax.f32 %v566_v20, 1e-24  ;;  %vm963_vm4 = vmor %vm961_vm13, %vm962_vm0 }
 0x163   :  { %v1978_v53 = vpop.eup %1977  ;;  %v1677_v58 = vmul.f32 %v1613_v56, %v1114_v33  ;;  %v960_v63 = vmul.f32 %v1974_v49, %v959_v5  ;;  %v1278_v8 = vmul.f32 0.5, %v1277_v32  ;;  %vm1282_vm3 = vweird.f32 %v1976_v54 }
 0x164   :  { %v1518_v38 = vmul.f32 %v1454_v52, %v804_v30  ;;  %v1274_v28 = vsel %vm1273_vm2, %v1972_v47, %v1270_v22  ;;  %v1116_v25 = vmul.f32 %v1978_v53, %v2968_v46  ;;  %v2994_v44 = vmax.f32 %v630_v36, 1e-24  ;;  %vm1283_vm5 = vmor %vm1281_vm1, %vm1282_vm3  ;;  %v600_v60 = vpop.xlane.xlu2 %599 }
 0x165   :  { %v1741_v18 = vmul.f32 %v1677_v58, %v2466_v57  ;;  %v1501_v51 = vmul.f32 %v1437_v42, %v1274_v28  ;;  %v964_v10 = vsel %vm963_vm4, %v1974_v49, %v960_v63  ;;  %v1279_v43 = vsub.f32 1.5, %v1278_v8 }
 0x166   :  { %v1582_v61 = vsub.f32 1.5, %v1518_v38  ;;  %v1470_v24 = vmul.f32 %v1406_v39, %v964_v10  ;;  %v1117_v33 = vmul.f32 %v1978_v53, %v1116_v25  ;;  %1979 = vrsqrt.f32 %v2986_v41 }
 0x167   :  { %1805 = vst [vmem:[#allocation2 + $0x120] sm:$0xff] %v1741_v18  ;;  %v1565_v47 = vmul.f32 %v1501_v51, %v1274_v28  ;;  %v1280_v7 = vmul.f32 %v1976_v54, %v1279_v43  ;;  %v1438_v59 = vmul.f32 0.5, %v2960_v40  ;;  %v2999_v48 = vmax.f32 %v598_v26, 1e-24  ;;  %v632_v26 = vpop.xlane.xlu0 %631 }
 0x168   :  { %v1646_v19 = vmul.f32 %v1582_v61, %v804_v30  ;;  %v1534_v20 = vmul.f32 %v1470_v24, %v964_v10  ;;  %v1118_v57 = vmul.f32 0.5, %v1117_v33  ;;  %1981 = vrsqrt.f32 %v2994_v44 }
 0x169   :  { %v1629_v42 = vsub.f32 1.5, %v1565_v47  ;;  %v1284_v49 = vsel %vm1283_vm5, %v1976_v54, %v1280_v7  ;;  %vm1122_vm6 = vweird.f32 %v1978_v53  ;;  %vm1121_vm7 = vweird.f32 %v2968_v46 }
 0x16a   :  { %v1710_v34 = vmul.f32 %v1646_v19, %v2478_v2  ;;  %v1598_v50 = vsub.f32 1.5, %v1534_v20  ;;  %v1502_v39 = vmul.f32 %v1438_v59, %v1284_v49  ;;  %v1119_v14 = vsub.f32 1.5, %v1118_v57  ;;  %vm1123_vm8 = vmor %vm1121_vm7, %vm1122_vm6 }
 0x16b   :  { %v1693_v13 = vmul.f32 %v1629_v42, %v1274_v28  ;;  %1983 = vrsqrt.f32 %v2999_v48  ;;  %v3008_v6 = vmax.f32 %v662_v0, 1e-24  ;;  %v1422_v2 = vmul.f32 0.5, %v2968_v46 }
 0x16c   :  { %v1980_v9 = vpop.eup %1979  ;;  %1774 = vst [vmem:[#allocation2 + $0x28] sm:$0xff] %v1710_v34  ;;  %v1662_v40 = vmul.f32 %v1598_v50, %v964_v10  ;;  %v1566_v23 = vmul.f32 %v1502_v39, %v1284_v49  ;;  %v1120_v36 = vmul.f32 %v1978_v53, %v1119_v14  ;;  %v3014_v56 = vmax.f32 %v600_v60, 1e-24  ;;  %v570_v33 = vpop.xlane.xlu2 %569 }
 0x16d   :  { %v1757_v54 = vmul.f32 %v1693_v13, %v2481_v3  ;;  %v806_v21 = vmul.f32 %v1980_v9, %v2986_v41  ;;  %1985 = vrsqrt.f32 %v3008_v6  ;;  %vm811_vm9 = vweird.f32 %v2986_v41 }
 0x16e   :  { %v1982_v30 = vpop.eup %1981  ;;  %v1726_v5 = vmul.f32 %v1662_v40, %v2484_v4  ;;  %v1630_v32 = vsub.f32 1.5, %v1566_v23  ;;  %v1124_v52 = vsel %vm1123_vm8, %v1978_v53, %v1120_v36  ;;  %v1391_v63 = vmul.f32 0.5, %v2986_v41  ;;  %v568_v4 = vpop.xlane.xlu1 %567 }
 0x16f   :  { %1821 = vst [vmem:[#allocation2 + $0x1a0] sm:$0xff] %v1757_v54  ;;  %v1486_v22 = vmul.f32 %v1422_v2, %v1124_v52  ;;  %v807_v58 = vmul.f32 %v1980_v9, %v806_v21  ;;  %v1126_v3 = vmul.f32 %v1982_v30, %v2994_v44  ;;  %vm1131_vm10 = vweird.f32 %v2994_v44 }
 0x170   :  { %1790 = vst [vmem:[#allocation2 + $0xa8] sm:$0xff] %v1726_v5  ;;  %v1694_v46 = vmul.f32 %v1630_v32, %v1284_v49  ;;  %1987 = vrsqrt.f32 %v3014_v56  ;;  %v1423_v25 = vmul.f32 0.5, %v2994_v44  ;;  %vm812_vm11 = vweird.f32 %v1980_v9 }
 0x171   :  { %v1984_v8 = vpop.eup %1983  ;;  %v1550_v53 = vmul.f32 %v1486_v22, %v1124_v52  ;;  %v808_v38 = vmul.f32 0.5, %v807_v58  ;;  %v1127_v28 = vmul.f32 %v1982_v30, %v1126_v3  ;;  %vm971_vm12 = vweird.f32 %v2999_v48  ;;  %vm813_vm15 = vmor %vm811_vm9, %vm812_vm11 }
 0x172   :  { %v1758_v18 = vmul.f32 %v1694_v46, %v2496_v16  ;;  %v966_v51 = vmul.f32 %v1984_v8, %v2999_v48  ;;  %v3027_v24 = vmax.f32 %v568_v4, 1e-24  ;;  %vm1132_vm13 = vweird.f32 %v1982_v30 }
 0x173   :  { %v1614_v10 = vsub.f32 1.5, %v1550_v53  ;;  %v809_v43 = vsub.f32 1.5, %v808_v38  ;;  %v1128_v61 = vmul.f32 0.5, %v1127_v28  ;;  %v1986_v47 = vpop.eup %1985  ;;  %v1407_v59 = vmul.f32 0.5, %v2999_v48  ;;  %vm1133_vm0 = vmor %vm1131_vm10, %vm1132_vm13 }
 0x174   :  { %1822 = vst [vmem:[#allocation2 + $0x1a8] sm:$0xff] %v1758_v18  ;;  %v967_v7 = vmul.f32 %v1984_v8, %v966_v51  ;;  %v3030_v0 = vmax.f32 %v632_v26, 1e-24  ;;  %v1286_v57 = vmul.f32 %v1986_v47, %v3008_v6  ;;  %vm1291_vm14 = vweird.f32 %v3008_v6 }
 0x175   :  { %v1678_v16 = vmul.f32 %v1614_v10, %v1124_v52  ;;  %v810_v19 = vmul.f32 %v1980_v9, %v809_v43  ;;  %v1129_v20 = vsub.f32 1.5, %v1128_v61  ;;  %v1439_v60 = vmul.f32 0.5, %v3008_v6 }
 0x176   :  { %v3034_v42 = vpop.eup %1987  ;;  %v968_v49 = vmul.f32 0.5, %v967_v7  ;;  %1989 = vrsqrt.f32 %v3027_v24  ;;  %v3041_v34 = vmax.f32 %v570_v33, 1e-24  ;;  %v1287_v13 = vmul.f32 %v1986_v47, %v1286_v57  ;;  %v664_v3 = vpop.xlane.xlu1 %663 }
 0x177   :  { %v1742_v50 = vmul.f32 %v1678_v16, %v2493_v15  ;;  %v814_v39 = vsel %vm813_vm15, %v1980_v9, %v810_v19  ;;  %v1130_v14 = vmul.f32 %v1982_v30, %v1129_v20  ;;  %vm972_vm1 = vweird.f32 %v1984_v8  ;;  %v602_v20 = vpop.xlane.xlu0 %601 }
 0x178   :  { %v1455_v40 = vmul.f32 %v1391_v63, %v814_v39  ;;  %v969_v23 = vsub.f32 1.5, %v968_v49  ;;  %v976_v41 = vmul.f32 %v3034_v42, %v3014_v56  ;;  %v1288_v54 = vmul.f32 0.5, %v1287_v13  ;;  %vm973_vm3 = vmor %vm971_vm12, %vm972_vm1 }
 0x179   :  { %1806 = vst [vmem:[#allocation2 + $0x128] sm:$0xff] %v1742_v50  ;;  %v1134_v36 = vsel %vm1133_vm0, %v1982_v30, %v1130_v14  ;;  %vm981_vm2 = vweird.f32 %v3014_v56  ;;  %1991 = vrsqrt.f32 %v3030_v0  ;;  %vm1292_vm4 = vweird.f32 %v1986_v47  ;;  %v666_v50 = vpop.xlane.xlu2 %665 }
 0x17a   :  { %v1519_v15 = vmul.f32 %v1455_v40, %v814_v39  ;;  %v1487_v9 = vmul.f32 %v1423_v25, %v1134_v36  ;;  %v970_v2 = vmul.f32 %v1984_v8, %v969_v23  ;;  %v977_v21 = vmul.f32 %v3034_v42, %v976_v41  ;;  %vm1293_vm6 = vmor %vm1291_vm14, %vm1292_vm4 }
 0x17b   :  { %v1289_v44 = vsub.f32 1.5, %v1288_v54  ;;  %v1408_v5 = vmul.f32 0.5, %v3014_v56  ;;  %1993 = vrsqrt.f32 %v3041_v34  ;;  %vm821_vm5 = vweird.f32 %v3027_v24 }
 0x17c   :  { %v1990_v30 = vpop.eup %1989  ;;  %v1583_v32 = vsub.f32 1.5, %v1519_v15  ;;  %v1551_v52 = vmul.f32 %v1487_v9, %v1134_v36  ;;  %v974_v22 = vsel %vm973_vm3, %v1984_v8, %v970_v2  ;;  %v978_v58 = vmul.f32 0.5, %v977_v21 }
 0x17d   :  { %v1471_v46 = vmul.f32 %v1407_v59, %v974_v22  ;;  %v1290_v63 = vmul.f32 %v1986_v47, %v1289_v44  ;;  %v816_v4 = vmul.f32 %v1990_v30, %v3027_v24  ;;  %vm982_vm7 = vweird.f32 %v3034_v42 }
 0x17e   :  { %v1647_v48 = vmul.f32 %v1583_v32, %v814_v39  ;;  %v1615_v53 = vsub.f32 1.5, %v1551_v52  ;;  %v979_v38 = vsub.f32 1.5, %v978_v58  ;;  %v1392_v18 = vmul.f32 0.5, %v3027_v24  ;;  %vm983_vm8 = vmor %vm981_vm2, %vm982_vm7  ;;  %v634_v15 = vpop.xlane.xlu1 %633 }
 0x17f   :  { %v3062_v28 = vpop.eup %1991  ;;  %v1535_v8 = vmul.f32 %v1471_v46, %v974_v22  ;;  %v1294_v25 = vsel %vm1293_vm6, %v1986_v47, %v1290_v63  ;;  %v817_v26 = vmul.f32 %v1990_v30, %v816_v4  ;;  %vm822_vm9 = vweird.f32 %v1990_v30 }
 0x180   :  { %v1711_v51 = vmul.f32 %v1647_v48, %v2499_v17  ;;  %v1679_v10 = vmul.f32 %v1615_v53, %v1134_v36  ;;  %v1503_v43 = vmul.f32 %v1439_v60, %v1294_v25  ;;  %v980_v61 = vmul.f32 %v3034_v42, %v979_v38  ;;  %vm823_vm11 = vmor %vm821_vm5, %vm822_vm9 }
 0x181   :  { %v1994_v33 = vpop.eup %1993  ;;  %v1599_v7 = vsub.f32 1.5, %v1535_v8  ;;  %v818_v6 = vmul.f32 0.5, %v817_v26  ;;  %v1136_v59 = vmul.f32 %v3062_v28, %v3030_v0  ;;  %vm1141_vm10 = vweird.f32 %v3030_v0  ;;  %v572_v8 = vpop.xlane.xlu0 %571 }
 0x182   :  { %1775 = vst [vmem:[#allocation2 + $0x30] sm:$0xff] %v1711_v51  ;;  %v1743_v47 = vmul.f32 %v1679_v10, %v2511_v29  ;;  %v1567_v17 = vmul.f32 %v1503_v43, %v1294_v25  ;;  %v984_v16 = vsel %vm983_vm8, %v3034_v42, %v980_v61  ;;  %v826_v19 = vmul.f32 %v1994_v33, %v3041_v34 }
 0x183   :  { %v1663_v57 = vmul.f32 %v1599_v7, %v974_v22  ;;  %v1472_v49 = vmul.f32 %v1408_v5, %v984_v16  ;;  %v819_v56 = vsub.f32 1.5, %v818_v6  ;;  %v1137_v60 = vmul.f32 %v3062_v28, %v1136_v59  ;;  %v3547_v7 = vld [vmem:[#allocation5_spill] sm:$0xff] }
 0x184   :  { %1807 = vst [vmem:[#allocation2 + $0x130] sm:$0xff] %v1743_v47  ;;  %v1631_v39 = vsub.f32 1.5, %v1567_v17  ;;  %v1424_v14 = vmul.f32 0.5, %v3030_v0  ;;  %v827_v13 = vmul.f32 %v1994_v33, %v826_v19  ;;  %v3077_v40 = vmax.f32 %v664_v3, 1e-24  ;;  %v3546_v3 = vld [vmem:[#allocation6_spill] sm:$0xff] }
 0x185   :  { %v1727_v29 = vmul.f32 %v1663_v57, %v2508_v27  ;;  %v1536_v23 = vmul.f32 %v1472_v49, %v984_v16  ;;  %v820_v42 = vmul.f32 %v1990_v30, %v819_v56  ;;  %v1138_v41 = vmul.f32 0.5, %v1137_v60 }
 0x186   :  { %v1695_v36 = vmul.f32 %v1631_v39, %v1294_v25  ;;  %vm1142_vm12 = vweird.f32 %v3062_v28  ;;  %v828_v54 = vmul.f32 0.5, %v827_v13  ;;  %1995 = vrsqrt.f32 %v3077_v40  ;;  %v604_v17 = vpop.xlane.xlu1 %603 }
 0x187   :  { %1791 = vst [vmem:[#allocation2 + $0xb0] sm:$0xff] %v1727_v29  ;;  %v1600_v9 = vsub.f32 1.5, %v1536_v23  ;;  %v824_v2 = vsel %vm823_vm11, %v1990_v30, %v820_v42  ;;  %v1139_v21 = vsub.f32 1.5, %v1138_v41  ;;  %vm832_vm13 = vweird.f32 %v1994_v33  ;;  %vm1143_vm15 = vmor %vm1141_vm10, %vm1142_vm12  ;;  %v3548_v23 = vld [vmem:[#allocation7_spill] sm:$0xff] }
 0x188   :  { %v1759_v27 = vmul.f32 %v1695_v36, %v2514_v31  ;;  %v1456_v44 = vmul.f32 %v1392_v18, %v824_v2  ;;  %v829_v5 = vsub.f32 1.5, %v828_v54  ;;  %v3086_v32 = vmax.f32 %v602_v20, 1e-24  ;;  %v636_v18 = vpop.xlane.xlu2 %635  ;;  %v3549_v54 = vld [vmem:[#allocation8_spill] sm:$0xff] }
 0x189   :  { %v1664_v52 = vmul.f32 %v1600_v9, %v984_v16  ;;  %v1140_v24 = vmul.f32 %v3062_v28, %v1139_v21  ;;  %vm831_vm14 = vweird.f32 %v3041_v34  ;;  %v3090_v22 = vmax.f32 %v666_v50, 1e-24 }
 0x18a   :  { %1823 = vst [vmem:[#allocation2 + $0x1b0] sm:$0xff] %v1759_v27  ;;  %v1520_v58 = vmul.f32 %v1456_v44, %v824_v2  ;;  %v830_v30 = vmul.f32 %v1994_v33, %v829_v5  ;;  %1997 = vrsqrt.f32 %v3086_v32  ;;  %v3097_v31 = vmax.f32 %v634_v15, 1e-24  ;;  %vm833_vm0 = vmor %vm831_vm14, %vm832_vm13 }
 0x18b   :  { %v1728_v46 = vmul.f32 %v1664_v52, %v3546_v3  ;;  %v1144_v63 = vsel %vm1143_vm15, %v3062_v28, %v1140_v24  ;;  %v1393_v4 = vmul.f32 0.5, %v3041_v34  ;;  %1999 = vrsqrt.f32 %v3090_v22 }
 0x18c   :  { %v1996_v48 = vpop.eup %1995  ;;  %v1584_v53 = vsub.f32 1.5, %v1520_v58  ;;  %v1488_v38 = vmul.f32 %v1424_v14, %v1144_v63  ;;  %v834_v0 = vsel %vm833_vm0, %v1994_v33, %v830_v30  ;;  %2001 = vrsqrt.f32 %v3097_v31  ;;  %v668_v58 = vpop.xlane.xlu0 %667 }
 0x18d   :  { %1792 = vst [vmem:[#allocation2 + $0xb8] sm:$0xff] %v1728_v46  ;;  %v1457_v25 = vmul.f32 %v1393_v4, %v834_v0  ;;  %v1296_v26 = vmul.f32 %v1996_v48, %v3077_v40  ;;  %vm1301_vm1 = vweird.f32 %v3077_v40  ;;  %v3107_v34 = vmax.f32 %v572_v8, 1e-24 }
 0x18e   :  { %v1648_v51 = vmul.f32 %v1584_v53, %v824_v2  ;;  %v1552_v10 = vmul.f32 %v1488_v38, %v1144_v63  ;;  %v1440_v59 = vmul.f32 0.5, %v3077_v40  ;;  %v3111_v47 = vmax.f32 %v636_v18, 1e-24 }
 0x18f   :  { %v1521_v28 = vmul.f32 %v1457_v25, %v834_v0  ;;  %v1297_v43 = vmul.f32 %v1996_v48, %v1296_v26  ;;  %vm991_vm2 = vweird.f32 %v3086_v32  ;;  %v1409_v49 = vmul.f32 0.5, %v3086_v32 }
 0x190   :  { %v1998_v61 = vpop.eup %1997  ;;  %v1712_v6 = vmul.f32 %v1648_v51, %v3547_v7  ;;  %v1616_v33 = vsub.f32 1.5, %v1552_v10  ;;  %vm1302_vm3 = vweird.f32 %v1996_v48  ;;  %vm1311_vm4 = vweird.f32 %v3090_v22 }
 0x191   :  { %v3113_v16 = vpop.eup %1999  ;;  %v1585_v19 = vsub.f32 1.5, %v1521_v28  ;;  %v1298_v20 = vmul.f32 0.5, %v1297_v43  ;;  %v986_v57 = vmul.f32 %v1998_v61, %v3086_v32  ;;  %2003 = vrsqrt.f32 %v3107_v34  ;;  %vm1303_vm5 = vmor %vm1301_vm1, %vm1302_vm3 }
 0x192   :  { %1776 = vst [vmem:[#allocation2 + $0x38] sm:$0xff] %v1712_v6  ;;  %v1680_v56 = vmul.f32 %v1616_v33, %v1144_v63  ;;  %v1306_v60 = vmul.f32 %v3113_v16, %v3090_v22  ;;  %v3122_v13 = vmax.f32 %v604_v17, 1e-24  ;;  %v2002_v29 = vpop.eup %2001  ;;  %v1441_v36 = vmul.f32 0.5, %v3090_v22 }
 0x193   :  { %v1649_v50 = vmul.f32 %v1585_v19, %v834_v0  ;;  %v1299_v39 = vsub.f32 1.5, %v1298_v20  ;;  %v987_v14 = vmul.f32 %v1998_v61, %v986_v57  ;;  %2005 = vrsqrt.f32 %v3111_v47 }
 0x194   :  { %v1744_v42 = vmul.f32 %v1680_v56, %v3548_v23  ;;  %v1307_v41 = vmul.f32 %v3113_v16, %v1306_v60  ;;  %v1146_v21 = vmul.f32 %v2002_v29, %v3097_v31  ;;  %vm992_vm6 = vweird.f32 %v1998_v61  ;;  %v3550_v60 = vld [vmem:[#allocation9_spill] sm:$0xff] }
 0x195   :  { %v1713_v15 = vmul.f32 %v1649_v50, %v3549_v54  ;;  %v1300_v9 = vmul.f32 %v1996_v48, %v1299_v39  ;;  %v988_v2 = vmul.f32 0.5, %v987_v14  ;;  %vm1151_vm7 = vweird.f32 %v3097_v31  ;;  %vm993_vm11 = vmor %vm991_vm2, %vm992_vm6  ;;  %v574_v54 = vpop.xlane.xlu1 %573 }
 0x196   :  { %1808 = vst [vmem:[#allocation2 + $0x138] sm:$0xff] %v1744_v42  ;;  %v1308_v27 = vmul.f32 0.5, %v1307_v41  ;;  %v1425_v44 = vmul.f32 0.5, %v3097_v31  ;;  %v1147_v24 = vmul.f32 %v2002_v29, %v1146_v21  ;;  %2007 = vrsqrt.f32 %v3122_v13 }
 0x197   :  { %1777 = vst [vmem:[#allocation2 + $0x40] sm:$0xff] %v1713_v15  ;;  %v1304_v5 = vsel %vm1303_vm5, %v1996_v48, %v1300_v9  ;;  %v989_v52 = vsub.f32 1.5, %v988_v2  ;;  %v2004_v30 = vpop.eup %2003  ;;  %vm1312_vm8 = vweird.f32 %v3113_v16  ;;  %v1394_v40 = vmul.f32 0.5, %v3107_v34  ;;  %v606_v48 = vpop.xlane.xlu2 %605 }
 0x198   :  { %v1504_v3 = vmul.f32 %v1440_v59, %v1304_v5  ;;  %v1309_v46 = vsub.f32 1.5, %v1308_v27  ;;  %v1148_v4 = vmul.f32 0.5, %v1147_v24  ;;  %vm1152_vm9 = vweird.f32 %v2002_v29  ;;  %vm1313_vm13 = vmor %vm1311_vm4, %vm1312_vm8  ;;  %v638_v2 = vpop.xlane.xlu0 %637 }
 0x199   :  { %v990_v63 = vmul.f32 %v1998_v61, %v989_v52  ;;  %v836_v53 = vmul.f32 %v2004_v30, %v3107_v34  ;;  %vm841_vm10 = vweird.f32 %v3107_v34  ;;  %v2006_v38 = vpop.eup %2005  ;;  %vm842_vm12 = vweird.f32 %v2004_v30  ;;  %vm1153_vm15 = vmor %vm1151_vm7, %vm1152_vm9 }
 0x19a   :  { %v1568_v0 = vmul.f32 %v1504_v3, %v1304_v5  ;;  %v1310_v8 = vmul.f32 %v3113_v16, %v1309_v46  ;;  %v3144_v25 = vmax.f32 %v668_v58, 1e-24  ;;  %v1149_v18 = vsub.f32 1.5, %v1148_v4  ;;  %vm843_vm1 = vmor %vm841_vm10, %vm842_vm12  ;;  %v3552_v46 = vld [vmem:[#allocation12_spill] sm:$0xff] }
 0x19b   :  { %v994_v26 = vsel %vm993_vm11, %v1998_v61, %v990_v63  ;;  %v837_v51 = vmul.f32 %v2004_v30, %v836_v53  ;;  %v1156_v10 = vmul.f32 %v2006_v38, %v3111_v47  ;;  %vm1161_vm14 = vweird.f32 %v3111_v47 }
 0x19c   :  { %v1632_v28 = vsub.f32 1.5, %v1568_v0  ;;  %v1473_v32 = vmul.f32 %v1409_v49, %v994_v26  ;;  %v1314_v43 = vsel %vm1313_vm13, %v3113_v16, %v1310_v8  ;;  %v3153_v7 = vmax.f32 %v606_v48, 1e-24  ;;  %v2008_v6 = vpop.eup %2007 }
 0x19d   :  { %v1505_v33 = vmul.f32 %v1441_v36, %v1314_v43  ;;  %v1150_v61 = vmul.f32 %v2002_v29, %v1149_v18  ;;  %v838_v59 = vmul.f32 0.5, %v837_v51  ;;  %v1157_v17 = vmul.f32 %v2006_v38, %v1156_v10 }
 0x19e   :  { %v1696_v19 = vmul.f32 %v1632_v28, %v1304_v5  ;;  %v1537_v22 = vmul.f32 %v1473_v32, %v994_v26  ;;  %vm1162_vm0 = vweird.f32 %v2006_v38  ;;  %v996_v20 = vmul.f32 %v2008_v6, %v3122_v13  ;;  %v3551_v5 = vld [vmem:[#allocation10_spill] sm:$0xff] }
 0x19f   :  { %v1569_v57 = vmul.f32 %v1505_v33, %v1314_v43  ;;  %v1154_v49 = vsel %vm1153_vm15, %v2002_v29, %v1150_v61  ;;  %v839_v56 = vsub.f32 1.5, %v838_v59  ;;  %v1158_v16 = vmul.f32 0.5, %v1157_v17  ;;  %vm1163_vm3 = vmor %vm1161_vm14, %vm1162_vm0  ;;  %v576_v28 = vpop.xlane.xlu2 %575 }
 0x1a0   :  { %v1760_v50 = vmul.f32 %v1696_v19, %v3550_v60  ;;  %v1601_v39 = vsub.f32 1.5, %v1537_v22  ;;  %v1489_v14 = vmul.f32 %v1425_v44, %v1154_v49  ;;  %v997_v23 = vmul.f32 %v2008_v6, %v996_v20  ;;  %v670_v19 = vpop.xlane.xlu1 %669  ;;  %v3554_v22 = vld [vmem:[#allocation13_spill] sm:$0xff] }
 0x1a1   :  { %v1633_v42 = vsub.f32 1.5, %v1569_v57  ;;  %v840_v41 = vmul.f32 %v2004_v30, %v839_v56  ;;  %v1159_v36 = vsub.f32 1.5, %v1158_v16  ;;  %2009 = vrsqrt.f32 %v3144_v25 }
 0x1a2   :  { %1824 = vst [vmem:[#allocation2 + $0x1b8] sm:$0xff] %v1760_v50  ;;  %v1665_v31 = vmul.f32 %v1601_v39, %v994_v26  ;;  %v1553_v15 = vmul.f32 %v1489_v14, %v1154_v49  ;;  %v1426_v29 = vmul.f32 0.5, %v3111_v47  ;;  %v998_v9 = vmul.f32 0.5, %v997_v23  ;;  %v3555_v39 = vld [vmem:[#allocation15_spill] sm:$0xff] }
 0x1a3   :  { %v1697_v21 = vmul.f32 %v1633_v42, %v1314_v43  ;;  %v844_v27 = vsel %vm843_vm1, %v2004_v30, %v840_v41  ;;  %v1160_v44 = vmul.f32 %v2006_v38, %v1159_v36  ;;  %vm1002_vm2 = vweird.f32 %v2008_v6 }
 0x1a4   :  { %v1729_v52 = vmul.f32 %v1665_v31, %v3551_v5  ;;  %v1617_v24 = vsub.f32 1.5, %v1553_v15  ;;  %v1458_v58 = vmul.f32 %v1394_v40, %v844_v27  ;;  %v999_v3 = vsub.f32 1.5, %v998_v9 }
 0x1a5   :  { %v1761_v34 = vmul.f32 %v1697_v21, %v3552_v46  ;;  %v1164_v63 = vsel %vm1163_vm3, %v2006_v38, %v1160_v44  ;;  %vm1001_vm4 = vweird.f32 %v3122_v13  ;;  %2011 = vrsqrt.f32 %v3153_v7  ;;  %v3553_v38 = vld [vmem:[#allocation11_spill] sm:$0xff]  ;;  %v3556_v21 = vld [vmem:[#allocation14_spill] sm:$0xff] }
 0x1a6   :  { %1793 = vst [vmem:[#allocation2 + $0xc0] sm:$0xff] %v1729_v52  ;;  %v1681_v30 = vmul.f32 %v1617_v24, %v1154_v49  ;;  %v1522_v4 = vmul.f32 %v1458_v58, %v844_v27  ;;  %v1490_v53 = vmul.f32 %v1426_v29, %v1164_v63  ;;  %v1000_v48 = vmul.f32 %v2008_v6, %v999_v3  ;;  %vm1003_vm5 = vmor %vm1001_vm4, %vm1002_vm2  ;;  %v608_v49 = vpop.xlane.xlu0 %607 }
 0x1a7   :  { %v2010_v0 = vpop.eup %2009  ;;  %1825 = vst [vmem:[#allocation2 + $0x1c0] sm:$0xff] %v1761_v34  ;;  %v1410_v47 = vmul.f32 0.5, %v3122_v13  ;;  %v3174_v40 = vmax.f32 %v574_v54, 1e-24  ;;  %v3176_v8 = vmax.f32 %v638_v2, 1e-24  ;;  %vm1321_vm6 = vweird.f32 %v3144_v25  ;;  %v672_v58 = vpop.xlane.xlu2 %671 }
 0x1a8   :  { %v1745_v26 = vmul.f32 %v1681_v30, %v3553_v38  ;;  %v1586_v18 = vsub.f32 1.5, %v1522_v4  ;;  %v1554_v51 = vmul.f32 %v1490_v53, %v1164_v63  ;;  %v1004_v10 = vsel %vm1003_vm5, %v2008_v6, %v1000_v48 }
 0x1a9   :  { %v1474_v32 = vmul.f32 %v1410_v47, %v1004_v10  ;;  %v1316_v43 = vmul.f32 %v2010_v0, %v3144_v25  ;;  %2013 = vrsqrt.f32 %v3174_v40  ;;  %v1442_v60 = vmul.f32 0.5, %v3144_v25 }
 0x1aa   :  { %1809 = vst [vmem:[#allocation2 + $0x140] sm:$0xff] %v1745_v26  ;;  %v1650_v33 = vmul.f32 %v1586_v18, %v844_v27  ;;  %v1618_v61 = vsub.f32 1.5, %v1554_v51  ;;  %2015 = vrsqrt.f32 %v3176_v8  ;;  %v3186_v50 = vmax.f32 %v576_v28, 1e-24  ;;  %v640_v51 = vpop.xlane.xlu1 %639 }
 0x1ab   :  { %v2012_v59 = vpop.eup %2011  ;;  %v1538_v13 = vmul.f32 %v1474_v32, %v1004_v10  ;;  %v1317_v17 = vmul.f32 %v2010_v0, %v1316_v43  ;;  %vm1322_vm7 = vweird.f32 %v2010_v0  ;;  %v3189_v42 = vmax.f32 %v670_v19, 1e-24 }
 0x1ac   :  { %v1714_v20 = vmul.f32 %v1650_v33, %v3554_v22  ;;  %v1682_v57 = vmul.f32 %v1618_v61, %v1164_v63  ;;  %v1006_v6 = vmul.f32 %v2012_v59, %v3153_v7  ;;  %2017 = vrsqrt.f32 %v3186_v50  ;;  %vm1323_vm10 = vmor %vm1321_vm6, %vm1322_vm7 }
 0x1ad   :  { %v1602_v56 = vsub.f32 1.5, %v1538_v13  ;;  %v1318_v16 = vmul.f32 0.5, %v1317_v17  ;;  %v3192_v31 = vmax.f32 %v608_v49, 1e-24  ;;  %vm1011_vm8 = vweird.f32 %v3153_v7 }
 0x1ae   :  { %1778 = vst [vmem:[#allocation2 + $0x48] sm:$0xff] %v1714_v20  ;;  %v1746_v14 = vmul.f32 %v1682_v57, %v3555_v39  ;;  %v1007_v23 = vmul.f32 %v2012_v59, %v1006_v6  ;;  %v1411_v29 = vmul.f32 0.5, %v3153_v7  ;;  %vm851_vm9 = vweird.f32 %v3174_v40  ;;  %v3557_v39 = vld [vmem:[#allocation16_spill] sm:$0xff] }
 0x1af   :  { %v2014_v41 = vpop.eup %2013  ;;  %v1666_v36 = vmul.f32 %v1602_v56, %v1004_v10  ;;  %v1319_v54 = vsub.f32 1.5, %v1318_v16  ;;  %2019 = vrsqrt.f32 %v3189_v42  ;;  %vm1012_vm11 = vweird.f32 %v2012_v59 }
 0x1b0   :  { %1810 = vst [vmem:[#allocation2 + $0x148] sm:$0xff] %v1746_v14  ;;  %v1008_v15 = vmul.f32 0.5, %v1007_v23  ;;  %v846_v9 = vmul.f32 %v2014_v41, %v3174_v40  ;;  %v2016_v2 = vpop.eup %2015  ;;  %v1395_v46 = vmul.f32 0.5, %v3174_v40  ;;  %vm1171_vm12 = vweird.f32 %v3176_v8  ;;  %vm1013_vm13 = vmor %vm1011_vm8, %vm1012_vm11 }
 0x1b1   :  { %v1730_v27 = vmul.f32 %v1666_v36, %v3556_v21  ;;  %v1320_v44 = vmul.f32 %v2010_v0, %v1319_v54  ;;  %v1166_v24 = vmul.f32 %v2016_v2, %v3176_v8  ;;  %2021 = vrsqrt.f32 %v3192_v31  ;;  %v578_v21 = vpop.xlane.xlu0 %577 }
 0x1b2   :  { %v1009_v5 = vsub.f32 1.5, %v1008_v15  ;;  %v847_v52 = vmul.f32 %v2014_v41, %v846_v9  ;;  %v3207_v25 = vpop.eup %2017  ;;  %vm852_vm14 = vweird.f32 %v2014_v41  ;;  %v1427_v53 = vmul.f32 0.5, %v3176_v8 }
 0x1b3   :  { %1794 = vst [vmem:[#allocation2 + $0xc8] sm:$0xff] %v1730_v27  ;;  %v1324_v3 = vsel %vm1323_vm10, %v2010_v0, %v1320_v44  ;;  %v1167_v4 = vmul.f32 %v2016_v2, %v1166_v24  ;;  %v3213_v48 = vmul.f32 0.5, %v3186_v50  ;;  %v3215_v0 = vmax.f32 %v672_v58, 1e-24  ;;  %vm853_vm2 = vmor %vm851_vm9, %vm852_vm14 }
 0x1b4   :  { %v1506_v34 = vmul.f32 %v1442_v60, %v1324_v3  ;;  %v1010_v63 = vmul.f32 %v2012_v59, %v1009_v5  ;;  %v848_v30 = vmul.f32 0.5, %v847_v52  ;;  %vm1172_vm15 = vweird.f32 %v2016_v2  ;;  %v3558_v5 = vld [vmem:[#allocation18_spill] sm:$0xff] }
 0x1b5   :  { %v1168_v18 = vmul.f32 0.5, %v1167_v4  ;;  %v2020_v10 = vpop.eup %2019  ;;  %v856_v7 = vmul.f32 %v3207_v25, %v3186_v50  ;;  %vm861_vm0 = vweird.f32 %v3186_v50  ;;  %2023 = vrsqrt.f32 %v3215_v0  ;;  %vm1173_vm3 = vmor %vm1171_vm12, %vm1172_vm15 }
 0x1b6   :  { %v1570_v47 = vmul.f32 %v1506_v34, %v1324_v3  ;;  %v1014_v38 = vsel %vm1013_vm13, %v2012_v59, %v1010_v63  ;;  %v849_v26 = vsub.f32 1.5, %v848_v30  ;;  %v1326_v61 = vmul.f32 %v2020_v10, %v3189_v42  ;;  %v642_v63 = vpop.xlane.xlu2 %641 }
 0x1b7   :  { %v1475_v28 = vmul.f32 %v1411_v29, %v1014_v38  ;;  %v1169_v33 = vsub.f32 1.5, %v1168_v18  ;;  %vm1331_vm1 = vweird.f32 %v3189_v42  ;;  %v3223_v59 = vpop.eup %2021  ;;  %v857_v17 = vmul.f32 %v3207_v25, %v856_v7 }
 0x1b8   :  { %v1634_v32 = vsub.f32 1.5, %v1570_v47  ;;  %v850_v43 = vmul.f32 %v2014_v41, %v849_v26  ;;  %v1443_v19 = vmul.f32 0.5, %v3189_v42  ;;  %v3230_v22 = vmax.f32 %v640_v51, 1e-24  ;;  %v610_v47 = vpop.xlane.xlu1 %609  ;;  %v3559_v51 = vld [vmem:[#allocation17_spill] sm:$0xff]  ;;  %v3560_v42 = vld [vmem:[#allocation19_spill] sm:$0xff] }
 0x1b9   :  { %v1539_v13 = vmul.f32 %v1475_v28, %v1014_v38  ;;  %v1170_v6 = vmul.f32 %v2016_v2, %v1169_v33  ;;  %v1327_v49 = vmul.f32 %v2020_v10, %v1326_v61  ;;  %v858_v60 = vmul.f32 0.5, %v857_v17 }
 0x1ba   :  { %v1698_v20 = vmul.f32 %v1634_v32, %v1324_v3  ;;  %v854_v57 = vsel %vm853_vm2, %v2014_v41, %v850_v43  ;;  %v1016_v40 = vmul.f32 %v3223_v59, %v3192_v31  ;;  %vm862_vm4 = vweird.f32 %v3207_v25 }
 0x1bb   :  { %v1603_v56 = vsub.f32 1.5, %v1539_v13  ;;  %v1459_v16 = vmul.f32 %v1395_v46, %v854_v57  ;;  %v1174_v23 = vsel %vm1173_vm3, %v2016_v2, %v1170_v6  ;;  %v1328_v36 = vmul.f32 0.5, %v1327_v49  ;;  %v2024_v41 = vpop.eup %2023  ;;  %vm863_vm7 = vmor %vm861_vm0, %vm862_vm4 }
 0x1bc   :  { %v1762_v14 = vmul.f32 %v1698_v20, %v3557_v39  ;;  %vm1021_vm5 = vweird.f32 %v3192_v31  ;;  %v1491_v29 = vmul.f32 %v1427_v53, %v1174_v23  ;;  %v859_v9 = vsub.f32 1.5, %v858_v60 }
 0x1bd   :  { %v1667_v54 = vmul.f32 %v1603_v56, %v1014_v38  ;;  %v1523_v15 = vmul.f32 %v1459_v16, %v854_v57  ;;  %v1329_v8 = vsub.f32 1.5, %v1328_v36  ;;  %vm1332_vm6 = vweird.f32 %v2020_v10 }
 0x1be   :  { %1826 = vst [vmem:[#allocation2 + $0x1c8] sm:$0xff] %v1762_v14  ;;  %v1017_v27 = vmul.f32 %v3223_v59, %v1016_v40  ;;  %v1336_v44 = vmul.f32 %v2024_v41, %v3215_v0  ;;  %v1555_v24 = vmul.f32 %v1491_v29, %v1174_v23  ;;  %v860_v58 = vmul.f32 %v3207_v25, %v859_v9  ;;  %vm1333_vm9 = vmor %vm1331_vm1, %vm1332_vm6  ;;  %v612_v9 = vpop.xlane.xlu2 %611 }
 0x1bf   :  { %v1731_v2 = vmul.f32 %v1667_v54, %v3558_v5  ;;  %v1587_v52 = vsub.f32 1.5, %v1523_v15  ;;  %v1330_v3 = vmul.f32 %v2020_v10, %v1329_v8  ;;  %vm1022_vm8 = vweird.f32 %v3223_v59  ;;  %v3561_v54 = vld [vmem:[#allocation20_spill] sm:$0xff] }
 0x1c0   :  { %v1018_v46 = vmul.f32 0.5, %v1017_v27  ;;  %v1337_v34 = vmul.f32 %v2024_v41, %v1336_v44  ;;  %v1619_v4 = vsub.f32 1.5, %v1555_v24  ;;  %v864_v53 = vsel %vm863_vm7, %v3207_v25, %v860_v58  ;;  %vm1023_vm11 = vmor %vm1021_vm5, %vm1022_vm8  ;;  %v580_v44 = vpop.xlane.xlu1 %579 }
 0x1c1   :  { %1795 = vst [vmem:[#allocation2 + $0xd0] sm:$0xff] %v1731_v2  ;;  %v1651_v30 = vmul.f32 %v1587_v52, %v854_v57  ;;  %2025 = vrsqrt.f32 %v3230_v22  ;;  %v1460_v50 = vmul.f32 %v3213_v48, %v864_v53  ;;  %v1334_v38 = vsel %vm1333_vm9, %v2020_v10, %v1330_v3 }
 0x1c2   :  { %v1019_v26 = vsub.f32 1.5, %v1018_v46  ;;  %v1338_v18 = vmul.f32 0.5, %v1337_v34  ;;  %v1683_v7 = vmul.f32 %v1619_v4, %v1174_v23  ;;  %v1507_v32 = vmul.f32 %v1443_v19, %v1334_v38 }
 0x1c3   :  { %v1715_v28 = vmul.f32 %v1651_v30, %v3559_v51  ;;  %v1412_v43 = vmul.f32 0.5, %v3192_v31  ;;  %v1524_v33 = vmul.f32 %v1460_v50, %v864_v53  ;;  %vm1342_vm10 = vweird.f32 %v2024_v41  ;;  %v674_v31 = vpop.xlane.xlu0 %673  ;;  %v3563_v30 = vld [vmem:[#allocation22_spill] sm:$0xff] }
 0x1c4   :  { %v1020_v25 = vmul.f32 %v3223_v59, %v1019_v26  ;;  %v1339_v61 = vsub.f32 1.5, %v1338_v18  ;;  %v1747_v13 = vmul.f32 %v1683_v7, %v3560_v42  ;;  %v1571_v17 = vmul.f32 %v1507_v32, %v1334_v38  ;;  %v3564_v18 = vld [vmem:[#allocation24_spill] sm:$0xff] }
 0x1c5   :  { %1779 = vst [vmem:[#allocation2 + $0x50] sm:$0xff] %v1715_v28  ;;  %vm1341_vm12 = vweird.f32 %v3215_v0  ;;  %v3264_v48 = vmax.f32 %v578_v21, 1e-24  ;;  %v1588_v10 = vsub.f32 1.5, %v1524_v33  ;;  %v3267_v57 = vmax.f32 %v642_v63, 1e-24 }
 0x1c6   :  { %v1024_v19 = vsel %vm1023_vm11, %v3223_v59, %v1020_v25  ;;  %v1340_v20 = vmul.f32 %v2024_v41, %v1339_v61  ;;  %1811 = vst [vmem:[#allocation2 + $0x150] sm:$0xff] %v1747_v13  ;;  %v1635_v49 = vsub.f32 1.5, %v1571_v17  ;;  %vm1343_vm13 = vmor %vm1341_vm12, %vm1342_vm10  ;;  %v1444_v16 = vmul.f32 0.5, %v3215_v0  ;;  %v3562_v21 = vld [vmem:[#allocation21_spill] sm:$0xff] }
 0x1c7   :  { %v2026_v6 = vpop.eup %2025  ;;  %v1476_v56 = vmul.f32 %v1412_v43, %v1024_v19  ;;  %2027 = vrsqrt.f32 %v3264_v48  ;;  %v1652_v60 = vmul.f32 %v1588_v10, %v864_v53  ;;  %v3273_v14 = vmax.f32 %v610_v47, 1e-24 }
 0x1c8   :  { %v1344_v40 = vsel %vm1343_vm13, %v2024_v41, %v1340_v20  ;;  %v1176_v39 = vmul.f32 %v2026_v6, %v3230_v22  ;;  %v1699_v59 = vmul.f32 %v1635_v49, %v1334_v38  ;;  %2029 = vrsqrt.f32 %v3267_v57 }
 0x1c9   :  { %v1540_v23 = vmul.f32 %v1476_v56, %v1024_v19  ;;  %v1508_v36 = vmul.f32 %v1444_v16, %v1344_v40  ;;  %v1716_v15 = vmul.f32 %v1652_v60, %v3561_v54  ;;  %vm1181_vm14 = vweird.f32 %v3230_v22 }
 0x1ca   :  { %v1177_v29 = vmul.f32 %v2026_v6, %v1176_v39  ;;  %v1763_v0 = vmul.f32 %v1699_v59, %v3562_v21  ;;  %v1428_v5 = vmul.f32 0.5, %v3230_v22  ;;  %2031 = vrsqrt.f32 %v3273_v14 }
 0x1cb   :  { %v1604_v8 = vsub.f32 1.5, %v1540_v23  ;;  %v1572_v27 = vmul.f32 %v1508_v36, %v1344_v40  ;;  %1780 = vst [vmem:[#allocation2 + $0x58] sm:$0xff] %v1716_v15  ;;  %v3281_v58 = vmax.f32 %v674_v31, 1e-24  ;;  %v3283_v3 = vmax.f32 %v612_v9, 1e-24  ;;  %v644_v43 = vpop.xlane.xlu0 %643  ;;  %v582_v31 = vpop.xlane.xlu2 %581 }
 0x1cc   :  { %v1178_v41 = vmul.f32 0.5, %v1177_v29  ;;  %1827 = vst [vmem:[#allocation2 + $0x1d0] sm:$0xff] %v1763_v0  ;;  %vm1182_vm15 = vweird.f32 %v2026_v6  ;;  %v3286_v63 = vmax.f32 %v580_v44, 1e-24  ;;  %vm871_vm0 = vweird.f32 %v3264_v48 }
 0x1cd   :  { %v2028_v2 = vpop.eup %2027  ;;  %v1668_v52 = vmul.f32 %v1604_v8, %v1024_v19  ;;  %v1636_v24 = vsub.f32 1.5, %v1572_v27  ;;  %2033 = vrsqrt.f32 %v3281_v58  ;;  %v1397_v26 = vmul.f32 0.5, %v3264_v48  ;;  %vm1183_vm1 = vmor %vm1181_vm14, %vm1182_vm15 }
 0x1ce   :  { %v1179_v46 = vsub.f32 1.5, %v1178_v41  ;;  %v866_v34 = vmul.f32 %v2028_v2, %v3264_v48  ;;  %v3291_v47 = vpop.eup %2029  ;;  %2035 = vrsqrt.f32 %v3283_v3  ;;  %vm1191_vm2 = vweird.f32 %v3267_v57 }
 0x1cf   :  { %v1732_v4 = vmul.f32 %v1668_v52, %v3563_v30  ;;  %v1700_v53 = vmul.f32 %v1636_v24, %v1344_v40  ;;  %v1186_v28 = vmul.f32 %v3291_v47, %v3267_v57  ;;  %v1429_v7 = vmul.f32 0.5, %v3267_v57  ;;  %v3565_v52 = vld [vmem:[#allocation23_spill] sm:$0xff] }
 0x1d0   :  { %v1180_v50 = vmul.f32 %v2026_v6, %v1179_v46  ;;  %v867_v38 = vmul.f32 %v2028_v2, %v866_v34  ;;  %v3303_v32 = vmul.f32 0.5, %v3273_v14  ;;  %v2032_v33 = vpop.eup %2031  ;;  %vm872_vm3 = vweird.f32 %v2028_v2 }
 0x1d1   :  { %1796 = vst [vmem:[#allocation2 + $0xd8] sm:$0xff] %v1732_v4  ;;  %v1764_v51 = vmul.f32 %v1700_v53, %v3564_v18  ;;  %2037 = vrsqrt.f32 %v3286_v63  ;;  %v1187_v42 = vmul.f32 %v3291_v47, %v1186_v28  ;;  %v1026_v13 = vmul.f32 %v2032_v33, %v3273_v14  ;;  %vm873_vm8 = vmor %vm871_vm0, %vm872_vm3 }
 0x1d2   :  { %v1184_v25 = vsel %vm1183_vm1, %v2026_v6, %v1180_v50  ;;  %v868_v61 = vmul.f32 0.5, %v867_v38  ;;  %vm1031_vm4 = vweird.f32 %v3273_v14  ;;  %v3310_v17 = vmul.f32 0.5, %v3281_v58 }
 0x1d3   :  { %1828 = vst [vmem:[#allocation2 + $0x1d8] sm:$0xff] %v1764_v51  ;;  %v1492_v22 = vmul.f32 %v1428_v5, %v1184_v25  ;;  %vm1192_vm5 = vweird.f32 %v3291_v47  ;;  %v3314_v19 = vmul.f32 0.5, %v3283_v3  ;;  %v3316_v20 = vmax.f32 %v644_v43, 1e-24  ;;  %v2034_v6 = vpop.eup %2033  ;;  %v646_v51 = vpop.xlane.xlu1 %645 }
 0x1d4   :  { %v869_v10 = vsub.f32 1.5, %v868_v61  ;;  %v1188_v56 = vmul.f32 0.5, %v1187_v42  ;;  %v1027_v16 = vmul.f32 %v2032_v33, %v1026_v13  ;;  %vm1032_vm6 = vweird.f32 %v2032_v33  ;;  %v3318_v60 = vpop.eup %2035  ;;  %vm1193_vm11 = vmor %vm1191_vm2, %vm1192_vm5 }
 0x1d5   :  { %v1556_v49 = vmul.f32 %v1492_v22, %v1184_v25  ;;  %v1346_v39 = vmul.f32 %v2034_v6, %v3281_v58  ;;  %vm1351_vm7 = vweird.f32 %v3281_v58  ;;  %v3323_v59 = vmul.f32 0.5, %v3286_v63  ;;  %vm1033_vm14 = vmor %vm1031_vm4, %vm1032_vm6 }
 0x1d6   :  { %v870_v40 = vmul.f32 %v2028_v2, %v869_v10  ;;  %2039 = vrsqrt.f32 %v3316_v20  ;;  %v1189_v36 = vsub.f32 1.5, %v1188_v56  ;;  %v1028_v54 = vmul.f32 0.5, %v1027_v16 }
 0x1d7   :  { %v1620_v23 = vsub.f32 1.5, %v1556_v49  ;;  %v1036_v15 = vmul.f32 %v3318_v60, %v3283_v3  ;;  %v3331_v29 = vpop.eup %2037  ;;  %v1347_v21 = vmul.f32 %v2034_v6, %v1346_v39  ;;  %vm1352_vm9 = vweird.f32 %v2034_v6  ;;  %v3566_v49 = vld [vmem:[#allocation25_spill] sm:$0xff] }
 0x1d8   :  { %v874_v9 = vsel %vm873_vm8, %v2028_v2, %v870_v40  ;;  %vm1041_vm10 = vweird.f32 %v3283_v3  ;;  %v3334_v0 = vmax.f32 %v582_v31, 1e-24  ;;  %v1190_v44 = vmul.f32 %v3291_v47, %v1189_v36  ;;  %vm1353_vm0 = vmor %vm1351_vm7, %vm1352_vm9  ;;  %v614_v31 = vpop.xlane.xlu0 %613  ;;  %v648_v40 = vpop.xlane.xlu2 %647 }
 0x1d9   :  { %v1684_v8 = vmul.f32 %v1620_v23, %v1184_v25  ;;  %v1461_v27 = vmul.f32 %v1397_v26, %v874_v9  ;;  %v1029_v48 = vsub.f32 1.5, %v1028_v54  ;;  %v1348_v41 = vmul.f32 0.5, %v1347_v21 }
 0x1da   :  { %v1037_v5 = vmul.f32 %v3318_v60, %v1036_v15  ;;  %vm1042_vm12 = vweird.f32 %v3318_v60  ;;  %v876_v2 = vmul.f32 %v3331_v29, %v3286_v63  ;;  %v1194_v34 = vsel %vm1193_vm11, %v3291_v47, %v1190_v44 }
 0x1db   :  { %v1748_v24 = vmul.f32 %v1684_v8, %v3565_v52  ;;  %v1525_v46 = vmul.f32 %v1461_v27, %v874_v9  ;;  %v1030_v30 = vmul.f32 %v2032_v33, %v1029_v48  ;;  %vm881_vm13 = vweird.f32 %v3286_v63  ;;  %vm1043_vm2 = vmor %vm1041_vm10, %vm1042_vm12  ;;  %v3568_v48 = vld [vmem:[#allocation27_spill] sm:$0xff] }
 0x1dc   :  { %v2040_v4 = vpop.eup %2039  ;;  %v1493_v53 = vmul.f32 %v1429_v7, %v1194_v34  ;;  %v1349_v57 = vsub.f32 1.5, %v1348_v41  ;;  %v1038_v50 = vmul.f32 0.5, %v1037_v5  ;;  %v877_v38 = vmul.f32 %v3331_v29, %v876_v2 }
 0x1dd   :  { %1812 = vst [vmem:[#allocation2 + $0x158] sm:$0xff] %v1748_v24  ;;  %v1589_v26 = vsub.f32 1.5, %v1525_v46  ;;  %v1034_v18 = vsel %vm1033_vm14, %v2032_v33, %v1030_v30  ;;  %vm882_vm15 = vweird.f32 %v3331_v29  ;;  %v1196_v47 = vmul.f32 %v2040_v4, %v3316_v20 }
 0x1de   :  { %v1557_v28 = vmul.f32 %v1493_v53, %v1194_v34  ;;  %v1477_v43 = vmul.f32 %v3303_v32, %v1034_v18  ;;  %v1350_v7 = vmul.f32 %v2034_v6, %v1349_v57  ;;  %v1039_v25 = vsub.f32 1.5, %v1038_v50  ;;  %vm883_vm3 = vmor %vm881_vm13, %vm882_vm15  ;;  %v3569_v57 = vld [vmem:[#allocation28_spill] sm:$0xff] }
 0x1df   :  { %v1653_v61 = vmul.f32 %v1589_v26, %v874_v9  ;;  %v878_v14 = vmul.f32 0.5, %v877_v38  ;;  %v1197_v22 = vmul.f32 %v2040_v4, %v1196_v47  ;;  %vm1202_vm1 = vweird.f32 %v2040_v4  ;;  %v3567_v9 = vld [vmem:[#allocation26_spill] sm:$0xff] }
 0x1e0   :  { %v1621_v42 = vsub.f32 1.5, %v1557_v28  ;;  %v1541_v33 = vmul.f32 %v1477_v43, %v1034_v18  ;;  %v1354_v13 = vsel %vm1353_vm0, %v2034_v6, %v1350_v7  ;;  %v1040_v10 = vmul.f32 %v3318_v60, %v1039_v25  ;;  %v584_v28 = vpop.xlane.xlu0 %583  ;;  %v678_v43 = vpop.xlane.xlu2 %677 }
 0x1e1   :  { %v1717_v56 = vmul.f32 %v1653_v61, %v3566_v49  ;;  %v1509_v16 = vmul.f32 %v3310_v17, %v1354_v13  ;;  %v879_v32 = vsub.f32 1.5, %v878_v14  ;;  %v1198_v58 = vmul.f32 0.5, %v1197_v22 }
 0x1e2   :  { %v1685_v39 = vmul.f32 %v1621_v42, %v1194_v34  ;;  %v1605_v23 = vsub.f32 1.5, %v1541_v33  ;;  %v1044_v36 = vsel %vm1043_vm2, %v3318_v60, %v1040_v10  ;;  %2041 = vrsqrt.f32 %v3334_v0  ;;  %v3571_v33 = vld [vmem:[#allocation31_spill] sm:$0xff] }
 0x1e3   :  { %1781 = vst [vmem:[#allocation2 + $0x60] sm:$0xff] %v1717_v56  ;;  %v1573_v6 = vmul.f32 %v1509_v16, %v1354_v13  ;;  %v1478_v54 = vmul.f32 %v3314_v19, %v1044_v36  ;;  %v880_v17 = vmul.f32 %v3331_v29, %v879_v32  ;;  %v1199_v15 = vsub.f32 1.5, %v1198_v58 }
 0x1e4   :  { %v1749_v3 = vmul.f32 %v1685_v39, %v3567_v9  ;;  %v1669_v21 = vmul.f32 %v1605_v23, %v1034_v18  ;;  %vm1201_vm4 = vweird.f32 %v3316_v20  ;;  %v1430_v60 = vmul.f32 0.5, %v3316_v20  ;;  %v616_v20 = vpop.xlane.xlu1 %615 }
 0x1e5   :  { %v1637_v8 = vsub.f32 1.5, %v1573_v6  ;;  %v1542_v27 = vmul.f32 %v1478_v54, %v1044_v36  ;;  %v884_v44 = vsel %vm883_vm3, %v3331_v29, %v880_v17  ;;  %v1200_v19 = vmul.f32 %v2040_v4, %v1199_v15  ;;  %vm1203_vm5 = vmor %vm1201_vm4, %vm1202_vm1 }
 0x1e6   :  { %1813 = vst [vmem:[#allocation2 + $0x160] sm:$0xff] %v1749_v3  ;;  %v1733_v41 = vmul.f32 %v1669_v21, %v3568_v48  ;;  %v1462_v5 = vmul.f32 %v3323_v59, %v884_v44  ;;  %v3380_v2 = vmax.f32 %v646_v51, 1e-24  ;;  %v3382_v63 = vmax.f32 %v614_v31, 1e-24  ;;  %v3572_v31 = vld [vmem:[#allocation30_spill] sm:$0xff] }
 0x1e7   :  { %v1701_v52 = vmul.f32 %v1637_v8, %v1354_v13  ;;  %v1606_v24 = vsub.f32 1.5, %v1542_v27  ;;  %v1204_v46 = vsel %vm1203_vm5, %v2040_v4, %v1200_v19  ;;  %v3385_v53 = vmax.f32 %v648_v40, 1e-24  ;;  %v3570_v4 = vld [vmem:[#allocation29_spill] sm:$0xff] }
 0x1e8   :  { %v2042_v34 = vpop.eup %2041  ;;  %1797 = vst [vmem:[#allocation2 + $0xe0] sm:$0xff] %v1733_v41  ;;  %v1526_v30 = vmul.f32 %v1462_v5, %v884_v44  ;;  %v1494_v29 = vmul.f32 %v1430_v60, %v1204_v46  ;;  %2043 = vrsqrt.f32 %v3380_v2  ;;  %vm891_vm6 = vweird.f32 %v3334_v0 }
 0x1e9   :  { %v1765_v59 = vmul.f32 %v1701_v52, %v3569_v57  ;;  %v1670_v50 = vmul.f32 %v1606_v24, %v1044_v36  ;;  %v886_v38 = vmul.f32 %v2042_v34, %v3334_v0  ;;  %2045 = vrsqrt.f32 %v3382_v63  ;;  %v680_v24 = vpop.xlane.xlu0 %679 }
 0x1ea   :  { %v1590_v26 = vsub.f32 1.5, %v1526_v30  ;;  %v1558_v18 = vmul.f32 %v1494_v29, %v1204_v46  ;;  %2047 = vrsqrt.f32 %v3385_v53  ;;  %v1399_v14 = vmul.f32 0.5, %v3334_v0 }
 0x1eb   :  { %1829 = vst [vmem:[#allocation2 + $0x1e0] sm:$0xff] %v1765_v59  ;;  %v1734_v47 = vmul.f32 %v1670_v50, %v3570_v4  ;;  %v887_v51 = vmul.f32 %v2042_v34, %v886_v38  ;;  %v3394_v22 = vmax.f32 %v616_v20, 1e-24  ;;  %v3397_v49 = vmax.f32 %v584_v28, 1e-24 }
 0x1ec   :  { %v1654_v7 = vmul.f32 %v1590_v26, %v884_v44  ;;  %v1622_v25 = vsub.f32 1.5, %v1558_v18  ;;  %v3399_v56 = vmax.f32 %v678_v43, 1e-24  ;;  %vm892_vm7 = vweird.f32 %v2042_v34  ;;  %v676_v17 = vpop.xlane.xlu1 %675 }
 0x1ed   :  { %1798 = vst [vmem:[#allocation2 + $0xe8] sm:$0xff] %v1734_v47  ;;  %v888_v61 = vmul.f32 0.5, %v887_v51  ;;  %2049 = vrsqrt.f32 %v3394_v22  ;;  %vm1211_vm8 = vweird.f32 %v3380_v2  ;;  %v1431_v39 = vmul.f32 0.5, %v3380_v2  ;;  %vm893_vm10 = vmor %vm891_vm6, %vm892_vm7 }
 0x1ee   :  { %v2044_v42 = vpop.eup %2043  ;;  %v1718_v13 = vmul.f32 %v1654_v7, %v3571_v33  ;;  %v1686_v10 = vmul.f32 %v1622_v25, %v1204_v46  ;;  %2051 = vrsqrt.f32 %v3397_v49  ;;  %vm1051_vm9 = vweird.f32 %v3382_v63 }
 0x1ef   :  { %v889_v16 = vsub.f32 1.5, %v888_v61  ;;  %v1206_v32 = vmul.f32 %v2044_v42, %v3380_v2  ;;  %v2046_v58 = vpop.eup %2045  ;;  %v1415_v54 = vmul.f32 0.5, %v3382_v63  ;;  %vm1212_vm11 = vweird.f32 %v2044_v42 }
 0x1f0   :  { %1782 = vst [vmem:[#allocation2 + $0x68] sm:$0xff] %v1718_v13  ;;  %v1750_v40 = vmul.f32 %v1686_v10, %v3572_v31  ;;  %v1046_v6 = vmul.f32 %v2046_v58, %v3382_v63  ;;  %v2048_v15 = vpop.eup %2047  ;;  %v1432_v9 = vmul.f32 0.5, %v3385_v53  ;;  %v3415_v3 = vmul.f32 0.5, %v3394_v22  ;;  %vm1213_vm1 = vmor %vm1211_vm8, %vm1212_vm11  ;;  %v3573_v10 = vld [vmem:[#allocation32_spill] sm:$0xff] }
 0x1f1   :  { %v890_v23 = vmul.f32 %v2042_v34, %v889_v16  ;;  %v1207_v36 = vmul.f32 %v2044_v42, %v1206_v32  ;;  %2053 = vrsqrt.f32 %v3399_v56  ;;  %v1216_v27 = vmul.f32 %v2048_v15, %v3385_v53 }
 0x1f2   :  { %1814 = vst [vmem:[#allocation2 + $0x168] sm:$0xff] %v1750_v40  ;;  %v1047_v8 = vmul.f32 %v2046_v58, %v1046_v6  ;;  %vm1221_vm12 = vweird.f32 %v3385_v53  ;;  %vm1052_vm13 = vweird.f32 %v2046_v58  ;;  %v3421_v0 = vmul.f32 0.5, %v3397_v49 }
 0x1f3   :  { %v894_v21 = vsel %vm893_vm10, %v2042_v34, %v890_v23  ;;  %v1208_v60 = vmul.f32 0.5, %v1207_v36  ;;  %v3423_v19 = vmax.f32 %v676_v17, 1e-24  ;;  %v2050_v48 = vpop.eup %2049  ;;  %v1217_v52 = vmul.f32 %v2048_v15, %v1216_v27  ;;  %vm1053_vm3 = vmor %vm1051_vm9, %vm1052_vm13 }
 0x1f4   :  { %v1463_v44 = vmul.f32 %v1399_v14, %v894_v21  ;;  %v1048_v5 = vmul.f32 0.5, %v1047_v8  ;;  %vm1222_vm14 = vweird.f32 %v2048_v15  ;;  %v2052_v46 = vpop.eup %2051  ;;  %v1056_v34 = vmul.f32 %v2050_v48, %v3394_v22 }
 0x1f5   :  { %v1209_v41 = vsub.f32 1.5, %v1208_v60  ;;  %vm1061_vm15 = vweird.f32 %v3394_v22  ;;  %v3428_v30 = vmul.f32 0.5, %v3399_v56  ;;  %2055 = vrsqrt.f32 %v3423_v19  ;;  %vm1223_vm6 = vmor %vm1221_vm12, %vm1222_vm14 }
 0x1f6   :  { %v1527_v20 = vmul.f32 %v1463_v44, %v894_v21  ;;  %v1049_v57 = vsub.f32 1.5, %v1048_v5  ;;  %v1218_v59 = vmul.f32 0.5, %v1217_v52  ;;  %v896_v50 = vmul.f32 %v2052_v46, %v3397_v49 }
 0x1f7   :  { %v1210_v29 = vmul.f32 %v2044_v42, %v1209_v41  ;;  %vm901_vm0 = vweird.f32 %v3397_v49  ;;  %v3433_v38 = vpop.eup %2053  ;;  %v1057_v18 = vmul.f32 %v2050_v48, %v1056_v34  ;;  %vm1062_vm2 = vweird.f32 %v2050_v48 }
 0x1f8   :  { %v1591_v26 = vsub.f32 1.5, %v1527_v20  ;;  %v3438_v4 = vmax.f32 %v680_v24, 1e-24  ;;  %v1050_v51 = vmul.f32 %v2046_v58, %v1049_v57  ;;  %v1219_v28 = vsub.f32 1.5, %v1218_v59  ;;  %vm1063_vm7 = vmor %vm1061_vm15, %vm1062_vm2 }
 0x1f9   :  { %v1214_v47 = vsel %vm1213_vm1, %v2044_v42, %v1210_v29  ;;  %v897_v43 = vmul.f32 %v2052_v46, %v896_v50  ;;  %v1058_v61 = vmul.f32 0.5, %v1057_v18  ;;  %v1366_v14 = vmul.f32 %v3433_v38, %v3399_v56 }
 0x1fa   :  { %v1655_v7 = vmul.f32 %v1591_v26, %v894_v21  ;;  %v1495_v25 = vmul.f32 %v1431_v39, %v1214_v47  ;;  %v1054_v2 = vsel %vm1053_vm3, %v2046_v58, %v1050_v51  ;;  %v1220_v33 = vmul.f32 %v2048_v15, %v1219_v28 }
 0x1fb   :  { %v898_v13 = vmul.f32 0.5, %v897_v43  ;;  %vm902_vm4 = vweird.f32 %v2052_v46  ;;  %vm1371_vm5 = vweird.f32 %v3399_v56  ;;  %v2056_v42 = vpop.eup %2055  ;;  %v1479_v31 = vmul.f32 %v1415_v54, %v1054_v2 }
 0x1fc   :  { %v1719_v16 = vmul.f32 %v1655_v7, %v3573_v10  ;;  %v1559_v32 = vmul.f32 %v1495_v25, %v1214_v47  ;;  %v1059_v63 = vsub.f32 1.5, %v1058_v61  ;;  %v1224_v40 = vsel %vm1223_vm6, %v2048_v15, %v1220_v33  ;;  %vm903_vm9 = vmor %vm901_vm0, %vm902_vm4 }
 0x1fd   :  { %v899_v39 = vsub.f32 1.5, %v898_v13  ;;  %v1367_v23 = vmul.f32 %v3433_v38, %v1366_v14  ;;  %v1356_v58 = vmul.f32 %v2056_v42, %v3423_v19  ;;  %v1543_v6 = vmul.f32 %v1479_v31, %v1054_v2 }
 0x1fe   :  { %1783 = vst [vmem:[#allocation2 + $0x70] sm:$0xff] %v1719_v16  ;;  %v1623_v36 = vsub.f32 1.5, %v1559_v32  ;;  %v1496_v17 = vmul.f32 %v1432_v9, %v1224_v40  ;;  %v1060_v21 = vmul.f32 %v2050_v48, %v1059_v63  ;;  %vm1372_vm8 = vweird.f32 %v3433_v38 }
 0x1ff   :  { %v900_v54 = vmul.f32 %v2052_v46, %v899_v39  ;;  %v1368_v60 = vmul.f32 0.5, %v1367_v23  ;;  %v1357_v53 = vmul.f32 %v2056_v42, %v1356_v58  ;;  %v1607_v8 = vsub.f32 1.5, %v1543_v6  ;;  %vm1373_vm11 = vmor %vm1371_vm5, %vm1372_vm8 }
 0x200   :  { %v1687_v15 = vmul.f32 %v1623_v36, %v1214_v47  ;;  %v1560_v27 = vmul.f32 %v1496_v17, %v1224_v40  ;;  %v1064_v44 = vsel %vm1063_vm7, %v2050_v48, %v1060_v21  ;;  %vm1362_vm10 = vweird.f32 %v2056_v42 }
 0x201   :  { %v1480_v9 = vmul.f32 %v3415_v3, %v1064_v44  ;;  %v904_v41 = vsel %vm903_vm9, %v2052_v46, %v900_v54  ;;  %v1369_v5 = vsub.f32 1.5, %v1368_v60  ;;  %v1358_v52 = vmul.f32 0.5, %v1357_v53 }
 0x202   :  { %v1751_v22 = vmul.f32 %v1687_v15, %v2713_v12  ;;  %v1671_v24 = vmul.f32 %v1607_v8, %v1054_v2  ;;  %v1624_v20 = vsub.f32 1.5, %v1560_v27  ;;  %v1464_v34 = vmul.f32 %v3421_v0, %v904_v41 }
 0x203   :  { %v1544_v29 = vmul.f32 %v1480_v9, %v1064_v44  ;;  %v1370_v57 = vmul.f32 %v3433_v38, %v1369_v5  ;;  %v1359_v59 = vsub.f32 1.5, %v1358_v52  ;;  %2057 = vrsqrt.f32 %v3438_v4 }
 0x204   :  { %1815 = vst [vmem:[#allocation2 + $0x170] sm:$0xff] %v1751_v22  ;;  %v1735_v49 = vmul.f32 %v1671_v24, %v2717_v45  ;;  %v1688_v48 = vmul.f32 %v1624_v20, %v1224_v40  ;;  %v1528_v50 = vmul.f32 %v1464_v34, %v904_v41  ;;  %vm1361_vm12 = vweird.f32 %v3423_v19 }
 0x205   :  { %v1608_v12 = vsub.f32 1.5, %v1544_v29  ;;  %v1374_v3 = vsel %vm1373_vm11, %v3433_v38, %v1370_v57  ;;  %v1360_v0 = vmul.f32 %v2056_v42, %v1359_v59  ;;  %vm1363_vm13 = vmor %vm1361_vm12, %vm1362_vm10  ;;  %v1446_v18 = vmul.f32 0.5, %v3423_v19 }
 0x206   :  { %1799 = vst [vmem:[#allocation2 + $0xf0] sm:$0xff] %v1735_v49  ;;  %v1752_v46 = vmul.f32 %v1688_v48, %v2854_v35  ;;  %v1592_v26 = vsub.f32 1.5, %v1528_v50  ;;  %v1511_v45 = vmul.f32 %v3428_v30, %v1374_v3  ;;  %vm1381_vm15 = vweird.f32 %v3438_v4 }
 0x207   :  { %v1672_v56 = vmul.f32 %v1608_v12, %v1064_v44  ;;  %v1364_v47 = vsel %vm1363_vm13, %v2056_v42, %v1360_v0  ;;  %v1448_v16 = vmul.f32 0.5, %v3438_v4 }
 0x208   :  { %1816 = vst [vmem:[#allocation2 + $0x178] sm:$0xff] %v1752_v46  ;;  %v1656_v51 = vmul.f32 %v1592_v26, %v904_v41  ;;  %v1575_v28 = vmul.f32 %v1511_v45, %v1374_v3  ;;  %v1510_v43 = vmul.f32 %v1446_v18, %v1364_v47 }
 0x209   :  { %v1736_v38 = vmul.f32 %v1672_v56, %v2863_v55  ;;  %v2058_v7 = vpop.eup %2057 }
 0x20a   :  { %v1720_v25 = vmul.f32 %v1656_v51, %v2878_v37  ;;  %v1639_v61 = vsub.f32 1.5, %v1575_v28  ;;  %v1574_v35 = vmul.f32 %v1510_v43, %v1364_v47  ;;  %v1376_v30 = vmul.f32 %v2058_v7, %v3438_v4 }
 0x20b   :  { %1800 = vst [vmem:[#allocation2 + $0xf8] sm:$0xff] %v1736_v38  ;;  %vm1382_vm14 = vweird.f32 %v2058_v7 }
 0x20c   :  { %1784 = vst [vmem:[#allocation2 + $0x78] sm:$0xff] %v1720_v25  ;;  %v1703_v14 = vmul.f32 %v1639_v61, %v1374_v3  ;;  %v1638_v2 = vsub.f32 1.5, %v1574_v35  ;;  %v1377_v19 = vmul.f32 %v2058_v7, %v1376_v30  ;;  %vm1383_vm0 = vmor %vm1381_vm15, %vm1382_vm14 }
 0x20e   :  { %v1767_v33 = vmul.f32 %v1703_v14, %v2909_v62  ;;  %v1702_v13 = vmul.f32 %v1638_v2, %v1364_v47  ;;  %v1378_v42 = vmul.f32 0.5, %v1377_v19 }
 0x210   :  { %1831 = vst [vmem:[#allocation2 + $0x1f0] sm:$0xff] %v1767_v33  ;;  %v1766_v10 = vmul.f32 %v1702_v13, %v2808_v11  ;;  %v1379_v55 = vsub.f32 1.5, %v1378_v42 }
 0x212   :  { %1830 = vst [vmem:[#allocation2 + $0x1e8] sm:$0xff] %v1766_v10  ;;  %v1380_v37 = vmul.f32 %v2058_v7, %v1379_v55 }
 0x214   :  { %v1384_v32 = vsel %vm1383_vm0, %v2058_v7, %v1380_v37 }
 0x215   :  { %v1512_v31 = vmul.f32 %v1448_v16, %v1384_v32 }
 0x217   :  { %v1576_v63 = vmul.f32 %v1512_v31, %v1384_v32 }
 0x219   :  { %v1640_v40 = vsub.f32 1.5, %v1576_v63 }
 0x21b   :  { %v1704_v11 = vmul.f32 %v1640_v40, %v1384_v32 }
 0x21d   :  { %v1768_v62 = vmul.f32 %v1704_v11, %v2918_v1 }
 0x21f   :  { %1832 = vst [vmem:[#allocation2 + $0x1f8] sm:$0xff] %v1768_v62 }
 0x220   :  { %1845 = dma.vmem_to_hbm [thread:$0]  %s1838_s11, 8192, %s1840_s14, [#allocation3], %s2087_s15, %s2087_s15, %s2088_s16  }
 0x221   :  { %2084 = dma.done.wait [#allocation3], 8192  }
 0x222   :  { %2085 = vsyncadd [#allocation3], 4294959104 }
 0x223   :  { %1850 = vsyncpa [#allocation3], 1 }

</bundles_post_ra>
